<compile_context>
chip_gen: v7x
topology: tpu7x:2x2x1
jax: 0.10.0
libtpu: 0.0.40
codegen_flags: <defaults>
</compile_context>

<pallas_src>
import functools
import math

import jax
import jax.numpy as jnp
from jax import lax
from jax.experimental import pallas as pl
from jax.experimental.pallas import tpu as pltpu


def _round_up(x, m):
    return ((x + m - 1) // m) * m


def _split_bf16(x):
    """f32 -> (hi, lo) bf16 pair with x ~= hi + lo (for bf16x3 MXU matmuls)."""
    hi = x.astype(jnp.bfloat16)
    lo = (x - hi.astype(jnp.float32)).astype(jnp.bfloat16)
    return hi, lo


# ---------------------------------------------------------------------------
# Kernel: per grid step, Bt samples.  k*k taps; each tap is a lane-offset
# slice of the flattened padded input followed by a batched MXU GEMM that
# accumulates into an f32 VMEM scratch.  Output is the "wide" (H_out, W_pad)
# grid flattened to a lane-dense TL; junk columns are sliced off in the
# wrapper.
#   xh/xl : [Bt, C_in, X_len] bf16   (hi/lo split of padded, flattened input)
#   wh/wl : [Bt, OC, Q]       bf16   (hi/lo dyn weights, q = (ky*k+kx)*C_in+ci)
#   b     : [1, OC, 1]        f32
#   o     : [Bt, OC, TL]      out_dtype
#   acc   : [Bt, OC, TL]      f32 VMEM scratch accumulator
# ---------------------------------------------------------------------------
def _dcconv_kernel(xh_ref, xl_ref, wh_ref, wl_ref, b_ref, o_ref, acc_ref,
                   *, k, dilation, w_pad, tl, c_in):
    wh = wh_ref[...]                                   # hoisted: loaded once
    wl = wl_ref[...]
    acc_ref[...] = jnp.zeros_like(acc_ref)

    dims = (((2,), (1,)), ((0,), (0,)))                # contract C_in, batch B

    for ky in range(k):                                # k*k static taps (small)
        for kx in range(k):
            tap = ky * k + kx
            off = dilation * (ky * w_pad + kx)         # static lane offset
            xs_h = xh_ref[:, :, off:off + tl]          # [Bt, C_in, TL]
            xs_l = xl_ref[:, :, off:off + tl]
            wt_h = wh[:, :, tap * c_in:(tap + 1) * c_in]   # [Bt, OC, C_in]
            wt_l = wl[:, :, tap * c_in:(tap + 1) * c_in]
            # bf16x3: w*x ~= wh*xh + wh*xl + wl*xh (f32 accumulation on MXU)
            acc_ref[...] += (
                lax.dot_general(wt_h, xs_h, dims,
                                preferred_element_type=jnp.float32)
                + lax.dot_general(wt_h, xs_l, dims,
                                  preferred_element_type=jnp.float32)
                + lax.dot_general(wt_l, xs_h, dims,
                                  preferred_element_type=jnp.float32))

    o_ref[...] = (acc_ref[...] + b_ref[...]).astype(o_ref.dtype)


def dcconv2d_forward(
    inputs,      # [B, C_in, H, W]  float32, NCHW
    inputs_se,   # [B, num]         float32 (the registered buffer)
    weight,      # [C_out*C_in*k*k, num]
    bias,        # [C_out] or None
    *,
    out_channels,
    kernel_size,
    stride=1,
    padding=0,
    dilation=1,
    groups=1,
    out_dtype=jnp.float32,        # bf16 halves output HBM bytes if tolerated
    vmem_block_budget=8 << 20,    # budget for per-step blocks (pre double-buffer)
):
    # TODO(synk): groups > 1 (beyond the implicit per-sample grouping) not implemented.
    assert groups == 1, "only groups=1 supported in this Pallas port"
    # TODO(synk): stride > 1 needs a strided-lane gather; rejected until validated on HW.
    assert stride == 1, "only stride=1 supported in this Pallas port"
    # TODO(synk): samples whose padded activation exceeds VMEM need halo-DMA row tiling.

    B, C_in, H, W = inputs.shape
    k, d, OC = kernel_size, dilation, out_channels
    Q = C_in * k * k
    P = OC * Q
    assert weight.shape == (P, inputs_se.shape[-1])

    H_pad, W_pad = H + 2 * padding, W + 2 * padding
    H_out, W_out = H_pad - d * (k - 1), W_pad - d * (k - 1)   # stride == 1
    assert H_out > 0 and W_out > 0

    TL_raw = H_out * W_pad                      # "wide" output (W_pad cols/row)
    TL = _round_up(TL_raw, 128)                 # lane-dense output tile
    off_max = d * ((k - 1) * W_pad + (k - 1))
    X_len = _round_up(TL + off_max, 128)        # lane-dense flattened input

    # ---- dynamic weight generation: tiny [B,num]@[num,P] GEMM -> plain XLA.
    dyn = jnp.dot(inputs_se.astype(jnp.float32), weight.T.astype(jnp.float32),
                  precision=lax.Precision.HIGHEST)                    # [B, P]
    dyn_w = (dyn.reshape(B, OC, C_in, k, k)
                .transpose(0, 1, 3, 4, 2)       # q = (ky*k + kx)*C_in + ci
                .reshape(B, OC, Q))

    # ---- pad + flatten the input spatially: [B, C_in, X_len] (lanes >= 128).
    xp = jnp.pad(inputs.astype(jnp.float32),
                 ((0, 0), (0, 0), (padding, padding), (padding, padding)))
    xflat = xp.reshape(B, C_in, H_pad * W_pad)
    xflat = jnp.pad(xflat, ((0, 0), (0, 0), (0, X_len - H_pad * W_pad)))

    x_hi, x_lo = _split_bf16(xflat)
    w_hi, w_lo = _split_bf16(dyn_w)
    bias_arr = (jnp.zeros((1, OC, 1), jnp.float32) if bias is None
                else bias.reshape(1, OC, 1).astype(jnp.float32))

    # ---- samples per grid step from a VMEM block budget; explicit vmem limit.
    oc8 = _round_up(OC, 8)
    ci8 = _round_up(C_in, 8)
    bytes_x = 2 * ci8 * X_len * 2                       # hi + lo, bf16
    bytes_w = 2 * oc8 * _round_up(Q, 128) * 2
    bytes_o = oc8 * TL * jnp.dtype(out_dtype).itemsize
    bytes_acc = oc8 * TL * 4
    per_sample = 2 * (bytes_x + bytes_w + bytes_o) + bytes_acc   # 2x = dbl buffer
    Bt = max(1, min(B, 16, vmem_block_budget // per_sample))
    B_pad = _round_up(B, Bt)
    if B_pad > B:
        pad = ((0, B_pad - B), (0, 0), (0, 0))
        x_hi, x_lo = jnp.pad(x_hi, pad), jnp.pad(x_lo, pad)
        w_hi, w_lo = jnp.pad(w_hi, pad), jnp.pad(w_lo, pad)
    vmem_limit = int(min(max(2 * Bt * per_sample + (4 << 20), 32 << 20), 56 << 20))

    x_spec = pl.BlockSpec((Bt, C_in, X_len), lambda i: (i, 0, 0))
    w_spec = pl.BlockSpec((Bt, OC, Q), lambda i: (i, 0, 0))
    b_spec = pl.BlockSpec((1, OC, 1), lambda i: (0, 0, 0))
    o_spec = pl.BlockSpec((Bt, OC, TL), lambda i: (i, 0, 0))

    kernel = functools.partial(_dcconv_kernel, k=k, dilation=d, w_pad=W_pad,
                               tl=TL, c_in=C_in)

    cost = pl.CostEstimate(
        flops=2 * 3 * B_pad * OC * Q * TL,
        transcendentals=0,
        bytes_accessed=int(x_hi.size * 2 * 2 + w_hi.size * 2 * 2
                           + bias_arr.size * 4
                           + B_pad * OC * TL * jnp.dtype(out_dtype).itemsize),
    )

    out_flat = pl.pallas_call(
        kernel,
        out_shape=jax.ShapeDtypeStruct((B_pad, OC, TL), out_dtype),
        grid=(B_pad // Bt,),
        in_specs=[x_spec, x_spec, w_spec, w_spec, b_spec],
        out_specs=o_spec,
        scratch_shapes=[pltpu.VMEM((Bt, OC, TL), jnp.float32)],
        compiler_params=pltpu.CompilerParams(
            dimension_semantics=("parallel",),
            vmem_limit_bytes=vmem_limit),
        cost_estimate=cost,
    )(x_hi, x_lo, w_hi, w_lo, bias_arr)

    out = out_flat[:B, :, :TL_raw].reshape(B, OC, H_out, W_pad)[:, :, :, :W_out]
    return out


# ---------------------------------------------------------------------------
# Pure-JAX reference mirroring the PyTorch forward exactly (for verification).
# ---------------------------------------------------------------------------
def dcconv2d_reference(inputs, inputs_se, weight, bias, *, out_channels,
                       kernel_size, stride, padding, dilation, groups):
    B, C, H, W = inputs.shape
    k = kernel_size
    dyn = jnp.dot(inputs_se, weight.T, precision=lax.Precision.HIGHEST)  # F.linear
    w = dyn.reshape(B * out_channels, C // groups, k, k)
    x = inputs.reshape(1, B * C, H, W)
    out = lax.conv_general_dilated(
        x, w,
        window_strides=(stride, stride),
        padding=[(padding, padding), (padding, padding)],
        rhs_dilation=(dilation, dilation),
        dimension_numbers=("NCHW", "OIHW", "NCHW"),
        feature_group_count=groups * B,
        precision=lax.Precision.HIGHEST,
    )
    Ho, Wo = out.shape[2:]
    out = out.reshape(B, out_channels, Ho, Wo)
    if bias is not None:
        out = out + bias.reshape(1, -1, 1, 1)
    return out


if __name__ == "__main__":
    # Module hyper-parameters (small, consistent with DCConv2d's forward).
    num = 8
    in_channels = 4
    out_channels = 8
    kernel_size = 3
    stride, padding, dilation, groups = 1, 1, 1, 1
    B, H, W = 2, 16, 16

    key = jax.random.PRNGKey(0)
    k_x, k_se, k_w = jax.random.split(key, 3)

    # Parameter init matching _initialize_weights: weight ~ N(0, sqrt(1/(C*k*k))), bias = 0.
    P = out_channels * in_channels * kernel_size * kernel_size // groups
    w_std = math.sqrt(1.0 / (in_channels * kernel_size * kernel_size))
    weight = jax.random.normal(k_w, (P, num), jnp.float32) * w_std
    bias = jnp.zeros((out_channels,), jnp.float32)
    # TODO(synk): routing_fc (Linear(embedding_in, num)) exists in __init__ but is
    # never called in forward; inputs_se is the registered buffer consumed directly.

    x = jax.random.normal(k_x, (B, in_channels, H, W), jnp.float32)
    inputs_se = jax.random.normal(k_se, (B, num), jnp.float32)

    fwd = functools.partial(
        dcconv2d_forward,
        out_channels=out_channels, kernel_size=kernel_size,
        stride=stride, padding=padding, dilation=dilation, groups=groups,
    )
    out = jax.block_until_ready(jax.jit(fwd)(x, inputs_se, weight, bias))

    ref = dcconv2d_reference(
        x, inputs_se, weight, bias,
        out_channels=out_channels, kernel_size=kernel_size,
        stride=stride, padding=padding, dilation=dilation, groups=groups,
    )

    assert out.shape == ref.shape, (out.shape, ref.shape)
    # bf16x3 (hi/lo split) MXU path: expected max abs error ~1e-4 at these magnitudes.
    err = float(jnp.max(jnp.abs(out - ref)))
    assert err < 1e-3, err

    print("KERNEL_OK")
</pallas_src>

<mosaic_0001>
module attributes {stable_mosaic.version = 11 : i64} {
  func.func @_dcconv_kernel(%arg0: i32, %arg1: memref<2x4x512xbf16, #tpu.memory_space<vmem>>, %arg2: memref<2x4x512xbf16, #tpu.memory_space<vmem>>, %arg3: memref<2x8x36xbf16, #tpu.memory_space<vmem>>, %arg4: memref<2x8x36xbf16, #tpu.memory_space<vmem>>, %arg5: memref<1x8x1xf32, #tpu.memory_space<vmem>>, %arg6: memref<2x8x384xf32, #tpu.memory_space<vmem>>, %arg7: memref<2x8x384xf32, #tpu.memory_space<vmem>>) attributes {dimension_semantics = [#tpu.dimension_semantics<parallel>], iteration_bounds = array<i64: 1>, scalar_prefetch = 0 : i64, scratch_operands = 1 : i64, tpu.core_type = #tpu.core_type<tc>, window_params = [{transform_indices = @transform_0, window_bounds = array<i64: 2, 4, 512>}, {transform_indices = @transform_1, window_bounds = array<i64: 2, 4, 512>}, {transform_indices = @transform_2, window_bounds = array<i64: 2, 8, 36>}, {transform_indices = @transform_3, window_bounds = array<i64: 2, 8, 36>}, {pipeline_mode = #tpu.pipeline_mode<synchronous>, transform_indices = @transform_4, window_bounds = array<i64: 1, 8, 1>}, {transform_indices = @transform_5, window_bounds = array<i64: 2, 8, 384>}]} {
    %c0 = arith.constant 0 : index
    %c0_0 = arith.constant 0 : index
    %c0_1 = arith.constant 0 : index
    %0 = vector.load %arg3[%c0, %c0_0, %c0_1] : memref<2x8x36xbf16, #tpu.memory_space<vmem>>, vector<2x8x36xbf16>
    %c0_2 = arith.constant 0 : index
    %c0_3 = arith.constant 0 : index
    %c0_4 = arith.constant 0 : index
    %1 = vector.load %arg4[%c0_2, %c0_3, %c0_4] : memref<2x8x36xbf16, #tpu.memory_space<vmem>>, vector<2x8x36xbf16>
    %cst = arith.constant 0.000000e+00 : f32
    %2 = vector.broadcast %cst : f32 to vector<2x8x384xf32>
    %c0_5 = arith.constant 0 : index
    %c0_6 = arith.constant 0 : index
    %c0_7 = arith.constant 0 : index
    %3 = vector.load %arg7[%c0_5, %c0_6, %c0_7] : memref<2x8x384xf32, #tpu.memory_space<vmem>>, vector<2x8x384xf32>
    tpu.vector_store %arg7[%c0_5, %c0_6, %c0_7], %2 {strides = array<i32>} : memref<2x8x384xf32, #tpu.memory_space<vmem>>, vector<2x8x384xf32>,
    %c0_8 = arith.constant 0 : index
    %c0_9 = arith.constant 0 : index
    %c0_10 = arith.constant 0 : index
    %4 = vector.load %arg1[%c0_8, %c0_9, %c0_10] : memref<2x4x512xbf16, #tpu.memory_space<vmem>>, vector<2x4x384xbf16>
    %c0_11 = arith.constant 0 : index
    %c0_12 = arith.constant 0 : index
    %c0_13 = arith.constant 0 : index
    %5 = vector.load %arg2[%c0_11, %c0_12, %c0_13] : memref<2x4x512xbf16, #tpu.memory_space<vmem>>, vector<2x4x384xbf16>
    %6 = vector.extract_strided_slice %0 {offsets = [0, 0, 0], sizes = [2, 8, 4], strides = [1, 1, 1]} : vector<2x8x36xbf16> to vector<2x8x4xbf16>
    %7 = vector.extract_strided_slice %1 {offsets = [0, 0, 0], sizes = [2, 8, 4], strides = [1, 1, 1]} : vector<2x8x36xbf16> to vector<2x8x4xbf16>
    %c0_14 = arith.constant 0 : index
    %c0_15 = arith.constant 0 : index
    %c0_16 = arith.constant 0 : index
    %8 = vector.load %arg7[%c0_14, %c0_15, %c0_16] : memref<2x8x384xf32, #tpu.memory_space<vmem>>, vector<2x8x384xf32>
    %cst_17 = arith.constant dense<0.000000e+00> : vector<2x8x384xf32>
    %9 = tpu.matmul %6, %4, %cst_17 {dimension_numbers = #tpu.dot_dimension_numbers<[2], [1], [1], [2], [0, 0, 0, 1, 1, 2], [0], [0]>} : vector<2x8x4xbf16>, vector<2x4x384xbf16>, vector<2x8x384xf32> -> vector<2x8x384xf32>
    %cst_18 = arith.constant dense<0.000000e+00> : vector<2x8x384xf32>
    %10 = tpu.matmul %6, %5, %cst_18 {dimension_numbers = #tpu.dot_dimension_numbers<[2], [1], [1], [2], [0, 0, 0, 1, 1, 2], [0], [0]>} : vector<2x8x4xbf16>, vector<2x4x384xbf16>, vector<2x8x384xf32> -> vector<2x8x384xf32>
    %11 = arith.addf %9, %10 : vector<2x8x384xf32>
    %cst_19 = arith.constant dense<0.000000e+00> : vector<2x8x384xf32>
    %12 = tpu.matmul %7, %4, %cst_19 {dimension_numbers = #tpu.dot_dimension_numbers<[2], [1], [1], [2], [0, 0, 0, 1, 1, 2], [0], [0]>} : vector<2x8x4xbf16>, vector<2x4x384xbf16>, vector<2x8x384xf32> -> vector<2x8x384xf32>
    %13 = arith.addf %11, %12 : vector<2x8x384xf32>
    %14 = arith.addf %8, %13 : vector<2x8x384xf32>
    %c0_20 = arith.constant 0 : index
    %c0_21 = arith.constant 0 : index
    %c0_22 = arith.constant 0 : index
    %15 = vector.load %arg7[%c0_20, %c0_21, %c0_22] : memref<2x8x384xf32, #tpu.memory_space<vmem>>, vector<2x8x384xf32>
    tpu.vector_store %arg7[%c0_20, %c0_21, %c0_22], %14 {strides = array<i32>} : memref<2x8x384xf32, #tpu.memory_space<vmem>>, vector<2x8x384xf32>,
    %c0_23 = arith.constant 0 : index
    %c0_24 = arith.constant 0 : index
    %c1 = arith.constant 1 : index
    %16 = vector.load %arg1[%c0_23, %c0_24, %c1] : memref<2x4x512xbf16, #tpu.memory_space<vmem>>, vector<2x4x384xbf16>
    %c0_25 = arith.constant 0 : index
    %c0_26 = arith.constant 0 : index
    %c1_27 = arith.constant 1 : index
    %17 = vector.load %arg2[%c0_25, %c0_26, %c1_27] : memref<2x4x512xbf16, #tpu.memory_space<vmem>>, vector<2x4x384xbf16>
    %18 = vector.extract_strided_slice %0 {offsets = [0, 0, 4], sizes = [2, 8, 4], strides = [1, 1, 1]} : vector<2x8x36xbf16> to vector<2x8x4xbf16>
    %19 = vector.extract_strided_slice %1 {offsets = [0, 0, 4], sizes = [2, 8, 4], strides = [1, 1, 1]} : vector<2x8x36xbf16> to vector<2x8x4xbf16>
    %c0_28 = arith.constant 0 : index
    %c0_29 = arith.constant 0 : index
    %c0_30 = arith.constant 0 : index
    %20 = vector.load %arg7[%c0_28, %c0_29, %c0_30] : memref<2x8x384xf32, #tpu.memory_space<vmem>>, vector<2x8x384xf32>
    %cst_31 = arith.constant dense<0.000000e+00> : vector<2x8x384xf32>
    %21 = tpu.matmul %18, %16, %cst_31 {dimension_numbers = #tpu.dot_dimension_numbers<[2], [1], [1], [2], [0, 0, 0, 1, 1, 2], [0], [0]>} : vector<2x8x4xbf16>, vector<2x4x384xbf16>, vector<2x8x384xf32> -> vector<2x8x384xf32>
    %cst_32 = arith.constant dense<0.000000e+00> : vector<2x8x384xf32>
    %22 = tpu.matmul %18, %17, %cst_32 {dimension_numbers = #tpu.dot_dimension_numbers<[2], [1], [1], [2], [0, 0, 0, 1, 1, 2], [0], [0]>} : vector<2x8x4xbf16>, vector<2x4x384xbf16>, vector<2x8x384xf32> -> vector<2x8x384xf32>
    %23 = arith.addf %21, %22 : vector<2x8x384xf32>
    %cst_33 = arith.constant dense<0.000000e+00> : vector<2x8x384xf32>
    %24 = tpu.matmul %19, %16, %cst_33 {dimension_numbers = #tpu.dot_dimension_numbers<[2], [1], [1], [2], [0, 0, 0, 1, 1, 2], [0], [0]>} : vector<2x8x4xbf16>, vector<2x4x384xbf16>, vector<2x8x384xf32> -> vector<2x8x384xf32>
    %25 = arith.addf %23, %24 : vector<2x8x384xf32>
    %26 = arith.addf %20, %25 : vector<2x8x384xf32>
    %c0_34 = arith.constant 0 : index
    %c0_35 = arith.constant 0 : index
    %c0_36 = arith.constant 0 : index
    %27 = vector.load %arg7[%c0_34, %c0_35, %c0_36] : memref<2x8x384xf32, #tpu.memory_space<vmem>>, vector<2x8x384xf32>
    tpu.vector_store %arg7[%c0_34, %c0_35, %c0_36], %26 {strides = array<i32>} : memref<2x8x384xf32, #tpu.memory_space<vmem>>, vector<2x8x384xf32>,
    %c0_37 = arith.constant 0 : index
    %c0_38 = arith.constant 0 : index
    %c2 = arith.constant 2 : index
    %28 = vector.load %arg1[%c0_37, %c0_38, %c2] : memref<2x4x512xbf16, #tpu.memory_space<vmem>>, vector<2x4x384xbf16>
    %c0_39 = arith.constant 0 : index
    %c0_40 = arith.constant 0 : index
    %c2_41 = arith.constant 2 : index
    %29 = vector.load %arg2[%c0_39, %c0_40, %c2_41] : memref<2x4x512xbf16, #tpu.memory_space<vmem>>, vector<2x4x384xbf16>
    %30 = vector.extract_strided_slice %0 {offsets = [0, 0, 8], sizes = [2, 8, 4], strides = [1, 1, 1]} : vector<2x8x36xbf16> to vector<2x8x4xbf16>
    %31 = vector.extract_strided_slice %1 {offsets = [0, 0, 8], sizes = [2, 8, 4], strides = [1, 1, 1]} : vector<2x8x36xbf16> to vector<2x8x4xbf16>
    %c0_42 = arith.constant 0 : index
    %c0_43 = arith.constant 0 : index
    %c0_44 = arith.constant 0 : index
    %32 = vector.load %arg7[%c0_42, %c0_43, %c0_44] : memref<2x8x384xf32, #tpu.memory_space<vmem>>, vector<2x8x384xf32>
    %cst_45 = arith.constant dense<0.000000e+00> : vector<2x8x384xf32>
    %33 = tpu.matmul %30, %28, %cst_45 {dimension_numbers = #tpu.dot_dimension_numbers<[2], [1], [1], [2], [0, 0, 0, 1, 1, 2], [0], [0]>} : vector<2x8x4xbf16>, vector<2x4x384xbf16>, vector<2x8x384xf32> -> vector<2x8x384xf32>
    %cst_46 = arith.constant dense<0.000000e+00> : vector<2x8x384xf32>
    %34 = tpu.matmul %30, %29, %cst_46 {dimension_numbers = #tpu.dot_dimension_numbers<[2], [1], [1], [2], [0, 0, 0, 1, 1, 2], [0], [0]>} : vector<2x8x4xbf16>, vector<2x4x384xbf16>, vector<2x8x384xf32> -> vector<2x8x384xf32>
    %35 = arith.addf %33, %34 : vector<2x8x384xf32>
    %cst_47 = arith.constant dense<0.000000e+00> : vector<2x8x384xf32>
    %36 = tpu.matmul %31, %28, %cst_47 {dimension_numbers = #tpu.dot_dimension_numbers<[2], [1], [1], [2], [0, 0, 0, 1, 1, 2], [0], [0]>} : vector<2x8x4xbf16>, vector<2x4x384xbf16>, vector<2x8x384xf32> -> vector<2x8x384xf32>
    %37 = arith.addf %35, %36 : vector<2x8x384xf32>
    %38 = arith.addf %32, %37 : vector<2x8x384xf32>
    %c0_48 = arith.constant 0 : index
    %c0_49 = arith.constant 0 : index
    %c0_50 = arith.constant 0 : index
    %39 = vector.load %arg7[%c0_48, %c0_49, %c0_50] : memref<2x8x384xf32, #tpu.memory_space<vmem>>, vector<2x8x384xf32>
    tpu.vector_store %arg7[%c0_48, %c0_49, %c0_50], %38 {strides = array<i32>} : memref<2x8x384xf32, #tpu.memory_space<vmem>>, vector<2x8x384xf32>,
    %c0_51 = arith.constant 0 : index
    %c0_52 = arith.constant 0 : index
    %c18 = arith.constant 18 : index
    %40 = vector.load %arg1[%c0_51, %c0_52, %c18] : memref<2x4x512xbf16, #tpu.memory_space<vmem>>, vector<2x4x384xbf16>
    %c0_53 = arith.constant 0 : index
    %c0_54 = arith.constant 0 : index
    %c18_55 = arith.constant 18 : index
    %41 = vector.load %arg2[%c0_53, %c0_54, %c18_55] : memref<2x4x512xbf16, #tpu.memory_space<vmem>>, vector<2x4x384xbf16>
    %42 = vector.extract_strided_slice %0 {offsets = [0, 0, 12], sizes = [2, 8, 4], strides = [1, 1, 1]} : vector<2x8x36xbf16> to vector<2x8x4xbf16>
    %43 = vector.extract_strided_slice %1 {offsets = [0, 0, 12], sizes = [2, 8, 4], strides = [1, 1, 1]} : vector<2x8x36xbf16> to vector<2x8x4xbf16>
    %c0_56 = arith.constant 0 : index
    %c0_57 = arith.constant 0 : index
    %c0_58 = arith.constant 0 : index
    %44 = vector.load %arg7[%c0_56, %c0_57, %c0_58] : memref<2x8x384xf32, #tpu.memory_space<vmem>>, vector<2x8x384xf32>
    %cst_59 = arith.constant dense<0.000000e+00> : vector<2x8x384xf32>
    %45 = tpu.matmul %42, %40, %cst_59 {dimension_numbers = #tpu.dot_dimension_numbers<[2], [1], [1], [2], [0, 0, 0, 1, 1, 2], [0], [0]>} : vector<2x8x4xbf16>, vector<2x4x384xbf16>, vector<2x8x384xf32> -> vector<2x8x384xf32>
    %cst_60 = arith.constant dense<0.000000e+00> : vector<2x8x384xf32>
    %46 = tpu.matmul %42, %41, %cst_60 {dimension_numbers = #tpu.dot_dimension_numbers<[2], [1], [1], [2], [0, 0, 0, 1, 1, 2], [0], [0]>} : vector<2x8x4xbf16>, vector<2x4x384xbf16>, vector<2x8x384xf32> -> vector<2x8x384xf32>
    %47 = arith.addf %45, %46 : vector<2x8x384xf32>
    %cst_61 = arith.constant dense<0.000000e+00> : vector<2x8x384xf32>
    %48 = tpu.matmul %43, %40, %cst_61 {dimension_numbers = #tpu.dot_dimension_numbers<[2], [1], [1], [2], [0, 0, 0, 1, 1, 2], [0], [0]>} : vector<2x8x4xbf16>, vector<2x4x384xbf16>, vector<2x8x384xf32> -> vector<2x8x384xf32>
    %49 = arith.addf %47, %48 : vector<2x8x384xf32>
    %50 = arith.addf %44, %49 : vector<2x8x384xf32>
    %c0_62 = arith.constant 0 : index
    %c0_63 = arith.constant 0 : index
    %c0_64 = arith.constant 0 : index
    %51 = vector.load %arg7[%c0_62, %c0_63, %c0_64] : memref<2x8x384xf32, #tpu.memory_space<vmem>>, vector<2x8x384xf32>
    tpu.vector_store %arg7[%c0_62, %c0_63, %c0_64], %50 {strides = array<i32>} : memref<2x8x384xf32, #tpu.memory_space<vmem>>, vector<2x8x384xf32>,
    %c0_65 = arith.constant 0 : index
    %c0_66 = arith.constant 0 : index
    %c19 = arith.constant 19 : index
    %52 = vector.load %arg1[%c0_65, %c0_66, %c19] : memref<2x4x512xbf16, #tpu.memory_space<vmem>>, vector<2x4x384xbf16>
    %c0_67 = arith.constant 0 : index
    %c0_68 = arith.constant 0 : index
    %c19_69 = arith.constant 19 : index
    %53 = vector.load %arg2[%c0_67, %c0_68, %c19_69] : memref<2x4x512xbf16, #tpu.memory_space<vmem>>, vector<2x4x384xbf16>
    %54 = vector.extract_strided_slice %0 {offsets = [0, 0, 16], sizes = [2, 8, 4], strides = [1, 1, 1]} : vector<2x8x36xbf16> to vector<2x8x4xbf16>
    %55 = vector.extract_strided_slice %1 {offsets = [0, 0, 16], sizes = [2, 8, 4], strides = [1, 1, 1]} : vector<2x8x36xbf16> to vector<2x8x4xbf16>
    %c0_70 = arith.constant 0 : index
    %c0_71 = arith.constant 0 : index
    %c0_72 = arith.constant 0 : index
    %56 = vector.load %arg7[%c0_70, %c0_71, %c0_72] : memref<2x8x384xf32, #tpu.memory_space<vmem>>, vector<2x8x384xf32>
    %cst_73 = arith.constant dense<0.000000e+00> : vector<2x8x384xf32>
    %57 = tpu.matmul %54, %52, %cst_73 {dimension_numbers = #tpu.dot_dimension_numbers<[2], [1], [1], [2], [0, 0, 0, 1, 1, 2], [0], [0]>} : vector<2x8x4xbf16>, vector<2x4x384xbf16>, vector<2x8x384xf32> -> vector<2x8x384xf32>
    %cst_74 = arith.constant dense<0.000000e+00> : vector<2x8x384xf32>
    %58 = tpu.matmul %54, %53, %cst_74 {dimension_numbers = #tpu.dot_dimension_numbers<[2], [1], [1], [2], [0, 0, 0, 1, 1, 2], [0], [0]>} : vector<2x8x4xbf16>, vector<2x4x384xbf16>, vector<2x8x384xf32> -> vector<2x8x384xf32>
    %59 = arith.addf %57, %58 : vector<2x8x384xf32>
    %cst_75 = arith.constant dense<0.000000e+00> : vector<2x8x384xf32>
    %60 = tpu.matmul %55, %52, %cst_75 {dimension_numbers = #tpu.dot_dimension_numbers<[2], [1], [1], [2], [0, 0, 0, 1, 1, 2], [0], [0]>} : vector<2x8x4xbf16>, vector<2x4x384xbf16>, vector<2x8x384xf32> -> vector<2x8x384xf32>
    %61 = arith.addf %59, %60 : vector<2x8x384xf32>
    %62 = arith.addf %56, %61 : vector<2x8x384xf32>
    %c0_76 = arith.constant 0 : index
    %c0_77 = arith.constant 0 : index
    %c0_78 = arith.constant 0 : index
    %63 = vector.load %arg7[%c0_76, %c0_77, %c0_78] : memref<2x8x384xf32, #tpu.memory_space<vmem>>, vector<2x8x384xf32>
    tpu.vector_store %arg7[%c0_76, %c0_77, %c0_78], %62 {strides = array<i32>} : memref<2x8x384xf32, #tpu.memory_space<vmem>>, vector<2x8x384xf32>,
    %c0_79 = arith.constant 0 : index
    %c0_80 = arith.constant 0 : index
    %c20 = arith.constant 20 : index
    %64 = vector.load %arg1[%c0_79, %c0_80, %c20] : memref<2x4x512xbf16, #tpu.memory_space<vmem>>, vector<2x4x384xbf16>
    %c0_81 = arith.constant 0 : index
    %c0_82 = arith.constant 0 : index
    %c20_83 = arith.constant 20 : index
    %65 = vector.load %arg2[%c0_81, %c0_82, %c20_83] : memref<2x4x512xbf16, #tpu.memory_space<vmem>>, vector<2x4x384xbf16>
    %66 = vector.extract_strided_slice %0 {offsets = [0, 0, 20], sizes = [2, 8, 4], strides = [1, 1, 1]} : vector<2x8x36xbf16> to vector<2x8x4xbf16>
    %67 = vector.extract_strided_slice %1 {offsets = [0, 0, 20], sizes = [2, 8, 4], strides = [1, 1, 1]} : vector<2x8x36xbf16> to vector<2x8x4xbf16>
    %c0_84 = arith.constant 0 : index
    %c0_85 = arith.constant 0 : index
    %c0_86 = arith.constant 0 : index
    %68 = vector.load %arg7[%c0_84, %c0_85, %c0_86] : memref<2x8x384xf32, #tpu.memory_space<vmem>>, vector<2x8x384xf32>
    %cst_87 = arith.constant dense<0.000000e+00> : vector<2x8x384xf32>
    %69 = tpu.matmul %66, %64, %cst_87 {dimension_numbers = #tpu.dot_dimension_numbers<[2], [1], [1], [2], [0, 0, 0, 1, 1, 2], [0], [0]>} : vector<2x8x4xbf16>, vector<2x4x384xbf16>, vector<2x8x384xf32> -> vector<2x8x384xf32>
    %cst_88 = arith.constant dense<0.000000e+00> : vector<2x8x384xf32>
    %70 = tpu.matmul %66, %65, %cst_88 {dimension_numbers = #tpu.dot_dimension_numbers<[2], [1], [1], [2], [0, 0, 0, 1, 1, 2], [0], [0]>} : vector<2x8x4xbf16>, vector<2x4x384xbf16>, vector<2x8x384xf32> -> vector<2x8x384xf32>
    %71 = arith.addf %69, %70 : vector<2x8x384xf32>
    %cst_89 = arith.constant dense<0.000000e+00> : vector<2x8x384xf32>
    %72 = tpu.matmul %67, %64, %cst_89 {dimension_numbers = #tpu.dot_dimension_numbers<[2], [1], [1], [2], [0, 0, 0, 1, 1, 2], [0], [0]>} : vector<2x8x4xbf16>, vector<2x4x384xbf16>, vector<2x8x384xf32> -> vector<2x8x384xf32>
    %73 = arith.addf %71, %72 : vector<2x8x384xf32>
    %74 = arith.addf %68, %73 : vector<2x8x384xf32>
    %c0_90 = arith.constant 0 : index
    %c0_91 = arith.constant 0 : index
    %c0_92 = arith.constant 0 : index
    %75 = vector.load %arg7[%c0_90, %c0_91, %c0_92] : memref<2x8x384xf32, #tpu.memory_space<vmem>>, vector<2x8x384xf32>
    tpu.vector_store %arg7[%c0_90, %c0_91, %c0_92], %74 {strides = array<i32>} : memref<2x8x384xf32, #tpu.memory_space<vmem>>, vector<2x8x384xf32>,
    %c0_93 = arith.constant 0 : index
    %c0_94 = arith.constant 0 : index
    %c36 = arith.constant 36 : index
    %76 = vector.load %arg1[%c0_93, %c0_94, %c36] : memref<2x4x512xbf16, #tpu.memory_space<vmem>>, vector<2x4x384xbf16>
    %c0_95 = arith.constant 0 : index
    %c0_96 = arith.constant 0 : index
    %c36_97 = arith.constant 36 : index
    %77 = vector.load %arg2[%c0_95, %c0_96, %c36_97] : memref<2x4x512xbf16, #tpu.memory_space<vmem>>, vector<2x4x384xbf16>
    %78 = vector.extract_strided_slice %0 {offsets = [0, 0, 24], sizes = [2, 8, 4], strides = [1, 1, 1]} : vector<2x8x36xbf16> to vector<2x8x4xbf16>
    %79 = vector.extract_strided_slice %1 {offsets = [0, 0, 24], sizes = [2, 8, 4], strides = [1, 1, 1]} : vector<2x8x36xbf16> to vector<2x8x4xbf16>
    %c0_98 = arith.constant 0 : index
    %c0_99 = arith.constant 0 : index
    %c0_100 = arith.constant 0 : index
    %80 = vector.load %arg7[%c0_98, %c0_99, %c0_100] : memref<2x8x384xf32, #tpu.memory_space<vmem>>, vector<2x8x384xf32>
    %cst_101 = arith.constant dense<0.000000e+00> : vector<2x8x384xf32>
    %81 = tpu.matmul %78, %76, %cst_101 {dimension_numbers = #tpu.dot_dimension_numbers<[2], [1], [1], [2], [0, 0, 0, 1, 1, 2], [0], [0]>} : vector<2x8x4xbf16>, vector<2x4x384xbf16>, vector<2x8x384xf32> -> vector<2x8x384xf32>
    %cst_102 = arith.constant dense<0.000000e+00> : vector<2x8x384xf32>
    %82 = tpu.matmul %78, %77, %cst_102 {dimension_numbers = #tpu.dot_dimension_numbers<[2], [1], [1], [2], [0, 0, 0, 1, 1, 2], [0], [0]>} : vector<2x8x4xbf16>, vector<2x4x384xbf16>, vector<2x8x384xf32> -> vector<2x8x384xf32>
    %83 = arith.addf %81, %82 : vector<2x8x384xf32>
    %cst_103 = arith.constant dense<0.000000e+00> : vector<2x8x384xf32>
    %84 = tpu.matmul %79, %76, %cst_103 {dimension_numbers = #tpu.dot_dimension_numbers<[2], [1], [1], [2], [0, 0, 0, 1, 1, 2], [0], [0]>} : vector<2x8x4xbf16>, vector<2x4x384xbf16>, vector<2x8x384xf32> -> vector<2x8x384xf32>
    %85 = arith.addf %83, %84 : vector<2x8x384xf32>
    %86 = arith.addf %80, %85 : vector<2x8x384xf32>
    %c0_104 = arith.constant 0 : index
    %c0_105 = arith.constant 0 : index
    %c0_106 = arith.constant 0 : index
    %87 = vector.load %arg7[%c0_104, %c0_105, %c0_106] : memref<2x8x384xf32, #tpu.memory_space<vmem>>, vector<2x8x384xf32>
    tpu.vector_store %arg7[%c0_104, %c0_105, %c0_106], %86 {strides = array<i32>} : memref<2x8x384xf32, #tpu.memory_space<vmem>>, vector<2x8x384xf32>,
    %c0_107 = arith.constant 0 : index
    %c0_108 = arith.constant 0 : index
    %c37 = arith.constant 37 : index
    %88 = vector.load %arg1[%c0_107, %c0_108, %c37] : memref<2x4x512xbf16, #tpu.memory_space<vmem>>, vector<2x4x384xbf16>
    %c0_109 = arith.constant 0 : index
    %c0_110 = arith.constant 0 : index
    %c37_111 = arith.constant 37 : index
    %89 = vector.load %arg2[%c0_109, %c0_110, %c37_111] : memref<2x4x512xbf16, #tpu.memory_space<vmem>>, vector<2x4x384xbf16>
    %90 = vector.extract_strided_slice %0 {offsets = [0, 0, 28], sizes = [2, 8, 4], strides = [1, 1, 1]} : vector<2x8x36xbf16> to vector<2x8x4xbf16>
    %91 = vector.extract_strided_slice %1 {offsets = [0, 0, 28], sizes = [2, 8, 4], strides = [1, 1, 1]} : vector<2x8x36xbf16> to vector<2x8x4xbf16>
    %c0_112 = arith.constant 0 : index
    %c0_113 = arith.constant 0 : index
    %c0_114 = arith.constant 0 : index
    %92 = vector.load %arg7[%c0_112, %c0_113, %c0_114] : memref<2x8x384xf32, #tpu.memory_space<vmem>>, vector<2x8x384xf32>
    %cst_115 = arith.constant dense<0.000000e+00> : vector<2x8x384xf32>
    %93 = tpu.matmul %90, %88, %cst_115 {dimension_numbers = #tpu.dot_dimension_numbers<[2], [1], [1], [2], [0, 0, 0, 1, 1, 2], [0], [0]>} : vector<2x8x4xbf16>, vector<2x4x384xbf16>, vector<2x8x384xf32> -> vector<2x8x384xf32>
    %cst_116 = arith.constant dense<0.000000e+00> : vector<2x8x384xf32>
    %94 = tpu.matmul %90, %89, %cst_116 {dimension_numbers = #tpu.dot_dimension_numbers<[2], [1], [1], [2], [0, 0, 0, 1, 1, 2], [0], [0]>} : vector<2x8x4xbf16>, vector<2x4x384xbf16>, vector<2x8x384xf32> -> vector<2x8x384xf32>
    %95 = arith.addf %93, %94 : vector<2x8x384xf32>
    %cst_117 = arith.constant dense<0.000000e+00> : vector<2x8x384xf32>
    %96 = tpu.matmul %91, %88, %cst_117 {dimension_numbers = #tpu.dot_dimension_numbers<[2], [1], [1], [2], [0, 0, 0, 1, 1, 2], [0], [0]>} : vector<2x8x4xbf16>, vector<2x4x384xbf16>, vector<2x8x384xf32> -> vector<2x8x384xf32>
    %97 = arith.addf %95, %96 : vector<2x8x384xf32>
    %98 = arith.addf %92, %97 : vector<2x8x384xf32>
    %c0_118 = arith.constant 0 : index
    %c0_119 = arith.constant 0 : index
    %c0_120 = arith.constant 0 : index
    %99 = vector.load %arg7[%c0_118, %c0_119, %c0_120] : memref<2x8x384xf32, #tpu.memory_space<vmem>>, vector<2x8x384xf32>
    tpu.vector_store %arg7[%c0_118, %c0_119, %c0_120], %98 {strides = array<i32>} : memref<2x8x384xf32, #tpu.memory_space<vmem>>, vector<2x8x384xf32>,
    %c0_121 = arith.constant 0 : index
    %c0_122 = arith.constant 0 : index
    %c38 = arith.constant 38 : index
    %100 = vector.load %arg1[%c0_121, %c0_122, %c38] : memref<2x4x512xbf16, #tpu.memory_space<vmem>>, vector<2x4x384xbf16>
    %c0_123 = arith.constant 0 : index
    %c0_124 = arith.constant 0 : index
    %c38_125 = arith.constant 38 : index
    %101 = vector.load %arg2[%c0_123, %c0_124, %c38_125] : memref<2x4x512xbf16, #tpu.memory_space<vmem>>, vector<2x4x384xbf16>
    %102 = vector.extract_strided_slice %0 {offsets = [0, 0, 32], sizes = [2, 8, 4], strides = [1, 1, 1]} : vector<2x8x36xbf16> to vector<2x8x4xbf16>
    %103 = vector.extract_strided_slice %1 {offsets = [0, 0, 32], sizes = [2, 8, 4], strides = [1, 1, 1]} : vector<2x8x36xbf16> to vector<2x8x4xbf16>
    %c0_126 = arith.constant 0 : index
    %c0_127 = arith.constant 0 : index
    %c0_128 = arith.constant 0 : index
    %104 = vector.load %arg7[%c0_126, %c0_127, %c0_128] : memref<2x8x384xf32, #tpu.memory_space<vmem>>, vector<2x8x384xf32>
    %cst_129 = arith.constant dense<0.000000e+00> : vector<2x8x384xf32>
    %105 = tpu.matmul %102, %100, %cst_129 {dimension_numbers = #tpu.dot_dimension_numbers<[2], [1], [1], [2], [0, 0, 0, 1, 1, 2], [0], [0]>} : vector<2x8x4xbf16>, vector<2x4x384xbf16>, vector<2x8x384xf32> -> vector<2x8x384xf32>
    %cst_130 = arith.constant dense<0.000000e+00> : vector<2x8x384xf32>
    %106 = tpu.matmul %102, %101, %cst_130 {dimension_numbers = #tpu.dot_dimension_numbers<[2], [1], [1], [2], [0, 0, 0, 1, 1, 2], [0], [0]>} : vector<2x8x4xbf16>, vector<2x4x384xbf16>, vector<2x8x384xf32> -> vector<2x8x384xf32>
    %107 = arith.addf %105, %106 : vector<2x8x384xf32>
    %cst_131 = arith.constant dense<0.000000e+00> : vector<2x8x384xf32>
    %108 = tpu.matmul %103, %100, %cst_131 {dimension_numbers = #tpu.dot_dimension_numbers<[2], [1], [1], [2], [0, 0, 0, 1, 1, 2], [0], [0]>} : vector<2x8x4xbf16>, vector<2x4x384xbf16>, vector<2x8x384xf32> -> vector<2x8x384xf32>
    %109 = arith.addf %107, %108 : vector<2x8x384xf32>
    %110 = arith.addf %104, %109 : vector<2x8x384xf32>
    %c0_132 = arith.constant 0 : index
    %c0_133 = arith.constant 0 : index
    %c0_134 = arith.constant 0 : index
    %111 = vector.load %arg7[%c0_132, %c0_133, %c0_134] : memref<2x8x384xf32, #tpu.memory_space<vmem>>, vector<2x8x384xf32>
    tpu.vector_store %arg7[%c0_132, %c0_133, %c0_134], %110 {strides = array<i32>} : memref<2x8x384xf32, #tpu.memory_space<vmem>>, vector<2x8x384xf32>,
    %c0_135 = arith.constant 0 : index
    %c0_136 = arith.constant 0 : index
    %c0_137 = arith.constant 0 : index
    %112 = vector.load %arg7[%c0_135, %c0_136, %c0_137] : memref<2x8x384xf32, #tpu.memory_space<vmem>>, vector<2x8x384xf32>
    %c0_138 = arith.constant 0 : index
    %c0_139 = arith.constant 0 : index
    %c0_140 = arith.constant 0 : index
    %113 = vector.load %arg5[%c0_138, %c0_139, %c0_140] : memref<1x8x1xf32, #tpu.memory_space<vmem>>, vector<1x8x1xf32>
    %114 = vector.broadcast %113 : vector<1x8x1xf32> to vector<2x8x384xf32>
    %115 = arith.addf %112, %114 : vector<2x8x384xf32>
    %c0_141 = arith.constant 0 : index
    %c0_142 = arith.constant 0 : index
    %c0_143 = arith.constant 0 : index
    %116 = vector.load %arg6[%c0_141, %c0_142, %c0_143] : memref<2x8x384xf32, #tpu.memory_space<vmem>>, vector<2x8x384xf32>
    tpu.vector_store %arg6[%c0_141, %c0_142, %c0_143], %115 {strides = array<i32>} : memref<2x8x384xf32, #tpu.memory_space<vmem>>, vector<2x8x384xf32>,
    return
  }
  func.func @transform_0(%arg0: i32) -> (i32, i32, i32) {
    %c0_i32 = arith.constant 0 : i32
    %c0_i32_0 = arith.constant 0 : i32
    %c0_i32_1 = arith.constant 0 : i32
    return %arg0, %c0_i32, %c0_i32_0 : i32, i32, i32
  }
  func.func @transform_1(%arg0: i32) -> (i32, i32, i32) {
    %c0_i32 = arith.constant 0 : i32
    %c0_i32_0 = arith.constant 0 : i32
    %c0_i32_1 = arith.constant 0 : i32
    return %arg0, %c0_i32, %c0_i32_0 : i32, i32, i32
  }
  func.func @transform_2(%arg0: i32) -> (i32, i32, i32) {
    %c0_i32 = arith.constant 0 : i32
    %c0_i32_0 = arith.constant 0 : i32
    %c0_i32_1 = arith.constant 0 : i32
    return %arg0, %c0_i32, %c0_i32_0 : i32, i32, i32
  }
  func.func @transform_3(%arg0: i32) -> (i32, i32, i32) {
    %c0_i32 = arith.constant 0 : i32
    %c0_i32_0 = arith.constant 0 : i32
    %c0_i32_1 = arith.constant 0 : i32
    return %arg0, %c0_i32, %c0_i32_0 : i32, i32, i32
  }
  func.func @transform_4(%arg0: i32) -> (i32, i32, i32) {
    %c0_i32 = arith.constant 0 : i32
    %c0_i32_0 = arith.constant 0 : i32
    %c0_i32_1 = arith.constant 0 : i32
    %c0_i32_2 = arith.constant 0 : i32
    return %c0_i32, %c0_i32_0, %c0_i32_1 : i32, i32, i32
  }
  func.func @transform_5(%arg0: i32) -> (i32, i32, i32) {
    %c0_i32 = arith.constant 0 : i32
    %c0_i32_0 = arith.constant 0 : i32
    %c0_i32_1 = arith.constant 0 : i32
    return %arg0, %c0_i32, %c0_i32_0 : i32, i32, i32
  }
}

</mosaic_0001>

<bundles_post_ra>
// kernel: dcconv2d_forward.1
= control target key start
LH: loop header
LB: loop body
LE: loop exit
PB: predicated region body
PF: predicated region fallthrough
CT: control target
= control target key end

     0   :  { %v46_v0 = vlaneseq  ;;  %v6833_v2 = vmov 1983009808   ;;  %v6834_v5 = vmov 0.0   ;;  %s6835_s22 = smov 124   ;;  %v6836_v11 = vmov 0   ;;  %s6838_s29 = smov 127   ;;  %s8434_s2 = inlined_call_operand.vmem [shape: bf16[2,8,36], index: 2, kind: input, shape index: {}]   ;;  %s8435_s1 = inlined_call_operand.vmem [shape: bf16[2,4,512], index: 1, kind: input, shape index: {}]   ;;  %s8436_s0 = inlined_call_operand.vmem [shape: bf16[2,4,512], index: 0, kind: input, shape index: {}]   ;;  %s8437_s3 = inlined_call_operand.vmem [shape: bf16[2,8,36], index: 3, kind: input, shape index: {}]   ;;  %s8438_s4 = inlined_call_operand.vmem [shape: f32[1,8,1], index: 4, kind: input, shape index: {}]   ;;  %s8439_s5 = inlined_call_operand.vmem [shape: f32[2,8,384], index: 5, kind: output, shape index: {}]  }
   0x1   :  { %v6885_v1 = vld [vmem:[%s8434_s2] sm:$0xf]  ;;  %v44_v3 = vunpack.c.l.s4 %v6833_v2  ;;  %6473 = vmatprep.subr.bf16.mxu1 %v6834_v5  ;;  %104 = vmatprep.mubr.bf16.mxu0 %v6836_v11  ;;  %v666_v12 = vld [vmem:[%s8435_s1 + $0x8] sm:$0xff]  ;;  %vm6837_vm0 = vmmov 0   ;;  %vm62_vm1 = vcmask 1041408   ;;  %vm58_vm2 = vcmask 31744  }
   0x2   :  { %v665_v4 = vld [vmem:[%s8435_s1] sm:$0xff]  ;;  %v6893_v6 = vcombine.low %v6885_v1, %v6885_v1  ;;  %v47_v7 = vshrl.u32 %v46_v0, 7  ;;  %6816 = vset.pattern.permute.xlu0 %v6836_v11  ;;  %6475 = vmatprep.mubr.msk.bf16.mxu1 %vm6837_vm0, %v6834_v5  ;;  %v34_v17 = vld [vmem:[%s8435_s1 + $0x8] sm:$0x3f]  ;;  %v807_v18 = vcombine.high %v666_v12, %v666_v12  ;;  %s6840_s18 = smov 120   ;;  %s6841_s19 = smov 110  }
   0x3   :  { %v45_v8 = vunpack.c.0.s8 %v44_v3  ;;  %v679_v9 = vcombine.high %v665_v4, %v665_v4  ;;  %v33_v13 = vld [vmem:[%s8435_s1] sm:$0x3f]  ;;  %v154_v19 = vcombine.high %v34_v17, %v34_v17  ;;  %v32_v42 = vld [vmem:[%s8436_s0 + $0x8] sm:$0x3f]  ;;  %s6842_s20 = smov 116   ;;  %vm704_vm3 = vcmask 1039360  }
   0x4   :  { %676 = vrot.lane.b32.xlu0 %v6893_v6, %s6835_s22  ;;  %v42_v16 = vcombine.high %v33_v13, %v33_v13  ;;  %v31_v25 = vld [vmem:[%s8436_s0] sm:$0x3f]  ;;  %v371_v49 = vcombine.high %v32_v42, %v32_v42  ;;  %v664_v53 = vld [vmem:[%s8436_s0 + $0x8] sm:$0xff]  ;;  %s6843_s21 = smov 109   ;;  %vm1400_vm4 = vcmask 1031168   ;;  %s6845_s23 = smov 108  }
   0x5   :  { %v6897_v10 = vsub.s32 %v45_v8, %v47_v7  ;;  %v264_v36 = vcombine.high %v31_v25, %v31_v25  ;;  %v6969_v39 = vld [vmem:[%s8434_s2 + $0x4] sm:$0xf]  ;;  %v1048_v58 = vcombine.high %v664_v53, %v664_v53  ;;  %v23_v63 = vld [vmem:[%s8437_s3] sm:$0xf]  ;;  %s6846_s26 = smov 92   ;;  %vm2087_vm5 = vcmask 900096  }
   0x6   :  { %v663_v40 = vld [vmem:[%s8436_s0] sm:$0xff]  ;;  %v6990_v44 = vcombine.low %v6969_v39, %v6969_v39  ;;  %v7066_v2 = vcombine.low %v23_v63, %v23_v63  ;;  %s6849_s8 = smov 100   ;;  %vm2774_vm6 = vcmask 891904   ;;  %s6850_s9 = smov 90   ;;  %vm3461_vm7 = vcmask 883712  }
   0x7   :  { %v6910_v14 = vrot.slane %v665_v4, %v6897_v10  ;;  %v6913_v15 = vrot.slane %v679_v9, %v6897_v10  ;;  %v6927_v21 = vrot.slane %v666_v12, %v6897_v10  ;;  %v49_v22 = vrot.slane %v33_v13, %v6897_v10  ;;  %s6851_s10 = smov 96  }
   0x8   :  { %v56_v23 = vrot.slane %v42_v16, %v6897_v10  ;;  %v161_v24 = vrot.slane %v34_v17, %v6897_v10  ;;  %v6940_v27 = vrot.slane %v807_v18, %v6897_v10  ;;  %v168_v28 = vrot.slane %v154_v19, %v6897_v10 }
   0x9   :  { %696 = vrot.lane.b32.xlu0 %v6910_v14, %s6838_s29  ;;  %700 = vrot.lane.b32.xlu1 %v6913_v15, %s6838_s29  ;;  %v6924_v20 = vcombine.high %v6910_v14, %v6910_v14  ;;  %v6937_v26 = vcombine.high %v6913_v15, %v6913_v15  ;;  %v6949_v29 = vcombine.high %v6927_v21, %v6927_v21  ;;  %v64_v31 = vsel %vm62_vm1, %v49_v22, 0 }
   0xa   :  { %v57_v30 = vcombine.high %v49_v22, %v49_v22  ;;  %v70_v32 = vsel %vm62_vm1, %v56_v23, 0  ;;  %v169_v33 = vcombine.high %v161_v24, %v161_v24  ;;  %v271_v34 = vrot.slane %v31_v25, %v6897_v10 }
   0xb   :  { %6474 = vmatpush3.bf16.msra.mxu1 %v70_v32  ;;  %v180_v35 = vsel %vm62_vm1, %v168_v28, 0  ;;  %v6963_v37 = vcombine.high %v6940_v27, %v6940_v27  ;;  %v174_v38 = vsel %vm62_vm1, %v161_v24, 0  ;;  %v278_v43 = vrot.slane %v264_v36, %v6897_v10 }
   0xc   :  { %6199 = vmatprep.subr.msk.bf16.mxu0 %vm62_vm1, %v57_v30  ;;  %6479 = vmatprep.subr.bf16.mxu1 %v6834_v5  ;;  %v279_v41 = vcombine.high %v271_v34, %v271_v34  ;;  %v6993_v45 = vrot.slane %v663_v40, %v6897_v10  ;;  %v929_v46 = vcombine.high %v663_v40, %v663_v40  ;;  %v281_v52 = vsel %vm62_vm1, %v271_v34, 0 }
   0xd   :  { %698 = vrot.lane.b32.xlu0 %v6924_v20, %s6838_s29  ;;  %824 = vrot.lane.b32.xlu1 %v6927_v21, %s6838_s29  ;;  %v378_v47 = vrot.slane %v32_v42, %v6897_v10  ;;  %v287_v48 = vsel %vm62_vm1, %v278_v43, 0  ;;  %v385_v55 = vrot.slane %v371_v49, %v6897_v10  ;;  %v7027_v56 = vrot.slane %v664_v53, %v6897_v10 }
   0xe   :  { %73 = vmatpush1.bf16.msra.mxu0 %v64_v31  ;;  %6476 = vmatmul.mubr.msk.bf16.vlgmr.msra.gmra.mrb[0].mxu1 %vm58_vm2, %v6885_v1  ;;  %v7007_v50 = vcombine.high %v6993_v45, %v6993_v45  ;;  %v7010_v51 = vrot.slane %v929_v46, %v6897_v10  ;;  %v7043_v60 = vrot.slane %v1048_v58, %v6897_v10  ;;  %vm4148_vm8 = vcmask 752640  }
   0xf   :  { %6202 = vmatprep.subr.msk.bf16.mxu0 %vm62_vm1, %v169_v33  ;;  %6480 = vmatpush3.bf16.msra.mxu1 %v180_v35  ;;  %v386_v54 = vcombine.high %v378_v47, %v378_v47  ;;  %v394_v59 = vsel %vm62_vm1, %v385_v55, 0  ;;  %v7047_v61 = vcombine.high %v7027_v56, %v7027_v56  ;;  %v388_v62 = vsel %vm62_vm1, %v378_v47, 0 }
  0x10   :  { %6481 = vmatprep.mubr.msk.bf16.mxu1 %vm6837_vm0, %v6834_v5  ;;  %6485 = vmatprep.subr.bf16.mxu1 %v6834_v5  ;;  %v7031_v57 = vcombine.high %v7010_v51, %v7010_v51  ;;  %v7064_v0 = vcombine.high %v7043_v60, %v7043_v60  ;;  %vm4835_vm9 = vcmask 744448   ;;  %vm5522_vm10 = vcmask 736256  }
  0x11   :  { %826 = vrot.lane.b32.xlu0 %v6949_v29, %s6838_s29  ;;  %702 = vrot.lane.b32.xlu1 %v6937_v26, %s6838_s29 }
  0x12   :  { %6200 = vmatmul.mubr.msk.bf16.vlgmr.msra.gmra.mrb[0].mxu0 %vm58_vm2, %v6885_v1 }
  0x13   :  { %183 = vmatpush1.bf16.msra.mxu0 %v174_v38  ;;  %214 = vmatprep.mubr.bf16.mxu0 %v6836_v11 }
  0x14   :  { %6205 = vmatprep.subr.msk.bf16.mxu0 %vm62_vm1, %v279_v41 }
  0x15   :  { %830 = vrot.lane.b32.xlu0 %v6963_v37, %s6838_s29  ;;  %828 = vrot.lane.b32.xlu1 %v6940_v27, %s6838_s29 }
  0x16   :  { %6482 = vmatmul.mubr.msk.bf16.vlgmr.msra.gmra.mrb[4].mxu1 %vm58_vm2, %v6969_v39 }
  0x17   :  { %6486 = vmatpush3.bf16.msra.mxu1 %v287_v48  ;;  %6487 = vmatprep.mubr.msk.bf16.mxu1 %vm6837_vm0, %v6834_v5 }
  0x18   :  { %6491 = vmatprep.subr.bf16.mxu1 %v6834_v5 }
  0x19   :  { %804 = vrot.lane.b32.xlu1 %v6990_v44, %s6835_s22  ;;  %946 = vrot.lane.b32.xlu0 %v6993_v45, %s6838_s29 }
  0x1a   :  { %6203 = vmatmul.mubr.msk.bf16.vlgmr.msra.gmra.mrb[4].mxu0 %vm58_vm2, %v6969_v39 }
  0x1b   :  { %290 = vmatpush1.bf16.msra.mxu0 %v281_v52  ;;  %321 = vmatprep.mubr.bf16.mxu0 %v6836_v11 }
  0x1c   :  { %6208 = vmatprep.subr.msk.bf16.mxu0 %vm62_vm1, %v386_v54 }
  0x1d   :  { %948 = vrot.lane.b32.xlu1 %v7007_v50, %s6838_s29  ;;  %950 = vrot.lane.b32.xlu0 %v7010_v51, %s6838_s29 }
  0x1e   :  { %6488 = vmatmul.mubr.msk.bf16.vlgmr.msra.gmra.mrb[8].mxu1 %vm58_vm2, %v6885_v1 }
  0x1f   :  { %6492 = vmatpush3.bf16.msra.mxu1 %v394_v59  ;;  %6493 = vmatprep.mubr.msk.bf16.mxu1 %vm6837_vm0, %v6834_v5 }
  0x20   :  { %6497 = vmatprep.subr.bf16.mxu1 %v6834_v5 }
  0x21   :  { %1065 = vrot.lane.b32.xlu0 %v7027_v56, %s6838_s29  ;;  %952 = vrot.lane.b32.xlu1 %v7031_v57, %s6838_s29 }
  0x22   :  { %6206 = vmatmul.mubr.msk.bf16.vlgmr.msra.gmra.mrb[8].mxu0 %vm58_vm2, %v6885_v1  ;;  %v24_v1 = vld [vmem:[%s8437_s3 + $0x4] sm:$0xf]  ;;  %s6839_s3 = smov 126  }
  0x23   :  { %397 = vmatpush1.bf16.msra.mxu0 %v388_v62  ;;  %428 = vmatprep.mubr.bf16.mxu0 %v6836_v11  ;;  %v7079_v3 = vcombine.low %v24_v1, %v24_v1 }
  0x24   :  { %6211 = vmatprep.subr.msk.bf16.mxu0 %vm62_vm1, %v279_v41 }
  0x25   :  { %1069 = vrot.lane.b32.xlu0 %v7043_v60, %s6838_s29  ;;  %1067 = vrot.lane.b32.xlu1 %v7047_v61, %s6838_s29 }
  0x26   :  { %6494 = vmatmul.mubr.msk.bf16.vlgmr.msra.gmra.mrb[12].mxu1 %vm58_vm2, %v6969_v39 }
  0x27   :  { %6498 = vmatpush3.bf16.msra.mxu1 %v287_v48  ;;  %6499 = vmatprep.mubr.msk.bf16.mxu1 %vm6837_vm0, %v6834_v5 }
  0x28   :  { %6503 = vmatprep.subr.bf16.mxu1 %v6834_v5 }
  0x29   :  { %1071 = vrot.lane.b32.xlu1 %v7064_v0, %s6838_s29  ;;  %1169 = vrot.lane.b32.xlu0 %v7066_v2, %s6835_s22 }
  0x2a   :  { %6209 = vmatmul.mubr.msk.bf16.vlgmr.msra.gmra.mrb[12].mxu0 %vm58_vm2, %v6969_v39 }
  0x2b   :  { %481 = vmatpush1.bf16.msra.mxu0 %v281_v52  ;;  %512 = vmatprep.mubr.bf16.mxu0 %v6836_v11 }
  0x2c   :  { %6214 = vmatprep.subr.msk.bf16.mxu0 %vm62_vm1, %v386_v54 }
  0x2d   :  { %1392 = vrot.lane.b32.xlu0 %v6910_v14, %s6839_s3  ;;  %1258 = vrot.lane.b32.xlu1 %v7079_v3, %s6835_s22  ;;  %s6844_s22 = smov 112  }
  0x2e   :  { %6500 = vmatmul.mubr.msk.bf16.vlgmr.msra.gmra.mrb[16].mxu1 %vm58_vm2, %v23_v63 }
  0x2f   :  { %6504 = vmatpush3.bf16.msra.mxu1 %v394_v59  ;;  %6505 = vmatprep.mubr.msk.bf16.mxu1 %vm6837_vm0, %v6834_v5 }
  0x30   :  { %6509 = vmatprep.subr.bf16.mxu1 %v6834_v5 }
  0x31   :  { %1396 = vrot.lane.b32.xlu0 %v6913_v15, %s6839_s3  ;;  %1394 = vrot.lane.b32.xlu1 %v6924_v20, %s6839_s3 }
  0x32   :  { %6212 = vmatmul.mubr.msk.bf16.vlgmr.msra.gmra.mrb[16].mxu0 %vm58_vm2, %v23_v63 }
  0x33   :  { %565 = vmatpush1.bf16.msra.mxu0 %v388_v62  ;;  %596 = vmatprep.mubr.bf16.mxu0 %v6836_v11 }
  0x35   :  { %1372 = vrot.lane.b32.xlu0 %v6893_v6, %s6840_s18  ;;  %1398 = vrot.lane.b32.xlu1 %v6937_v26, %s6839_s3 }
  0x36   :  { %6506 = vmatmul.mubr.msk.bf16.vlgmr.msra.gmra.mrb[20].mxu1 %vm58_vm2, %v24_v1 }
  0x37   :  { %6511 = vmatprep.mubr.msk.bf16.mxu1 %vm6837_vm0, %v6834_v5 }
  0x39   :  { %1519 = vrot.lane.b32.xlu0 %v6949_v29, %s6839_s3  ;;  %1517 = vrot.lane.b32.xlu1 %v6927_v21, %s6839_s3 }
  0x3a   :  { %6215 = vmatmul.mubr.msk.bf16.vlgmr.msra.gmra.mrb[20].mxu0 %vm58_vm2, %v24_v1 }
  0x3b   :  { %752 = vmatprep.mubr.bf16.mxu0 %v6836_v11 }
  0x3d   :  { %1523 = vrot.lane.b32.xlu0 %v6963_v37, %s6839_s3  ;;  %1521 = vrot.lane.b32.xlu1 %v6940_v27, %s6839_s3 }
  0x41   :  { %1639 = vrot.lane.b32.xlu0 %v6993_v45, %s6839_s3  ;;  %1497 = vrot.lane.b32.xlu1 %v6990_v44, %s6840_s18 }
  0x45   :  { %1643 = vrot.lane.b32.xlu0 %v7010_v51, %s6839_s3  ;;  %1641 = vrot.lane.b32.xlu1 %v7007_v50, %s6839_s3 }
  0x49   :  { %1758 = vrot.lane.b32.xlu0 %v7027_v56, %s6839_s3  ;;  %1645 = vrot.lane.b32.xlu1 %v7031_v57, %s6839_s3 }
  0x4d   :  { %1762 = vrot.lane.b32.xlu0 %v7043_v60, %s6839_s3  ;;  %1760 = vrot.lane.b32.xlu1 %v7047_v61, %s6839_s3 }
  0x51   :  { %1764 = vrot.lane.b32.xlu1 %v7064_v0, %s6839_s3  ;;  %1859 = vrot.lane.b32.xlu0 %v7066_v2, %s6840_s18 }
  0x55   :  { %2079 = vrot.lane.b32.xlu0 %v6910_v14, %s6841_s19  ;;  %1945 = vrot.lane.b32.xlu1 %v7079_v3, %s6840_s18 }
  0x59   :  { %2083 = vrot.lane.b32.xlu0 %v6913_v15, %s6841_s19  ;;  %2081 = vrot.lane.b32.xlu1 %v6924_v20, %s6841_s19 }
  0x5d   :  { %2059 = vrot.lane.b32.xlu0 %v6893_v6, %s6842_s20  ;;  %2085 = vrot.lane.b32.xlu1 %v6937_v26, %s6841_s19 }
  0x61   :  { %2206 = vrot.lane.b32.xlu0 %v6949_v29, %s6841_s19  ;;  %2204 = vrot.lane.b32.xlu1 %v6927_v21, %s6841_s19 }
  0x65   :  { %2210 = vrot.lane.b32.xlu0 %v6963_v37, %s6841_s19  ;;  %2208 = vrot.lane.b32.xlu1 %v6940_v27, %s6841_s19 }
  0x69   :  { %2326 = vrot.lane.b32.xlu0 %v6993_v45, %s6841_s19  ;;  %2184 = vrot.lane.b32.xlu1 %v6990_v44, %s6842_s20 }
  0x6d   :  { %2330 = vrot.lane.b32.xlu0 %v7010_v51, %s6841_s19  ;;  %2328 = vrot.lane.b32.xlu1 %v7007_v50, %s6841_s19 }
  0x71   :  { %2445 = vrot.lane.b32.xlu0 %v7027_v56, %s6841_s19  ;;  %2332 = vrot.lane.b32.xlu1 %v7031_v57, %s6841_s19 }
  0x75   :  { %2449 = vrot.lane.b32.xlu0 %v7043_v60, %s6841_s19  ;;  %2447 = vrot.lane.b32.xlu1 %v7047_v61, %s6841_s19 }
  0x76   :  { %v7156_v4 = vpop.permute.xlu0 %676 }
  0x79   :  { %2451 = vrot.lane.b32.xlu1 %v7064_v0, %s6841_s19  ;;  %2546 = vrot.lane.b32.xlu0 %v7066_v2, %s6842_s20 }
  0x7b   :  { %v697_v7 = vpop.permute.xlu0 %696  ;;  %v701_v8 = vpop.permute.xlu1 %700 }
  0x7d   :  { %2766 = vrot.lane.b32.xlu0 %v6910_v14, %s6843_s21  ;;  %2632 = vrot.lane.b32.xlu1 %v7079_v3, %s6842_s20 }
  0x7f   :  { %v699_v9 = vpop.permute.xlu0 %698  ;;  %v825_v12 = vpop.permute.xlu1 %824 }
  0x80   :  { %v705_v13 = vsel %vm704_vm3, %v697_v7, %v699_v9  ;;  %v706_v16 = vsel %vm704_vm3, %v699_v9, %v701_v8 }
  0x81   :  { %6218 = vmatprep.subr.msk.bf16.mxu0 %vm62_vm1, %v706_v16  ;;  %v712_v17 = vsel %vm62_vm1, %v705_v13, 0  ;;  %2770 = vrot.lane.b32.xlu0 %v6913_v15, %s6843_s21 }
  0x82   :  { %721 = vmatpush1.bf16.msra.mxu0 %v712_v17  ;;  %2768 = vrot.lane.b32.xlu1 %v6924_v20, %s6843_s21 }
  0x83   :  { %v827_v18 = vpop.permute.xlu0 %826  ;;  %v703_v19 = vpop.permute.xlu1 %702 }
  0x84   :  { %v707_v22 = vsel %vm704_vm3, %v701_v8, %v703_v19  ;;  %v832_v24 = vsel %vm704_vm3, %v825_v12, %v827_v18 }
  0x85   :  { %v718_v23 = vsel %vm62_vm1, %v707_v22, 0  ;;  %6219 = vmatmul.mubr.msk.bf16.vlgmr.msra.gmra.mrb[24].mxu0 %vm58_vm2, %v7156_v4  ;;  %2746 = vrot.lane.b32.xlu0 %v6893_v6, %s6844_s22  ;;  %v839_v32 = vsel %vm62_vm1, %v832_v24, 0 }
  0x86   :  { %6510 = vmatpush3.bf16.msra.mxu1 %v718_v23  ;;  %879 = vmatprep.mubr.bf16.mxu0 %v6836_v11 }
  0x87   :  { %v831_v25 = vpop.permute.xlu0 %830  ;;  %v829_v28 = vpop.permute.xlu1 %828  ;;  %6515 = vmatprep.subr.bf16.mxu1 %v6834_v5  ;;  %2772 = vrot.lane.b32.xlu1 %v6937_v26, %s6843_s21 }
  0x88   :  { %v834_v30 = vsel %vm704_vm3, %v829_v28, %v831_v25  ;;  %v833_v31 = vsel %vm704_vm3, %v827_v18, %v829_v28 }
  0x89   :  { %6512 = vmatmul.mubr.msk.bf16.vlgmr.msra.gmra.mrb[24].mxu1 %vm58_vm2, %v7156_v4  ;;  %6222 = vmatprep.subr.msk.bf16.mxu0 %vm62_vm1, %v833_v31  ;;  %v845_v33 = vsel %vm62_vm1, %v834_v30, 0 }
  0x8a   :  { %848 = vmatpush1.bf16.msra.mxu0 %v839_v32  ;;  %6516 = vmatpush3.bf16.msra.mxu1 %v845_v33 }
  0x8b   :  { %v805_v34 = vpop.permute.xlu1 %804  ;;  %v947_v35 = vpop.permute.xlu0 %946  ;;  %6517 = vmatprep.mubr.msk.bf16.mxu1 %vm6837_vm0, %v6834_v5  ;;  %6521 = vmatprep.subr.bf16.mxu1 %v6834_v5 }
  0x8c   :  { %2893 = vrot.lane.b32.xlu0 %v6949_v29, %s6843_s21  ;;  %2891 = vrot.lane.b32.xlu1 %v6927_v21, %s6843_s21 }
  0x8d   :  { %6223 = vmatmul.mubr.msk.bf16.vlgmr.msra.gmra.mrb[28].mxu0 %vm58_vm2, %v805_v34 }
  0x8e   :  { %998 = vmatprep.mubr.bf16.mxu0 %v6836_v11 }
  0x8f   :  { %v949_v36 = vpop.permute.xlu1 %948  ;;  %v951_v38 = vpop.permute.xlu0 %950 }
  0x90   :  { %v954_v39 = vsel %vm704_vm3, %v947_v35, %v949_v36  ;;  %v955_v40 = vsel %vm704_vm3, %v949_v36, %v951_v38  ;;  %2897 = vrot.lane.b32.xlu0 %v6963_v37, %s6843_s21  ;;  %2895 = vrot.lane.b32.xlu1 %v6940_v27, %s6843_s21 }
  0x91   :  { %6518 = vmatmul.mubr.msk.bf16.vlgmr.msra.gmra.mrb[28].mxu1 %vm58_vm2, %v805_v34  ;;  %6225 = vmatprep.subr.msk.bf16.mxu0 %vm62_vm1, %v955_v40  ;;  %v958_v41 = vsel %vm62_vm1, %v954_v39, 0 }
  0x92   :  { %967 = vmatpush1.bf16.msra.mxu0 %v958_v41  ;;  %6523 = vmatprep.mubr.msk.bf16.mxu1 %vm6837_vm0, %v6834_v5 }
  0x93   :  { %v1066_v42 = vpop.permute.xlu0 %1065  ;;  %v953_v43 = vpop.permute.xlu1 %952 }
  0x94   :  { %v956_v46 = vsel %vm704_vm3, %v951_v38, %v953_v43  ;;  %3013 = vrot.lane.b32.xlu0 %v6993_v45, %s6843_s21  ;;  %2871 = vrot.lane.b32.xlu1 %v6990_v44, %s6844_s22 }
  0x95   :  { %v964_v47 = vsel %vm62_vm1, %v956_v46, 0  ;;  %6226 = vmatmul.mubr.msk.bf16.vlgmr.msra.gmra.mrb[32].mxu0 %vm58_vm2, %v7156_v4 }
  0x96   :  { %6522 = vmatpush3.bf16.msra.mxu1 %v964_v47  ;;  %1117 = vmatprep.mubr.bf16.mxu0 %v6836_v11 }
  0x97   :  { %v1070_v48 = vpop.permute.xlu0 %1069  ;;  %v1068_v49 = vpop.permute.xlu1 %1067  ;;  %6527 = vmatprep.subr.bf16.mxu1 %v6834_v5 }
  0x98   :  { %v1073_v52 = vsel %vm704_vm3, %v1066_v42, %v1068_v49  ;;  %v1074_v53 = vsel %vm704_vm3, %v1068_v49, %v1070_v48  ;;  %3017 = vrot.lane.b32.xlu0 %v7010_v51, %s6843_s21  ;;  %3015 = vrot.lane.b32.xlu1 %v7007_v50, %s6843_s21 }
  0x99   :  { %6524 = vmatmul.mubr.msk.bf16.vlgmr.msra.gmra.mrb[32].mxu1 %vm58_vm2, %v7156_v4  ;;  %6228 = vmatprep.subr.msk.bf16.mxu0 %vm62_vm1, %v1074_v53  ;;  %v1077_v54 = vsel %vm62_vm1, %v1073_v52, 0 }
  0x9a   :  { %1086 = vmatpush1.bf16.msra.mxu0 %v1077_v54  ;;  %6529 = vmatprep.mubr.msk.bf16.mxu1 %vm6837_vm0, %v6834_v5 }
  0x9b   :  { %v1072_v55 = vpop.permute.xlu1 %1071  ;;  %6232 = vmatprep.subr.msk.bf16.mxu0 %vm62_vm1, %v955_v40  ;;  %v1170_v58 = vpop.permute.xlu0 %1169 }
  0x9c   :  { %v1075_v59 = vsel %vm704_vm3, %v1070_v48, %v1072_v55  ;;  %3132 = vrot.lane.b32.xlu0 %v7027_v56, %s6843_s21  ;;  %3019 = vrot.lane.b32.xlu1 %v7031_v57, %s6843_s21 }
  0x9d   :  { %v1083_v62 = vsel %vm62_vm1, %v1075_v59, 0  ;;  %6229 = vmatmul.mubr.msk.bf16.vlgmr.msra.gmra.mrb[36].mxu0 %vm58_vm2, %v805_v34 }
  0x9e   :  { %6528 = vmatpush3.bf16.msra.mxu1 %v1083_v62  ;;  %1175 = vmatpush1.bf16.msra.mxu0 %v958_v41 }
  0x9f   :  { %6236 = vmatprep.subr.msk.bf16.mxu0 %vm62_vm1, %v1074_v53  ;;  %6533 = vmatprep.subr.bf16.mxu1 %v6834_v5  ;;  %v1393_v63 = vpop.permute.xlu0 %1392  ;;  %v1259_v1 = vpop.permute.xlu1 %1258  ;;  %v4113_v53 = vld [vmem:[%s8435_s1 + $0x8] sm:$0xff] }
  0xa0   :  { %1206 = vmatprep.mubr.bf16.mxu0 %v6836_v11  ;;  %3136 = vrot.lane.b32.xlu0 %v7043_v60, %s6843_s21  ;;  %v7396_v59 = vrot.slane %v4113_v53, %v6897_v10 }
  0xa1   :  { %6530 = vmatmul.mubr.msk.bf16.vlgmr.msra.gmra.mrb[36].mxu1 %vm58_vm2, %v805_v34  ;;  %3134 = vrot.lane.b32.xlu1 %v7047_v61, %s6843_s21 }
  0xa2   :  { %6534 = vmatpush3.bf16.msra.mxu1 %v964_v47  ;;  %6535 = vmatprep.mubr.msk.bf16.mxu1 %vm6837_vm0, %v6834_v5 }
  0xa3   :  { %v1397_v4 = vpop.permute.xlu0 %1396  ;;  %v1395_v7 = vpop.permute.xlu1 %1394  ;;  %6539 = vmatprep.subr.bf16.mxu1 %v6834_v5 }
  0xa4   :  { %v1402_v8 = vsel %vm1400_vm4, %v1395_v7, %v1397_v4  ;;  %3233 = vrot.lane.b32.xlu0 %v7066_v2, %s6844_s22  ;;  %v1401_v13 = vsel %vm1400_vm4, %v1393_v63, %v1395_v7 }
  0xa5   :  { %6233 = vmatmul.mubr.msk.bf16.vlgmr.msra.gmra.mrb[40].mxu0 %vm58_vm2, %v1170_v58  ;;  %3138 = vrot.lane.b32.xlu1 %v7064_v0, %s6843_s21  ;;  %v1408_v16 = vsel %vm62_vm1, %v1401_v13, 0 }
  0xa6   :  { %1264 = vmatpush1.bf16.msra.mxu0 %v1077_v54  ;;  %1295 = vmatprep.mubr.bf16.mxu0 %v6836_v11 }
  0xa7   :  { %v7257_v9 = vpop.permute.xlu0 %1372  ;;  %v1399_v12 = vpop.permute.xlu1 %1398  ;;  %6239 = vmatprep.subr.msk.bf16.mxu0 %vm62_vm1, %v1402_v8  ;;  %v7412_v8 = vcombine.high %v7396_v59, %v7396_v59 }
  0xa8   :  { %3453 = vrot.lane.b32.xlu0 %v6910_v14, %s6845_s23  ;;  %v1403_v19 = vsel %vm1400_vm4, %v1397_v4, %v1399_v12 }
  0xa9   :  { %6536 = vmatmul.mubr.msk.bf16.vlgmr.msra.gmra.mrb[40].mxu1 %vm58_vm2, %v1170_v58  ;;  %3319 = vrot.lane.b32.xlu1 %v7079_v3, %s6844_s22  ;;  %v1414_v14 = vsel %vm62_vm1, %v1403_v19, 0 }
  0xaa   :  { %6540 = vmatpush3.bf16.msra.mxu1 %v1083_v62  ;;  %6541 = vmatprep.mubr.msk.bf16.mxu1 %vm6837_vm0, %v6834_v5  ;;  %v4248_v62 = vcombine.high %v4113_v53, %v4113_v53 }
  0xab   :  { %v1520_v17 = vpop.permute.xlu0 %1519  ;;  %v1518_v18 = vpop.permute.xlu1 %1517  ;;  %6545 = vmatprep.subr.bf16.mxu1 %v6834_v5 }
  0xac   :  { %3457 = vrot.lane.b32.xlu0 %v6913_v15, %s6845_s23  ;;  %v1525_v24 = vsel %vm1400_vm4, %v1518_v18, %v1520_v17 }
  0xad   :  { %6237 = vmatmul.mubr.msk.bf16.vlgmr.msra.gmra.mrb[44].mxu0 %vm58_vm2, %v1259_v1  ;;  %3455 = vrot.lane.b32.xlu1 %v6924_v20, %s6845_s23  ;;  %v1532_v15 = vsel %vm62_vm1, %v1525_v24, 0 }
  0xae   :  { %1417 = vmatpush1.bf16.msra.mxu0 %v1408_v16  ;;  %1448 = vmatprep.mubr.bf16.mxu0 %v6836_v11 }
  0xaf   :  { %v1524_v22 = vpop.permute.xlu0 %1523  ;;  %v1522_v23 = vpop.permute.xlu1 %1521 }
  0xb0   :  { %v1526_v25 = vsel %vm1400_vm4, %v1520_v17, %v1522_v23  ;;  %3433 = vrot.lane.b32.xlu0 %v6893_v6, %s6845_s23  ;;  %v1527_v30 = vsel %vm1400_vm4, %v1522_v23, %v1524_v22 }
  0xb1   :  { %6542 = vmatmul.mubr.msk.bf16.vlgmr.msra.gmra.mrb[44].mxu1 %vm58_vm2, %v1259_v1  ;;  %6242 = vmatprep.subr.msk.bf16.mxu0 %vm62_vm1, %v1526_v25  ;;  %v1538_v33 = vsel %vm62_vm1, %v1527_v30, 0 }
  0xb2   :  { %6546 = vmatpush3.bf16.msra.mxu1 %v1414_v14  ;;  %6547 = vmatprep.mubr.msk.bf16.mxu1 %vm6837_vm0, %v6834_v5  ;;  %v4110_v14 = vld [vmem:[%s8436_s0] sm:$0xff] }
  0xb3   :  { %v1640_v20 = vpop.permute.xlu0 %1639  ;;  %v7287_v28 = vpop.permute.xlu1 %1497  ;;  %6551 = vmatprep.subr.bf16.mxu1 %v6834_v5  ;;  %3459 = vrot.lane.b32.xlu1 %v6937_v26, %s6845_s23 }
  0xb4   :  { %3580 = vrot.lane.b32.xlu0 %v6949_v29, %s6845_s23 }
  0xb5   :  { %6240 = vmatmul.mubr.msk.bf16.vlgmr.msra.gmra.mrb[48].mxu0 %vm58_vm2, %v7257_v9 }
  0xb6   :  { %1541 = vmatpush1.bf16.msra.mxu0 %v1532_v15  ;;  %1572 = vmatprep.mubr.bf16.mxu0 %v6836_v11  ;;  %v7448_v15 = vrot.slane %v4110_v14, %v6897_v10 }
  0xb7   :  { %v1644_v31 = vpop.permute.xlu0 %1643  ;;  %v1642_v32 = vpop.permute.xlu1 %1641  ;;  %3578 = vrot.lane.b32.xlu1 %v6927_v21, %s6845_s23 }
  0xb8   :  { %v1647_v26 = vsel %vm1400_vm4, %v1640_v20, %v1642_v32  ;;  %v1648_v34 = vsel %vm1400_vm4, %v1642_v32, %v1644_v31  ;;  %3584 = vrot.lane.b32.xlu0 %v6963_v37, %s6845_s23  ;;  %v4370_v20 = vcombine.high %v4110_v14, %v4110_v14 }
  0xb9   :  { %6548 = vmatmul.mubr.msk.bf16.vlgmr.msra.gmra.mrb[48].mxu1 %vm58_vm2, %v7257_v9  ;;  %6245 = vmatprep.subr.msk.bf16.mxu0 %vm62_vm1, %v1648_v34  ;;  %v1651_v21 = vsel %vm62_vm1, %v1647_v26, 0 }
  0xba   :  { %6552 = vmatpush3.bf16.msra.mxu1 %v1538_v33  ;;  %6553 = vmatprep.mubr.msk.bf16.mxu1 %vm6837_vm0, %v6834_v5  ;;  %v7465_v26 = vrot.slane %v4370_v20, %v6897_v10 }
  0xbb   :  { %v1759_v29 = vpop.permute.xlu0 %1758  ;;  %v1646_v35 = vpop.permute.xlu1 %1645  ;;  %6557 = vmatprep.subr.bf16.mxu1 %v6834_v5  ;;  %3582 = vrot.lane.b32.xlu1 %v6940_v27, %s6845_s23 }
  0xbc   :  { %v1649_v37 = vsel %vm1400_vm4, %v1644_v31, %v1646_v35  ;;  %3700 = vrot.lane.b32.xlu0 %v6993_v45, %s6845_s23 }
  0xbd   :  { %6243 = vmatmul.mubr.msk.bf16.vlgmr.msra.gmra.mrb[52].mxu0 %vm58_vm2, %v7287_v28  ;;  %v1657_v36 = vsel %vm62_vm1, %v1649_v37, 0 }
  0xbe   :  { %1660 = vmatpush1.bf16.msra.mxu0 %v1651_v21  ;;  %1691 = vmatprep.mubr.bf16.mxu0 %v6836_v11 }
  0xbf   :  { %v1763_v38 = vpop.permute.xlu0 %1762  ;;  %v1761_v39 = vpop.permute.xlu1 %1760  ;;  %3558 = vrot.lane.b32.xlu1 %v6990_v44, %s6845_s23 }
  0xc0   :  { %v1766_v27 = vsel %vm1400_vm4, %v1759_v29, %v1761_v39  ;;  %v1767_v40 = vsel %vm1400_vm4, %v1761_v39, %v1763_v38  ;;  %3704 = vrot.lane.b32.xlu0 %v7010_v51, %s6845_s23  ;;  %v7484_v39 = vcombine.high %v7448_v15, %v7448_v15 }
  0xc1   :  { %6554 = vmatmul.mubr.msk.bf16.vlgmr.msra.gmra.mrb[52].mxu1 %vm58_vm2, %v7287_v28  ;;  %6248 = vmatprep.subr.msk.bf16.mxu0 %vm62_vm1, %v1767_v40  ;;  %v1770_v45 = vsel %vm62_vm1, %v1766_v27, 0 }
  0xc2   :  { %6558 = vmatpush3.bf16.msra.mxu1 %v1657_v36  ;;  %6559 = vmatprep.mubr.msk.bf16.mxu1 %vm6837_vm0, %v6834_v5 }
  0xc3   :  { %v1765_v41 = vpop.permute.xlu1 %1764  ;;  %6563 = vmatprep.subr.bf16.mxu1 %v6834_v5  ;;  %v1860_v42 = vpop.permute.xlu0 %1859  ;;  %3702 = vrot.lane.b32.xlu1 %v7007_v50, %s6845_s23  ;;  %v4112_v50 = vld [vmem:[%s8435_s1] sm:$0xff]  ;;  %s6847_s1 = smov 104  }
  0xc4   :  { %v1768_v51 = vsel %vm1400_vm4, %v1763_v38, %v1765_v41  ;;  %3819 = vrot.lane.b32.xlu0 %v7027_v56, %s6845_s23 }
  0xc5   :  { %6246 = vmatmul.mubr.msk.bf16.vlgmr.msra.gmra.mrb[56].mxu0 %vm58_vm2, %v7257_v9  ;;  %v1776_v43 = vsel %vm62_vm1, %v1768_v51, 0 }
  0xc6   :  { %1779 = vmatpush1.bf16.msra.mxu0 %v1770_v45  ;;  %1810 = vmatprep.mubr.bf16.mxu0 %v6836_v11 }
  0xc7   :  { %6251 = vmatprep.subr.msk.bf16.mxu0 %vm62_vm1, %v1648_v34  ;;  %v2080_v46 = vpop.permute.xlu0 %2079  ;;  %v7344_v47 = vpop.permute.xlu1 %1945  ;;  %3706 = vrot.lane.b32.xlu1 %v7031_v57, %s6845_s23  ;;  %v7363_v57 = vrot.slane %v4112_v50, %v6897_v10  ;;  %v4111_v34 = vld [vmem:[%s8436_s0 + $0x8] sm:$0xff]  ;;  %s6848_s0 = smov 91  }
  0xc8   :  { %3823 = vrot.lane.b32.xlu0 %v7043_v60, %s6845_s23  ;;  %v4123_v60 = vcombine.high %v4112_v50, %v4112_v50 }
  0xc9   :  { %6560 = vmatmul.mubr.msk.bf16.vlgmr.msra.gmra.mrb[56].mxu1 %vm58_vm2, %v7257_v9  ;;  %v7390_v55 = vcombine.high %v7363_v57, %v7363_v57  ;;  %v7415_v9 = vrot.slane %v4248_v62, %v6897_v10 }
  0xca   :  { %6564 = vmatpush3.bf16.msra.mxu1 %v1776_v43  ;;  %6565 = vmatprep.mubr.msk.bf16.mxu1 %vm6837_vm0, %v6834_v5 }
  0xcb   :  { %6569 = vmatprep.subr.bf16.mxu1 %v6834_v5  ;;  %v2084_v56 = vpop.permute.xlu0 %2083  ;;  %v2082_v48 = vpop.permute.xlu1 %2081  ;;  %3821 = vrot.lane.b32.xlu1 %v7047_v61, %s6845_s23  ;;  %v7376_v61 = vrot.slane %v4123_v60, %v6897_v10  ;;  %v7432_v19 = vcombine.high %v7415_v9, %v7415_v9 }
  0xcc   :  { %3920 = vrot.lane.b32.xlu0 %v7066_v2, %s6845_s23  ;;  %v2089_v58 = vsel %vm2087_vm5, %v2082_v48, %v2084_v56  ;;  %v2088_v7 = vsel %vm2087_vm5, %v2080_v46, %v2082_v48  ;;  %v7508_v48 = vcombine.high %v7465_v26, %v7465_v26 }
  0xcd   :  { %6249 = vmatmul.mubr.msk.bf16.vlgmr.msra.gmra.mrb[60].mxu0 %vm58_vm2, %v7287_v28  ;;  %v7405_v4 = vcombine.high %v7376_v61, %v7376_v61  ;;  %v2095_v12 = vsel %vm62_vm1, %v2088_v7, 0 }
  0xce   :  { %1865 = vmatpush1.bf16.msra.mxu0 %v1651_v21  ;;  %1896 = vmatprep.mubr.bf16.mxu0 %v6836_v11 }
  0xcf   :  { %6254 = vmatprep.subr.msk.bf16.mxu0 %vm62_vm1, %v1767_v40  ;;  %v7369_v49 = vpop.permute.xlu0 %2059  ;;  %v2086_v52 = vpop.permute.xlu1 %2085  ;;  %3825 = vrot.lane.b32.xlu1 %v7064_v0, %s6845_s23  ;;  %v7490_v40 = vrot.slane %v4111_v34, %v6897_v10 }
  0xd0   :  { %4140 = vrot.lane.b32.xlu0 %v7363_v57, %s6846_s26  ;;  %v2090_v17 = vsel %vm2087_vm5, %v2084_v56, %v2086_v52 }
  0xd1   :  { %6566 = vmatmul.mubr.msk.bf16.vlgmr.msra.gmra.mrb[60].mxu1 %vm58_vm2, %v7287_v28  ;;  %v2101_v22 = vsel %vm62_vm1, %v2090_v17, 0 }
  0xd2   :  { %6570 = vmatpush3.bf16.msra.mxu1 %v1657_v36  ;;  %6571 = vmatprep.mubr.msk.bf16.mxu1 %vm6837_vm0, %v6834_v5 }
  0xd3   :  { %6575 = vmatprep.subr.bf16.mxu1 %v6834_v5  ;;  %v2207_v0 = vpop.permute.xlu0 %2206  ;;  %v2205_v54 = vpop.permute.xlu1 %2204  ;;  %4006 = vrot.lane.b32.xlu1 %v7079_v3, %s6845_s23 }
  0xd4   :  { %4144 = vrot.lane.b32.xlu0 %v7376_v61, %s6846_s26  ;;  %v2212_v25 = vsel %vm2087_vm5, %v2205_v54, %v2207_v0 }
  0xd5   :  { %6252 = vmatmul.mubr.msk.bf16.vlgmr.msra.gmra.mrb[64].mxu0 %vm58_vm2, %v1860_v42  ;;  %v2219_v28 = vsel %vm62_vm1, %v2212_v25, 0 }
  0xd6   :  { %1951 = vmatpush1.bf16.msra.mxu0 %v1770_v45  ;;  %1982 = vmatprep.mubr.bf16.mxu0 %v6836_v11  ;;  %v4489_v45 = vcombine.high %v4111_v34, %v4111_v34 }
  0xd7   :  { %6257 = vmatprep.subr.msk.bf16.mxu0 %vm62_vm1, %v2089_v58  ;;  %v2211_v63 = vpop.permute.xlu0 %2210  ;;  %v2209_v1 = vpop.permute.xlu1 %2208  ;;  %4142 = vrot.lane.b32.xlu1 %v7390_v55, %s6846_s26 }
  0xd8   :  { %4120 = vrot.lane.b32.xlu0 %v6893_v6, %s6847_s1  ;;  %v2213_v18 = vsel %vm2087_vm5, %v2207_v0, %v2209_v1  ;;  %v2214_v32 = vsel %vm2087_vm5, %v2209_v1, %v2211_v63  ;;  %v7517_v53 = vrot.slane %v4489_v45, %v6897_v10  ;;  %v7538_v1 = vcombine.high %v7490_v40, %v7490_v40 }
  0xd9   :  { %6572 = vmatmul.mubr.msk.bf16.vlgmr.msra.gmra.mrb[64].mxu1 %vm58_vm2, %v1860_v42  ;;  %v2225_v37 = vsel %vm62_vm1, %v2214_v32, 0 }
  0xda   :  { %6576 = vmatpush3.bf16.msra.mxu1 %v1776_v43  ;;  %6577 = vmatprep.mubr.msk.bf16.mxu1 %vm6837_vm0, %v6834_v5 }
  0xdb   :  { %6581 = vmatprep.subr.bf16.mxu1 %v6834_v5  ;;  %v2327_v13 = vpop.permute.xlu0 %2326  ;;  %v7422_v16 = vpop.permute.xlu1 %2184  ;;  %4146 = vrot.lane.b32.xlu1 %v7405_v4, %s6846_s26 }
  0xdc   :  { %4267 = vrot.lane.b32.xlu0 %v7412_v8, %s6846_s26 }
  0xdd   :  { %6255 = vmatmul.mubr.msk.bf16.vlgmr.msra.gmra.mrb[68].mxu0 %vm58_vm2, %v7344_v47 }
  0xde   :  { %2104 = vmatpush1.bf16.msra.mxu0 %v2095_v12  ;;  %2135 = vmatprep.mubr.bf16.mxu0 %v6836_v11 }
  0xdf   :  { %6260 = vmatprep.subr.msk.bf16.mxu0 %vm62_vm1, %v2213_v18  ;;  %v2331_v23 = vpop.permute.xlu0 %2330  ;;  %v2329_v24 = vpop.permute.xlu1 %2328  ;;  %4265 = vrot.lane.b32.xlu1 %v7396_v59, %s6846_s26 }
  0xe0   :  { %4271 = vrot.lane.b32.xlu0 %v7432_v19, %s6846_s26  ;;  %v7460_v33 = vsel %vm2087_vm5, %v2329_v24, %v2331_v23  ;;  %v2334_v27 = vsel %vm2087_vm5, %v2327_v13, %v2329_v24  ;;  %v7558_v24 = vcombine.high %v7517_v53, %v7517_v53 }
  0xe1   :  { %6578 = vmatmul.mubr.msk.bf16.vlgmr.msra.gmra.mrb[68].mxu1 %vm58_vm2, %v7344_v47  ;;  %v7472_v29 = vpop.f32.mrb[0].mxu1  ;;  %v7499_v47 = vsel %vm62_vm1, %v2334_v27, 0 }
  0xe2   :  { %6582 = vmatpush3.bf16.msra.mxu1 %v2101_v22  ;;  %6583 = vmatprep.mubr.msk.bf16.mxu1 %vm6837_vm0, %v6834_v5  ;;  %v6477_v21 = vpop.f32.mrb[1].mxu1 }
  0xe3   :  { %6587 = vmatprep.subr.bf16.mxu1 %v6834_v5  ;;  %v2446_v30 = vpop.permute.xlu0 %2445  ;;  %v2333_v31 = vpop.permute.xlu1 %2332  ;;  %4269 = vrot.lane.b32.xlu1 %v7415_v9, %s6846_s26 }
  0xe4   :  { %4387 = vrot.lane.b32.xlu0 %v7448_v15, %s6846_s26  ;;  %v150_v42 = vpop.f32.mrb[2].mxu1  ;;  %v2336_v60 = vsel %vm2087_vm5, %v2331_v23, %v2333_v31 }
  0xe5   :  { %6258 = vmatmul.mubr.msk.bf16.vlgmr.msra.gmra.mrb[72].mxu0 %vm58_vm2, %v7369_v49  ;;  %v7475_v35 = vpop.f32.mrb[0].mxu0  ;;  %v6478_v43 = vpop.f32.mrb[3].mxu1  ;;  %v7526_v62 = vsel %vm62_vm1, %v2336_v60, 0 }
  0xe6   :  { %2228 = vmatpush1.bf16.msra.mxu0 %v2219_v28  ;;  %2259 = vmatprep.mubr.bf16.mxu0 %v6836_v11  ;;  %v7492_v41 = vpop.f32.mrb[1].mxu0 }
  0xe7   :  { %6263 = vmatprep.subr.msk.bf16.mxu0 %vm62_vm1, %v7460_v33  ;;  %v2450_v36 = vpop.permute.xlu0 %2449  ;;  %v2448_v38 = vpop.permute.xlu1 %2447  ;;  %4245 = vrot.lane.b32.xlu1 %v6990_v44, %s6847_s1 }
  0xe8   :  { %4391 = vrot.lane.b32.xlu0 %v7465_v26, %s6846_s26  ;;  %v110_v51 = vpop.f32.mrb[2].mxu0  ;;  %v7512_v52 = vsel %vm2087_vm5, %v2448_v38, %v2450_v36  ;;  %v2453_v7 = vsel %vm2087_vm5, %v2446_v30, %v2448_v38 }
  0xe9   :  { %6584 = vmatmul.mubr.msk.bf16.vlgmr.msra.gmra.mrb[72].mxu1 %vm58_vm2, %v7369_v49  ;;  %v111_v46 = vpop.f32.mrb[3].mxu0  ;;  %v257_v0 = vpop.f32.mrb[4].mxu1  ;;  %v7549_v22 = vsel %vm62_vm1, %v2453_v7, 0 }
  0xea   :  { %6588 = vmatpush3.bf16.msra.mxu1 %v2225_v37  ;;  %6589 = vmatprep.mubr.msk.bf16.mxu1 %vm6837_vm0, %v6834_v5  ;;  %v6483_v58 = vpop.f32.mrb[5].mxu1 }
  0xeb   :  { %6593 = vmatprep.subr.bf16.mxu1 %v6834_v5  ;;  %v2452_v50 = vpop.permute.xlu1 %2451  ;;  %v7502_v56 = vpop.permute.xlu0 %2546  ;;  %4389 = vrot.lane.b32.xlu1 %v7484_v39, %s6846_s26 }
  0xec   :  { %4506 = vrot.lane.b32.xlu0 %v7490_v40, %s6846_s26  ;;  %v260_v13 = vpop.f32.mrb[6].mxu1  ;;  %v2455_v25 = vsel %vm2087_vm5, %v2450_v36, %v2452_v50 }
  0xed   :  { %6261 = vmatmul.mubr.msk.bf16.vlgmr.msra.gmra.mrb[76].mxu0 %vm58_vm2, %v7422_v16  ;;  %v7523_v54 = vpop.f32.mrb[4].mxu0  ;;  %v6484_v18 = vpop.f32.mrb[7].mxu1  ;;  %v7573_v34 = vsel %vm62_vm1, %v2455_v25, 0 }
  0xee   :  { %2347 = vmatpush1.bf16.msra.mxu0 %v7499_v47  ;;  %2378 = vmatprep.mubr.bf16.mxu0 %v6836_v11  ;;  %v218_v12 = vpop.f32.mrb[5].mxu0 }
  0xef   :  { %6266 = vmatprep.subr.msk.bf16.mxu0 %vm62_vm1, %v7512_v52  ;;  %v7530_v63 = vpop.permute.xlu0 %2766  ;;  %v7532_v10 = vpop.permute.xlu1 %2632  ;;  %4393 = vrot.lane.b32.xlu1 %v7508_v48, %s6846_s26 }
  0xf0   :  { %4510 = vrot.lane.b32.xlu0 %v7517_v53, %s6846_s26  ;;  %v220_v17 = vpop.f32.mrb[6].mxu0 }
  0xf1   :  { %6590 = vmatmul.mubr.msk.bf16.vlgmr.msra.gmra.mrb[76].mxu1 %vm58_vm2, %v7422_v16  ;;  %v221_v14 = vpop.f32.mrb[7].mxu0  ;;  %v364_v28 = vpop.f32.mrb[8].mxu1 }
  0xf2   :  { %6594 = vmatpush3.bf16.msra.mxu1 %v7526_v62  ;;  %6595 = vmatprep.mubr.msk.bf16.mxu1 %vm6837_vm0, %v6834_v5  ;;  %v365_v31 = vadd.f32 %v364_v28, %v7472_v29  ;;  %v6489_v32 = vpop.f32.mrb[9].mxu1 }
  0xf3   :  { %6599 = vmatprep.subr.bf16.mxu1 %v6834_v5  ;;  %v7552_v23 = vpop.permute.xlu0 %2770  ;;  %4508 = vrot.lane.b32.xlu1 %v7538_v1, %s6846_s26  ;;  %v367_v27 = vpop.f32.mrb[10].mxu1 }
  0xf4   :  { %v7561_v20 = vpop.permute.xlu1 %2768  ;;  %4607 = vrot.lane.b32.xlu0 %v7066_v2, %s6847_s1 }
  0xf5   :  { %6264 = vmatmul.mubr.msk.bf16.vlgmr.msra.gmra.mrb[80].mxu0 %vm58_vm2, %v7369_v49  ;;  %v323_v30 = vpop.f32.mrb[8].mxu0  ;;  %v2775_v28 = vsel %vm2774_vm6, %v7530_v63, %v7561_v20 }
  0xf6   :  { %2466 = vmatpush1.bf16.msra.mxu0 %v7549_v22  ;;  %2497 = vmatprep.mubr.bf16.mxu0 %v6836_v11  ;;  %v324_v37 = vadd.f32 %v323_v30, %v7475_v35  ;;  %v325_v36 = vpop.f32.mrb[9].mxu0  ;;  %v6490_v35 = vpop.f32.mrb[11].mxu1  ;;  %v2782_v27 = vsel %vm62_vm1, %v2775_v28, 0 }
  0xf7   :  { %6269 = vmatprep.subr.msk.bf16.mxu0 %vm62_vm1, %v7460_v33  ;;  %v7575_v21 = vpop.permute.xlu0 %2746  ;;  %4512 = vrot.lane.b32.xlu1 %v7558_v24, %s6846_s26  ;;  %v326_v29 = vadd.f32 %v325_v36, %v7492_v41  ;;  %v327_v38 = vpop.f32.mrb[10].mxu0 }
  0xf8   :  { %4827 = vrot.lane.b32.xlu0 %v7363_v57, %s6848_s0  ;;  %v328_v45 = vpop.f32.mrb[11].mxu0 }
  0xf9   :  { %6596 = vmatmul.mubr.msk.bf16.vlgmr.msra.gmra.mrb[80].mxu1 %vm58_vm2, %v7369_v49  ;;  %v7585_v33 = vpop.permute.xlu1 %2772  ;;  %v471_v49 = vpop.f32.mrb[12].mxu1 }
  0xfa   :  { %6600 = vmatpush3.bf16.msra.mxu1 %v7573_v34  ;;  %6601 = vmatprep.mubr.msk.bf16.mxu1 %vm6837_vm0, %v6834_v5  ;;  %v472_v51 = vadd.f32 %v471_v49, %v257_v0  ;;  %v6495_v46 = vpop.f32.mrb[13].mxu1 }
  0xfb   :  { %6605 = vmatprep.subr.bf16.mxu1 %v6834_v5  ;;  %4693 = vrot.lane.b32.xlu1 %v7079_v3, %s6847_s1  ;;  %v474_v60 = vpop.f32.mrb[14].mxu1 }
  0xfc   :  { %4831 = vrot.lane.b32.xlu0 %v7376_v61, %s6848_s0 }
  0xfd   :  { %6267 = vmatmul.mubr.msk.bf16.vlgmr.msra.gmra.mrb[84].mxu0 %vm58_vm2, %v7422_v16  ;;  %v430_v43 = vpop.f32.mrb[12].mxu0 }
  0xfe   :  { %2552 = vmatpush1.bf16.msra.mxu0 %v7499_v47  ;;  %2583 = vmatprep.mubr.bf16.mxu0 %v6836_v11  ;;  %v7599_v41 = vpop.permute.xlu0 %2893  ;;  %v7601_v42 = vpop.permute.xlu1 %2891  ;;  %v431_v47 = vadd.f32 %v430_v43, %v7523_v54 }
  0xff   :  { %6272 = vmatprep.subr.msk.bf16.mxu0 %vm62_vm1, %v7512_v52  ;;  %4829 = vrot.lane.b32.xlu1 %v7390_v55, %s6848_s0  ;;  %v432_v50 = vpop.f32.mrb[13].mxu0  ;;  %v6496_v52 = vpop.f32.mrb[15].mxu1  ;;  %v2899_v46 = vsel %vm2774_vm6, %v7601_v42, %v7599_v41 }
 0x100   :  { %4807 = vrot.lane.b32.xlu0 %v6893_v6, %s6849_s8  ;;  %v433_v0 = vadd.f32 %v432_v50, %v218_v12  ;;  %v434_v58 = vpop.f32.mrb[14].mxu0  ;;  %v2906_v42 = vsel %vm62_vm1, %v2899_v46, 0 }
 0x101   :  { %6602 = vmatmul.mubr.msk.bf16.vlgmr.msra.gmra.mrb[84].mxu1 %vm58_vm2, %v7422_v16  ;;  %v435_v54 = vpop.f32.mrb[15].mxu0  ;;  %v2776_v16 = vsel %vm2774_vm6, %v7561_v20, %v7552_v23 }
 0x102   :  { %6606 = vmatpush3.bf16.msra.mxu1 %v7526_v62  ;;  %6607 = vmatprep.mubr.msk.bf16.mxu1 %vm6837_vm0, %v6834_v5  ;;  %v7615_v7 = vpop.permute.xlu0 %2897  ;;  %v7617_v13 = vpop.permute.xlu1 %2895 }
 0x103   :  { %6611 = vmatprep.subr.bf16.mxu1 %v6834_v5  ;;  %4833 = vrot.lane.b32.xlu1 %v7405_v4, %s6848_s0  ;;  %v555_v62 = vpop.f32.mrb[16].mxu1 }
 0x104   :  { %4954 = vrot.lane.b32.xlu0 %v7412_v8, %s6848_s0  ;;  %v7635_v18 = vadd.f32 %v555_v62, %v365_v31  ;;  %v6501_v25 = vpop.f32.mrb[17].mxu1 }
 0x105   :  { %6270 = vmatmul.mubr.msk.bf16.vlgmr.msra.gmra.mrb[88].mxu0 %vm58_vm2, %v7502_v56  ;;  %v514_v14 = vpop.f32.mrb[16].mxu0  ;;  %v558_v32 = vpop.f32.mrb[18].mxu1 }
 0x106   :  { %2638 = vmatpush1.bf16.msra.mxu0 %v7549_v22  ;;  %2669 = vmatprep.mubr.bf16.mxu0 %v6836_v11  ;;  %v7631_v12 = vpop.permute.xlu0 %3013  ;;  %v7633_v17 = vpop.permute.xlu1 %2871  ;;  %v7645_v22 = vadd.f32 %v514_v14, %v324_v37 }
 0x107   :  { %6275 = vmatprep.subr.msk.bf16.mxu0 %vm62_vm1, %v2776_v16  ;;  %4952 = vrot.lane.b32.xlu1 %v7396_v59, %s6848_s0  ;;  %v516_v30 = vpop.f32.mrb[17].mxu0  ;;  %v6502_v38 = vpop.f32.mrb[19].mxu1 }
 0x108   :  { %4958 = vrot.lane.b32.xlu0 %v7432_v19, %s6848_s0  ;;  %v7649_v31 = vadd.f32 %v516_v30, %v326_v29  ;;  %v518_v36 = vpop.f32.mrb[18].mxu0 }
 0x109   :  { %6608 = vmatmul.mubr.msk.bf16.vlgmr.msra.gmra.mrb[88].mxu1 %vm58_vm2, %v7502_v56  ;;  %v519_v37 = vpop.f32.mrb[19].mxu0  ;;  %v2777_v56 = vsel %vm2774_vm6, %v7552_v23, %v7585_v33  ;;  %v639_v29 = vpop.f32.mrb[20].mxu1 }
 0x10a   :  { %6612 = vmatpush3.bf16.msra.mxu1 %v7573_v34  ;;  %6613 = vmatprep.mubr.msk.bf16.mxu1 %vm6837_vm0, %v6834_v5  ;;  %v3018_v63 = vpop.permute.xlu0 %3017  ;;  %v3016_v20 = vpop.permute.xlu1 %3015  ;;  %v2900_v34 = vsel %vm2774_vm6, %v7599_v41, %v7617_v13  ;;  %v7669_v49 = vadd.f32 %v639_v29, %v472_v51  ;;  %v2788_v23 = vsel %vm62_vm1, %v2777_v56, 0 }
 0x10b   :  { %6617 = vmatprep.subr.bf16.mxu1 %v6834_v5  ;;  %4956 = vrot.lane.b32.xlu1 %v7415_v9, %s6848_s0  ;;  %v6507_v43 = vpop.f32.mrb[21].mxu1 }
 0x10c   :  { %5074 = vrot.lane.b32.xlu0 %v7448_v15, %s6848_s0  ;;  %v642_v60 = vpop.f32.mrb[22].mxu1 }
 0x10d   :  { %6273 = vmatmul.mubr.msk.bf16.vlgmr.msra.gmra.mrb[92].mxu0 %vm58_vm2, %v7532_v10  ;;  %v598_v33 = vpop.f32.mrb[20].mxu0  ;;  %v6508_v54 = vpop.f32.mrb[23].mxu1 }
 0x10e   :  { %2791 = vmatpush1.bf16.msra.mxu0 %v2782_v27  ;;  %2822 = vmatprep.mubr.bf16.mxu0 %v6836_v11  ;;  %v3133_v45 = vpop.permute.xlu0 %3132  ;;  %v3020_v35 = vpop.permute.xlu1 %3019  ;;  %v7680_v50 = vadd.f32 %v598_v33, %v431_v47 }
 0x10f   :  { %6278 = vmatprep.subr.msk.bf16.mxu0 %vm62_vm1, %v2900_v34  ;;  %4932 = vrot.lane.b32.xlu1 %v6990_v44, %s6849_s8  ;;  %v600_v51 = vpop.f32.mrb[21].mxu0 }
 0x110   :  { %5078 = vrot.lane.b32.xlu0 %v7465_v26, %s6848_s0  ;;  %v7684_v58 = vadd.f32 %v600_v51, %v433_v0  ;;  %v602_v52 = vpop.f32.mrb[22].mxu0  ;;  %v3022_v0 = vsel %vm2774_vm6, %v3016_v20, %v3018_v63 }
 0x111   :  { %6614 = vmatmul.mubr.msk.bf16.vlgmr.msra.gmra.mrb[92].mxu1 %vm58_vm2, %v7532_v10  ;;  %v603_v41 = vpop.f32.mrb[23].mxu0  ;;  %v2901_v10 = vsel %vm2774_vm6, %v7617_v13, %v7615_v7  ;;  %v3021_v7 = vsel %vm2774_vm6, %v7631_v12, %v3016_v20  ;;  %v3023_v12 = vsel %vm2774_vm6, %v3018_v63, %v3020_v35 }
 0x112   :  { %6618 = vmatpush3.bf16.msra.mxu1 %v2788_v23  ;;  %6619 = vmatprep.mubr.msk.bf16.mxu1 %vm6837_vm0, %v6834_v5  ;;  %v3137_v16 = vpop.permute.xlu0 %3136  ;;  %v2912_v14 = vsel %vm62_vm1, %v2901_v10, 0  ;;  %v3025_v28 = vsel %vm62_vm1, %v3021_v7, 0  ;;  %v3031_v38 = vsel %vm62_vm1, %v3023_v12, 0 }
 0x113   :  { %6623 = vmatprep.subr.bf16.mxu1 %v6834_v5  ;;  %v3135_v47 = vpop.permute.xlu1 %3134  ;;  %5076 = vrot.lane.b32.xlu1 %v7484_v39, %s6848_s0 }
 0x114   :  { %5193 = vrot.lane.b32.xlu0 %v7490_v40, %s6848_s0  ;;  %v3141_v32 = vsel %vm2774_vm6, %v3135_v47, %v3137_v16  ;;  %v3140_v63 = vsel %vm2774_vm6, %v3133_v45, %v3135_v47 }
 0x115   :  { %6276 = vmatmul.mubr.msk.bf16.vlgmr.msra.gmra.mrb[96].mxu0 %vm58_vm2, %v7575_v21  ;;  %v3144_v37 = vsel %vm62_vm1, %v3140_v63, 0 }
 0x116   :  { %2915 = vmatpush1.bf16.msra.mxu0 %v2906_v42  ;;  %2946 = vmatprep.mubr.bf16.mxu0 %v6836_v11  ;;  %v7701_v62 = vpop.permute.xlu0 %3233 }
 0x117   :  { %6281 = vmatprep.subr.msk.bf16.mxu0 %vm62_vm1, %v3022_v0  ;;  %v3139_v25 = vpop.permute.xlu1 %3138  ;;  %5080 = vrot.lane.b32.xlu1 %v7508_v48, %s6848_s0 }
 0x118   :  { %5197 = vrot.lane.b32.xlu0 %v7517_v53, %s6848_s0  ;;  %v3142_v56 = vsel %vm2774_vm6, %v3137_v16, %v3139_v25 }
 0x119   :  { %6620 = vmatmul.mubr.msk.bf16.vlgmr.msra.gmra.mrb[96].mxu1 %vm58_vm2, %v7575_v21  ;;  %v3150_v29 = vsel %vm62_vm1, %v3142_v56, 0 }
 0x11a   :  { %6624 = vmatpush3.bf16.msra.mxu1 %v2912_v14  ;;  %6625 = vmatprep.mubr.msk.bf16.mxu1 %vm6837_vm0, %v6834_v5  ;;  %v7715_v13 = vpop.permute.xlu0 %3453 }
 0x11b   :  { %6629 = vmatprep.subr.bf16.mxu1 %v6834_v5  ;;  %v7719_v30 = vpop.permute.xlu1 %3319  ;;  %5195 = vrot.lane.b32.xlu1 %v7538_v1, %s6848_s0 }
 0x11c   :  { %5294 = vrot.lane.b32.xlu0 %v7066_v2, %s6849_s8 }
 0x11d   :  { %6279 = vmatmul.mubr.msk.bf16.vlgmr.msra.gmra.mrb[100].mxu0 %vm58_vm2, %v7633_v17 }
 0x11e   :  { %3034 = vmatpush1.bf16.msra.mxu0 %v3025_v28  ;;  %3065 = vmatprep.mubr.bf16.mxu0 %v6836_v11  ;;  %v7730_v36 = vpop.permute.xlu0 %3457 }
 0x11f   :  { %6284 = vmatprep.subr.msk.bf16.mxu0 %vm62_vm1, %v3141_v32  ;;  %v3456_v20 = vpop.permute.xlu1 %3455  ;;  %5199 = vrot.lane.b32.xlu1 %v7558_v24, %s6848_s0 }
 0x120   :  { %5514 = vrot.lane.b32.xlu0 %v7363_v57, %s6850_s9 }
 0x121   :  { %6626 = vmatmul.mubr.msk.bf16.vlgmr.msra.gmra.mrb[100].mxu1 %vm58_vm2, %v7633_v17 }
 0x122   :  { %6630 = vmatpush3.bf16.msra.mxu1 %v3031_v38  ;;  %6631 = vmatprep.mubr.msk.bf16.mxu1 %vm6837_vm0, %v6834_v5  ;;  %v7743_v27 = vpop.permute.xlu0 %3433 }
 0x123   :  { %6635 = vmatprep.subr.bf16.mxu1 %v6834_v5  ;;  %5380 = vrot.lane.b32.xlu1 %v7079_v3, %s6849_s8 }
 0x124   :  { %5518 = vrot.lane.b32.xlu0 %v7376_v61, %s6850_s9 }
 0x125   :  { %6282 = vmatmul.mubr.msk.bf16.vlgmr.msra.gmra.mrb[104].mxu0 %vm58_vm2, %v7575_v21  ;;  %v3460_v57 = vpop.permute.xlu1 %3459 }
 0x126   :  { %3153 = vmatpush1.bf16.msra.mxu0 %v3144_v37  ;;  %3184 = vmatprep.mubr.bf16.mxu0 %v6836_v11  ;;  %v3581_v34 = vpop.permute.xlu0 %3580 }
 0x127   :  { %6287 = vmatprep.subr.msk.bf16.mxu0 %vm62_vm1, %v3022_v0  ;;  %5516 = vrot.lane.b32.xlu1 %v7390_v55, %s6850_s9 }
 0x128   :  { %5494 = vrot.lane.b32.xlu0 %v6893_v6, %s6851_s10 }
 0x129   :  { %6632 = vmatmul.mubr.msk.bf16.vlgmr.msra.gmra.mrb[104].mxu1 %vm58_vm2, %v7575_v21  ;;  %v3579_v61 = vpop.permute.xlu1 %3578 }
 0x12a   :  { %6636 = vmatpush3.bf16.msra.mxu1 %v3150_v29  ;;  %6637 = vmatprep.mubr.msk.bf16.mxu1 %vm6837_vm0, %v6834_v5  ;;  %v3585_v45 = vpop.permute.xlu0 %3584 }
 0x12b   :  { %6641 = vmatprep.subr.bf16.mxu1 %v6834_v5  ;;  %5520 = vrot.lane.b32.xlu1 %v7405_v4, %s6850_s9 }
 0x12c   :  { %5641 = vrot.lane.b32.xlu0 %v7412_v8, %s6850_s9 }
 0x12d   :  { %6285 = vmatmul.mubr.msk.bf16.vlgmr.msra.gmra.mrb[108].mxu0 %vm58_vm2, %v7633_v17  ;;  %v3583_v6 = vpop.permute.xlu1 %3582 }
 0x12e   :  { %3239 = vmatpush1.bf16.msra.mxu0 %v3025_v28  ;;  %3270 = vmatprep.mubr.bf16.mxu0 %v6836_v11  ;;  %v7773_v55 = vpop.permute.xlu0 %3700 }
 0x12f   :  { %6290 = vmatprep.subr.msk.bf16.mxu0 %vm62_vm1, %v3141_v32  ;;  %5639 = vrot.lane.b32.xlu1 %v7396_v59, %s6850_s9  ;;  %v3463_v59 = vsel %vm3461_vm7, %v3456_v20, %v7730_v36 }
 0x130   :  { %5645 = vrot.lane.b32.xlu0 %v7432_v19, %s6850_s9 }
 0x131   :  { %6638 = vmatmul.mubr.msk.bf16.vlgmr.msra.gmra.mrb[108].mxu1 %vm58_vm2, %v7633_v17  ;;  %v7782_v4 = vpop.permute.xlu1 %3558 }
 0x132   :  { %6642 = vmatpush3.bf16.msra.mxu1 %v3031_v38  ;;  %6643 = vmatprep.mubr.msk.bf16.mxu1 %vm6837_vm0, %v6834_v5  ;;  %v7786_v8 = vpop.permute.xlu0 %3704 }
 0x133   :  { %6647 = vmatprep.subr.bf16.mxu1 %v6834_v5  ;;  %5643 = vrot.lane.b32.xlu1 %v7415_v9, %s6850_s9  ;;  %v3462_v9 = vsel %vm3461_vm7, %v7715_v13, %v3456_v20 }
 0x134   :  { %5761 = vrot.lane.b32.xlu0 %v7448_v15, %s6850_s9  ;;  %v3469_v35 = vsel %vm62_vm1, %v3462_v9, 0 }
 0x135   :  { %6288 = vmatmul.mubr.msk.bf16.vlgmr.msra.gmra.mrb[112].mxu0 %vm58_vm2, %v7701_v62  ;;  %v3703_v19 = vpop.permute.xlu1 %3702 }
 0x136   :  { %3325 = vmatpush1.bf16.msra.mxu0 %v3144_v37  ;;  %3356 = vmatprep.mubr.bf16.mxu0 %v6836_v11  ;;  %v7798_v21 = vpop.permute.xlu0 %3819 }
 0x137   :  { %6293 = vmatprep.subr.msk.bf16.mxu0 %vm62_vm1, %v3463_v59  ;;  %5619 = vrot.lane.b32.xlu1 %v6990_v44, %s6851_s10  ;;  %v3464_v44 = vsel %vm3461_vm7, %v7730_v36, %v3460_v57 }
 0x138   :  { %5765 = vrot.lane.b32.xlu0 %v7465_v26, %s6850_s9  ;;  %v3587_v26 = vsel %vm3461_vm7, %v3581_v34, %v3583_v6  ;;  %v3475_v43 = vsel %vm62_vm1, %v3464_v44, 0 }
 0x139   :  { %6644 = vmatmul.mubr.msk.bf16.vlgmr.msra.gmra.mrb[112].mxu1 %vm58_vm2, %v7701_v62  ;;  %v3707_v15 = vpop.permute.xlu1 %3706 }
 0x13a   :  { %6648 = vmatpush3.bf16.msra.mxu1 %v3150_v29  ;;  %6649 = vmatprep.mubr.msk.bf16.mxu1 %vm6837_vm0, %v6834_v5  ;;  %v7811_v17 = vpop.permute.xlu0 %3823 }
 0x13b   :  { %6653 = vmatprep.subr.bf16.mxu1 %v6834_v5  ;;  %5763 = vrot.lane.b32.xlu1 %v7484_v39, %s6850_s9  ;;  %v3586_v39 = vsel %vm3461_vm7, %v3579_v61, %v3581_v34 }
 0x13c   :  { %5880 = vrot.lane.b32.xlu0 %v7490_v40, %s6850_s9  ;;  %v3593_v51 = vsel %vm62_vm1, %v3586_v39, 0 }
 0x13d   :  { %6291 = vmatmul.mubr.msk.bf16.vlgmr.msra.gmra.mrb[116].mxu0 %vm58_vm2, %v7719_v30  ;;  %v3822_v23 = vpop.permute.xlu1 %3821 }
 0x13e   :  { %3478 = vmatpush1.bf16.msra.mxu0 %v3469_v35  ;;  %3509 = vmatprep.mubr.bf16.mxu0 %v6836_v11  ;;  %v7825_v33 = vpop.permute.xlu0 %3920  ;;  %v3828_v42 = vsel %vm3461_vm7, %v3822_v23, %v7811_v17 }
 0x13f   :  { %6296 = vmatprep.subr.msk.bf16.mxu0 %vm62_vm1, %v3587_v26  ;;  %5767 = vrot.lane.b32.xlu1 %v7508_v48, %s6850_s9  ;;  %v3588_v48 = vsel %vm3461_vm7, %v3583_v6, %v3585_v45 }
 0x140   :  { %5884 = vrot.lane.b32.xlu0 %v7517_v53, %s6850_s9  ;;  %v3709_v53 = vsel %vm3461_vm7, %v3703_v19, %v7786_v8 }
 0x141   :  { %6650 = vmatmul.mubr.msk.bf16.vlgmr.msra.gmra.mrb[116].mxu1 %vm58_vm2, %v7719_v30  ;;  %v3826_v40 = vpop.permute.xlu1 %3825 }
 0x142   :  { %6654 = vmatpush3.bf16.msra.mxu1 %v3475_v43  ;;  %6655 = vmatprep.mubr.msk.bf16.mxu1 %vm6837_vm0, %v6834_v5  ;;  %v7838_v46 = vpop.permute.xlu0 %4140  ;;  %v3829_v7 = vsel %vm3461_vm7, %v7811_v17, %v3826_v40 }
 0x143   :  { %6659 = vmatprep.subr.bf16.mxu1 %v6834_v5  ;;  %5882 = vrot.lane.b32.xlu1 %v7538_v1, %s6850_s9  ;;  %v3599_v1 = vsel %vm62_vm1, %v3588_v48, 0  ;;  %v3837_v30 = vsel %vm62_vm1, %v3829_v7, 0 }
 0x144   :  { %5981 = vrot.lane.b32.xlu0 %v7066_v2, %s6851_s10  ;;  %v3708_v2 = vsel %vm3461_vm7, %v7773_v55, %v3703_v19 }
 0x145   :  { %6294 = vmatmul.mubr.msk.bf16.vlgmr.msra.gmra.mrb[120].mxu0 %vm58_vm2, %v7743_v27  ;;  %v7851_v60 = vpop.permute.xlu1 %4006  ;;  %v3712_v41 = vsel %vm62_vm1, %v3708_v2, 0 }
 0x146   :  { %3602 = vmatpush1.bf16.msra.mxu0 %v3593_v51  ;;  %3633 = vmatprep.mubr.bf16.mxu0 %v6836_v11  ;;  %v7854_v52 = vpop.permute.xlu0 %4144 }
 0x147   :  { %6299 = vmatprep.subr.msk.bf16.mxu0 %vm62_vm1, %v3709_v53  ;;  %5886 = vrot.lane.b32.xlu1 %v7558_v24, %s6850_s9  ;;  %v3710_v24 = vsel %vm3461_vm7, %v7786_v8, %v3707_v15 }
 0x148   :  { %v3718_v0 = vsel %vm62_vm1, %v3710_v24, 0 }
 0x149   :  { %6656 = vmatmul.mubr.msk.bf16.vlgmr.msra.gmra.mrb[120].mxu1 %vm58_vm2, %v7743_v27  ;;  %v7864_v54 = vpop.permute.xlu1 %4142 }
 0x14a   :  { %6660 = vmatpush3.bf16.msra.mxu1 %v3599_v1  ;;  %6661 = vmatprep.mubr.msk.bf16.mxu1 %vm6837_vm0, %v6834_v5  ;;  %v7868_v16 = vpop.permute.xlu0 %4120  ;;  %v4150_v19 = vsel %vm4148_vm8, %v7864_v54, %v7854_v52  ;;  %v4149_v17 = vsel %vm4148_vm8, %v7838_v46, %v7864_v54 }
 0x14b   :  { %6665 = vmatprep.subr.bf16.mxu1 %v6834_v5  ;;  %6067 = vrot.lane.b32.xlu1 %v7079_v3, %s6851_s10  ;;  %v3827_v3 = vsel %vm3461_vm7, %v7798_v21, %v3822_v23  ;;  %v4156_v51 = vsel %vm62_vm1, %v4149_v17, 0 }
 0x14c   :  { %v3831_v25 = vsel %vm62_vm1, %v3827_v3, 0 }
 0x14d   :  { %6297 = vmatmul.mubr.msk.bf16.vlgmr.msra.gmra.mrb[124].mxu0 %vm58_vm2, %v7782_v4  ;;  %v7880_v47 = vpop.permute.xlu1 %4146 }
 0x14e   :  { %3721 = vmatpush1.bf16.msra.mxu0 %v3712_v41  ;;  %3752 = vmatprep.mubr.bf16.mxu0 %v6836_v11  ;;  %v7883_v10 = vpop.permute.xlu0 %4267  ;;  %v4151_v46 = vsel %vm4148_vm8, %v7854_v52, %v7880_v47 }
 0x14f   :  { %6302 = vmatprep.subr.msk.bf16.mxu0 %vm62_vm1, %v3828_v42  ;;  %v4162_v52 = vsel %vm62_vm1, %v4151_v46, 0 }
 0x151   :  { %6662 = vmatmul.mubr.msk.bf16.vlgmr.msra.gmra.mrb[124].mxu1 %vm58_vm2, %v7782_v4  ;;  %v7891_v62 = vpop.permute.xlu1 %4265 }
 0x152   :  { %6666 = vmatpush3.bf16.msra.mxu1 %v3718_v0  ;;  %6667 = vmatprep.mubr.msk.bf16.mxu1 %vm6837_vm0, %v6834_v5  ;;  %v7895_v14 = vpop.permute.xlu0 %4271  ;;  %v4273_v47 = vsel %vm4148_vm8, %v7891_v62, %v7883_v10 }
 0x153   :  { %6671 = vmatprep.subr.bf16.mxu1 %v6834_v5 }
 0x155   :  { %6300 = vmatmul.mubr.msk.bf16.vlgmr.msra.gmra.mrb[128].mxu0 %vm58_vm2, %v7743_v27  ;;  %v7903_v13 = vpop.permute.xlu1 %4269 }
 0x156   :  { %3840 = vmatpush1.bf16.msra.mxu0 %v3831_v25  ;;  %3871 = vmatprep.mubr.bf16.mxu0 %v6836_v11  ;;  %v7906_v28 = vpop.permute.xlu0 %4387 }
 0x157   :  { %6305 = vmatprep.subr.msk.bf16.mxu0 %vm62_vm1, %v3709_v53 }
 0x158   :  { %v754_v12 = vpop.f32.mrb[24].mxu0 }
 0x159   :  { %v756_v32 = vpop.f32.mrb[25].mxu0  ;;  %6668 = vmatmul.mubr.msk.bf16.vlgmr.msra.gmra.mrb[128].mxu1 %vm58_vm2, %v7743_v27  ;;  %v7912_v36 = vpop.permute.xlu1 %4245 }
 0x15a   :  { %v758_v38 = vpop.f32.mrb[26].mxu0  ;;  %6672 = vmatpush3.bf16.msra.mxu1 %v3837_v30  ;;  %6673 = vmatprep.mubr.msk.bf16.mxu1 %vm6837_vm0, %v6834_v5  ;;  %v7916_v20 = vpop.permute.xlu0 %4391 }
 0x15b   :  { %v759_v63 = vpop.f32.mrb[27].mxu0  ;;  %6677 = vmatprep.subr.bf16.mxu1 %v6834_v5 }
 0x15c   :  { %v795_v37 = vpop.f32.mrb[24].mxu1 }
 0x15d   :  { %v6513_v56 = vpop.f32.mrb[25].mxu1  ;;  %6303 = vmatmul.mubr.msk.bf16.vlgmr.msra.gmra.mrb[132].mxu0 %vm58_vm2, %v7782_v4  ;;  %v7921_v57 = vpop.permute.xlu1 %4389 }
 0x15e   :  { %3926 = vmatpush1.bf16.msra.mxu0 %v3712_v41  ;;  %v798_v27 = vpop.f32.mrb[26].mxu1  ;;  %3957 = vmatprep.mubr.bf16.mxu0 %v6836_v11  ;;  %v7924_v34 = vpop.permute.xlu0 %4506 }
 0x15f   :  { %6308 = vmatprep.subr.msk.bf16.mxu0 %vm62_vm1, %v3828_v42  ;;  %v6514_v29 = vpop.f32.mrb[27].mxu1 }
 0x160   :  { %v881_v61 = vpop.f32.mrb[28].mxu0 }
 0x161   :  { %v883_v45 = vpop.f32.mrb[29].mxu0  ;;  %6674 = vmatmul.mubr.msk.bf16.vlgmr.msra.gmra.mrb[132].mxu1 %vm58_vm2, %v7782_v4  ;;  %v7932_v8 = vpop.permute.xlu1 %4393 }
 0x162   :  { %6678 = vmatpush3.bf16.msra.mxu1 %v3718_v0  ;;  %v885_v6 = vpop.f32.mrb[30].mxu0  ;;  %6679 = vmatprep.mubr.msk.bf16.mxu1 %vm6837_vm0, %v6834_v5  ;;  %v7937_v21 = vpop.permute.xlu0 %4510 }
 0x163   :  { %v886_v55 = vpop.f32.mrb[31].mxu0  ;;  %6683 = vmatprep.subr.bf16.mxu1 %v6834_v5 }
 0x164   :  { %v922_v59 = vpop.f32.mrb[28].mxu1 }
 0x165   :  { %v6519_v9 = vpop.f32.mrb[29].mxu1  ;;  %6306 = vmatmul.mubr.msk.bf16.vlgmr.msra.gmra.mrb[136].mxu0 %vm58_vm2, %v7825_v33  ;;  %v7950_v43 = vpop.permute.xlu1 %4508 }
 0x166   :  { %4012 = vmatpush1.bf16.msra.mxu0 %v3831_v25  ;;  %v925_v4 = vpop.f32.mrb[30].mxu1  ;;  %4043 = vmatprep.mubr.bf16.mxu0 %v6836_v11  ;;  %v7946_v44 = vpop.permute.xlu0 %4607 }
 0x167   :  { %v6520_v15 = vpop.f32.mrb[31].mxu1  ;;  %6311 = vmatprep.subr.msk.bf16.mxu0 %vm62_vm1, %v4150_v19 }
 0x168   :  { %v1000_v35 = vpop.f32.mrb[32].mxu0 }
 0x169   :  { %v1001_v26 = vadd.f32 %v1000_v35, %v754_v12  ;;  %v1002_v23 = vpop.f32.mrb[33].mxu0  ;;  %6680 = vmatmul.mubr.msk.bf16.vlgmr.msra.gmra.mrb[136].mxu1 %vm58_vm2, %v7825_v33  ;;  %v4274_v33 = vsel %vm4148_vm8, %v7883_v10, %v7903_v13  ;;  %v7964_v54 = vpop.permute.xlu1 %4512  ;;  %v4275_v10 = vsel %vm4148_vm8, %v7903_v13, %v7895_v14  ;;  %v4397_v35 = vsel %vm4148_vm8, %v7916_v20, %v7932_v8 }
 0x16a   :  { %v1003_v39 = vadd.f32 %v1002_v23, %v756_v32  ;;  %6684 = vmatpush3.bf16.msra.mxu1 %v3837_v30  ;;  %v1004_v40 = vpop.f32.mrb[34].mxu0  ;;  %6685 = vmatprep.mubr.msk.bf16.mxu1 %vm6837_vm0, %v6834_v5  ;;  %v7967_v24 = vpop.permute.xlu0 %4827  ;;  %v4280_v32 = vsel %vm62_vm1, %v4273_v47, 0  ;;  %v4286_v29 = vsel %vm62_vm1, %v4275_v10, 0  ;;  %v4516_v47 = vsel %vm4148_vm8, %v7937_v21, %v7964_v54 }
 0x16b   :  { %v1005_v48 = vpop.f32.mrb[35].mxu0  ;;  %6689 = vmatprep.subr.bf16.mxu1 %v6834_v5 }
 0x16c   :  { %v1041_v53 = vpop.f32.mrb[32].mxu1  ;;  %v4514_v48 = vsel %vm4148_vm8, %v7924_v34, %v7950_v43 }
 0x16d   :  { %v1042_v1 = vadd.f32 %v1041_v53, %v795_v37  ;;  %v6525_v2 = vpop.f32.mrb[33].mxu1  ;;  %6309 = vmatmul.mubr.msk.bf16.vlgmr.msra.gmra.mrb[140].mxu0 %vm58_vm2, %v7851_v60  ;;  %v7976_v7 = vpop.permute.xlu1 %4693 }
 0x16e   :  { %4165 = vmatpush1.bf16.msra.mxu0 %v4156_v51  ;;  %v1044_v41 = vpop.f32.mrb[34].mxu1  ;;  %4196 = vmatprep.mubr.bf16.mxu0 %v6836_v11  ;;  %v7990_v63 = vpop.permute.xlu0 %4831 }
 0x16f   :  { %v6526_v42 = vpop.f32.mrb[35].mxu1  ;;  %6314 = vmatprep.subr.msk.bf16.mxu0 %vm62_vm1, %v4274_v33  ;;  %v4518_v41 = vsel %vm62_vm1, %v4514_v48, 0 }
 0x170   :  { %v1119_v0 = vpop.f32.mrb[36].mxu0 }
 0x171   :  { %v1120_v3 = vadd.f32 %v1119_v0, %v881_v61  ;;  %v1121_v25 = vpop.f32.mrb[37].mxu0  ;;  %6686 = vmatmul.mubr.msk.bf16.vlgmr.msra.gmra.mrb[140].mxu1 %vm58_vm2, %v7851_v60  ;;  %v7988_v60 = vsel %vm4148_vm8, %v7921_v57, %v7916_v20  ;;  %v7998_v13 = vpop.permute.xlu1 %4829  ;;  %v4405_v20 = vsel %vm62_vm1, %v4397_v35, 0 }
 0x172   :  { %v1122_v30 = vadd.f32 %v1121_v25, %v883_v45  ;;  %6690 = vmatpush3.bf16.msra.mxu1 %v4162_v52  ;;  %v1123_v12 = vpop.f32.mrb[38].mxu0  ;;  %6691 = vmatprep.mubr.msk.bf16.mxu1 %vm6837_vm0, %v6834_v5  ;;  %v4395_v45 = vsel %vm4148_vm8, %v7906_v28, %v7921_v57  ;;  %v8007_v9 = vpop.permute.xlu0 %4807 }
 0x173   :  { %v1124_v38 = vpop.f32.mrb[39].mxu0  ;;  %6695 = vmatprep.subr.bf16.mxu1 %v6834_v5  ;;  %v4399_v15 = vsel %vm62_vm1, %v4395_v45, 0 }
 0x174   :  { %v1160_v62 = vpop.f32.mrb[36].mxu1 }
 0x175   :  { %v1161_v37 = vadd.f32 %v1160_v62, %v922_v59  ;;  %v6531_v56 = vpop.f32.mrb[37].mxu1  ;;  %6312 = vmatmul.mubr.msk.bf16.vlgmr.msra.gmra.mrb[144].mxu0 %vm58_vm2, %v7868_v16 }
 0x176   :  { %v1163_v27 = vpop.f32.mrb[38].mxu1  ;;  %4289 = vmatpush1.bf16.msra.mxu0 %v4280_v32  ;;  %4320 = vmatprep.mubr.bf16.mxu0 %v6836_v11  ;;  %v8036_v46 = vpop.permute.xlu0 %4954 }
 0x177   :  { %v6532_v14 = vpop.f32.mrb[39].mxu1  ;;  %6317 = vmatprep.subr.msk.bf16.mxu0 %vm62_vm1, %v7988_v60 }
 0x178   :  { %v1208_v61 = vpop.f32.mrb[40].mxu0 }
 0x179   :  { %v1344_v6 = vadd.f32 %v1208_v61, %v1001_v26  ;;  %v1210_v55 = vpop.f32.mrb[41].mxu0  ;;  %6692 = vmatmul.mubr.msk.bf16.vlgmr.msra.gmra.mrb[144].mxu1 %vm58_vm2, %v7868_v16  ;;  %v4515_v26 = vsel %vm4148_vm8, %v7950_v43, %v7937_v21  ;;  %v4524_v21 = vsel %vm62_vm1, %v4516_v47, 0 }
 0x17a   :  { %v1345_v59 = vadd.f32 %v1210_v55, %v1003_v39  ;;  %v1212_v19 = vpop.f32.mrb[42].mxu0  ;;  %6696 = vmatpush3.bf16.msra.mxu1 %v4286_v29  ;;  %6697 = vmatprep.mubr.msk.bf16.mxu1 %vm6837_vm0, %v6834_v5  ;;  %v8025_v39 = vpop.permute.xlu1 %4833  ;;  %v4837_v55 = vsel %vm4835_vm9, %v7998_v13, %v7990_v63 }
 0x17b   :  { %v8010_v4 = vadd.f32 %v1344_v6, %v7645_v22  ;;  %v1213_v17 = vpop.f32.mrb[43].mxu0  ;;  %6701 = vmatprep.subr.bf16.mxu1 %v6834_v5  ;;  %v8058_v25 = vpop.permute.xlu0 %4958 }
 0x17c   :  { %v8015_v28 = vadd.f32 %v1345_v59, %v7649_v31  ;;  %v1249_v57 = vpop.f32.mrb[40].mxu1  ;;  %v4836_v17 = vsel %vm4835_vm9, %v7967_v24, %v7998_v13  ;;  %v4838_v13 = vsel %vm4835_vm9, %v7990_v63, %v8025_v39 }
 0x17d   :  { %v1346_v23 = vadd.f32 %v1249_v57, %v1042_v1  ;;  %v6537_v22 = vpop.f32.mrb[41].mxu1  ;;  %6315 = vmatmul.mubr.msk.bf16.vlgmr.msra.gmra.mrb[148].mxu0 %vm58_vm2, %v7912_v36 }
 0x17e   :  { %v1252_v40 = vpop.f32.mrb[42].mxu1  ;;  %4408 = vmatpush1.bf16.msra.mxu0 %v4399_v15  ;;  %4439 = vmatprep.mubr.bf16.mxu0 %v6836_v11  ;;  %v8047_v34 = vpop.permute.xlu1 %4952 }
 0x17f   :  { %v8029_v31 = vadd.f32 %v1346_v23, %v7635_v18  ;;  %v6538_v8 = vpop.f32.mrb[43].mxu1  ;;  %6320 = vmatprep.subr.msk.bf16.mxu0 %vm62_vm1, %v4515_v26  ;;  %v8073_v62 = vpop.permute.xlu0 %5074  ;;  %v4960_v63 = vsel %vm4835_vm9, %v8047_v34, %v8036_v46 }
 0x180   :  { %v1297_v51 = vpop.f32.mrb[44].mxu0 }
 0x181   :  { %v1347_v53 = vadd.f32 %v1297_v51, %v1120_v3  ;;  %v1299_v33 = vpop.f32.mrb[45].mxu0  ;;  %6698 = vmatmul.mubr.msk.bf16.vlgmr.msra.gmra.mrb[148].mxu1 %vm58_vm2, %v7912_v36 }
 0x182   :  { %v1348_v1 = vadd.f32 %v1299_v33, %v1122_v30  ;;  %v1301_v18 = vpop.f32.mrb[46].mxu0  ;;  %6702 = vmatpush3.bf16.msra.mxu1 %v4405_v20  ;;  %6703 = vmatprep.mubr.msk.bf16.mxu1 %vm6837_vm0, %v6834_v5  ;;  %v8068_v32 = vpop.permute.xlu1 %4956 }
 0x183   :  { %v8043_v2 = vadd.f32 %v1347_v53, %v7680_v50  ;;  %v1302_v52 = vpop.f32.mrb[47].mxu0  ;;  %6707 = vmatprep.subr.bf16.mxu1 %v6834_v5  ;;  %v8085_v61 = vpop.permute.xlu0 %5078  ;;  %v4849_v18 = vsel %vm62_vm1, %v4838_v13, 0 }
 0x184   :  { %v8050_v43 = vadd.f32 %v1348_v1, %v7684_v58  ;;  %v1338_v42 = vpop.f32.mrb[44].mxu1 }
 0x185   :  { %v1349_v0 = vadd.f32 %v1338_v42, %v1161_v37  ;;  %v6543_v3 = vpop.f32.mrb[45].mxu1  ;;  %6318 = vmatmul.mubr.msk.bf16.vlgmr.msra.gmra.mrb[152].mxu0 %vm58_vm2, %v7868_v16 }
 0x186   :  { %4527 = vmatpush1.bf16.msra.mxu0 %v4518_v41  ;;  %v1341_v50 = vpop.f32.mrb[46].mxu1  ;;  %4558 = vmatprep.mubr.bf16.mxu0 %v6836_v11  ;;  %v8079_v56 = vpop.permute.xlu1 %4932 }
 0x187   :  { %v8061_v30 = vadd.f32 %v1349_v0, %v7669_v49  ;;  %6323 = vmatprep.subr.msk.bf16.mxu0 %vm62_vm1, %v7988_v60  ;;  %v6544_v58 = vpop.f32.mrb[47].mxu1  ;;  %v8098_v35 = vpop.permute.xlu0 %5193 }
 0x188   :  { %v1450_v54 = vpop.f32.mrb[48].mxu0  ;;  %v4967_v58 = vsel %vm62_vm1, %v4960_v63, 0 }
 0x189   :  { %v1452_v12 = vpop.f32.mrb[49].mxu0  ;;  %6704 = vmatmul.mubr.msk.bf16.vlgmr.msra.gmra.mrb[152].mxu1 %vm58_vm2, %v7868_v16 }
 0x18a   :  { %v1454_v38 = vpop.f32.mrb[50].mxu0  ;;  %6708 = vmatpush3.bf16.msra.mxu1 %v4524_v21  ;;  %6709 = vmatprep.mubr.msk.bf16.mxu1 %vm6837_vm0, %v6834_v5 }
 0x18b   :  { %v1455_v49 = vpop.f32.mrb[51].mxu0  ;;  %6713 = vmatprep.subr.bf16.mxu1 %v6834_v5  ;;  %v8115_v1 = vpop.permute.xlu0 %5197 }
 0x18c   :  { %v1491_v10 = vpop.f32.mrb[48].mxu1 }
 0x18d   :  { %v6549_v60 = vpop.f32.mrb[49].mxu1  ;;  %6321 = vmatmul.mubr.msk.bf16.vlgmr.msra.gmra.mrb[156].mxu0 %vm58_vm2, %v7912_v36 }
 0x18e   :  { %4613 = vmatpush1.bf16.msra.mxu0 %v4399_v15  ;;  %v1494_v37 = vpop.f32.mrb[50].mxu1  ;;  %4644 = vmatprep.mubr.bf16.mxu0 %v6836_v11 }
 0x18f   :  { %6326 = vmatprep.subr.msk.bf16.mxu0 %vm62_vm1, %v4515_v26  ;;  %v6550_v16 = vpop.f32.mrb[51].mxu1  ;;  %v8126_v50 = vpop.permute.xlu0 %5294 }
 0x190   :  { %v1574_v27 = vpop.f32.mrb[52].mxu0 }
 0x191   :  { %v1576_v29 = vpop.f32.mrb[53].mxu0  ;;  %6710 = vmatmul.mubr.msk.bf16.vlgmr.msra.gmra.mrb[156].mxu1 %vm58_vm2, %v7912_v36  ;;  %v5077_v36 = vpop.permute.xlu1 %5076 }
 0x192   :  { %6714 = vmatpush3.bf16.msra.mxu1 %v4405_v20  ;;  %v1578_v14 = vpop.f32.mrb[54].mxu0  ;;  %6715 = vmatprep.mubr.msk.bf16.mxu1 %vm6837_vm0, %v6834_v5  ;;  %v4843_v20 = vsel %vm62_vm1, %v4836_v17, 0 }
 0x193   :  { %v1579_v45 = vpop.f32.mrb[55].mxu0  ;;  %6719 = vmatprep.subr.bf16.mxu1 %v6834_v5  ;;  %v8145_v37 = vpop.permute.xlu0 %5514 }
 0x194   :  { %v1615_v6 = vpop.f32.mrb[52].mxu1 }
 0x195   :  { %v6555_v59 = vpop.f32.mrb[53].mxu1  ;;  %6324 = vmatmul.mubr.msk.bf16.vlgmr.msra.gmra.mrb[160].mxu0 %vm58_vm2, %v7946_v44  ;;  %v5081_v24 = vpop.permute.xlu1 %5080 }
 0x196   :  { %4699 = vmatpush1.bf16.msra.mxu0 %v4518_v41  ;;  %v1618_v19 = vpop.f32.mrb[54].mxu1  ;;  %4730 = vmatprep.mubr.bf16.mxu0 %v6836_v11 }
 0x197   :  { %v6556_v15 = vpop.f32.mrb[55].mxu1  ;;  %6329 = vmatprep.subr.msk.bf16.mxu0 %vm62_vm1, %v4837_v55  ;;  %v5084_v19 = vsel %vm4835_vm9, %v8085_v61, %v5081_v24 }
 0x198   :  { %v1693_v57 = vpop.f32.mrb[56].mxu0 }
 0x199   :  { %v1694_v26 = vadd.f32 %v1693_v57, %v1450_v54  ;;  %v1695_v23 = vpop.f32.mrb[57].mxu0  ;;  %6716 = vmatmul.mubr.msk.bf16.vlgmr.msra.gmra.mrb[160].mxu1 %vm58_vm2, %v7946_v44  ;;  %v4961_v44 = vsel %vm4835_vm9, %v8036_v46, %v8068_v32  ;;  %v5196_v47 = vpop.permute.xlu1 %5195  ;;  %v4962_v46 = vsel %vm4835_vm9, %v8068_v32, %v8058_v25  ;;  %v5082_v32 = vsel %vm4835_vm9, %v8073_v62, %v5077_v36 }
 0x19a   :  { %v1696_v22 = vadd.f32 %v1695_v23, %v1452_v12  ;;  %6720 = vmatpush3.bf16.msra.mxu1 %v4524_v21  ;;  %v1697_v40 = vpop.f32.mrb[58].mxu0  ;;  %6721 = vmatprep.mubr.msk.bf16.mxu1 %vm6837_vm0, %v6834_v5  ;;  %v5086_v62 = vsel %vm62_vm1, %v5082_v32, 0  ;;  %v5202_v15 = vsel %vm4835_vm9, %v5196_v47, %v8115_v1  ;;  %v5092_v23 = vsel %vm62_vm1, %v5084_v19, 0 }
 0x19b   :  { %v1698_v8 = vpop.f32.mrb[59].mxu0  ;;  %6725 = vmatprep.subr.bf16.mxu1 %v6834_v5 }
 0x19c   :  { %v1734_v51 = vpop.f32.mrb[56].mxu1 }
 0x19d   :  { %v1735_v48 = vadd.f32 %v1734_v51, %v1491_v10  ;;  %v6561_v53 = vpop.f32.mrb[57].mxu1  ;;  %6327 = vmatmul.mubr.msk.bf16.vlgmr.msra.gmra.mrb[164].mxu0 %vm58_vm2, %v7976_v7  ;;  %v5200_v38 = vpop.permute.xlu1 %5199  ;;  %v4973_v10 = vsel %vm62_vm1, %v4962_v46, 0 }
 0x19e   :  { %4852 = vmatpush1.bf16.msra.mxu0 %v4843_v20  ;;  %v1737_v33 = vpop.f32.mrb[58].mxu1  ;;  %4883 = vmatprep.mubr.bf16.mxu0 %v6836_v11  ;;  %v5201_v20 = vsel %vm4835_vm9, %v8098_v35, %v5196_v47 }
 0x19f   :  { %v6562_v41 = vpop.f32.mrb[59].mxu1  ;;  %6332 = vmatprep.subr.msk.bf16.mxu0 %vm62_vm1, %v4961_v44  ;;  %v5205_v44 = vsel %vm62_vm1, %v5201_v20, 0  ;;  %v5203_v33 = vsel %vm4835_vm9, %v8115_v1, %v5200_v38  ;;  %v6177_v20 = vld [vmem:[%s8438_s4] sm:$0xff] }
 0x1a0   :  { %v1812_v39 = vpop.f32.mrb[60].mxu0  ;;  %v5211_v1 = vsel %vm62_vm1, %v5203_v33, 0  ;;  %6180 = vperm.xlu0 %6816, %v6177_v20  }
 0x1a1   :  { %v1813_v52 = vadd.f32 %v1812_v39, %v1574_v27  ;;  %v1814_v42 = vpop.f32.mrb[61].mxu0  ;;  %6722 = vmatmul.mubr.msk.bf16.vlgmr.msra.gmra.mrb[164].mxu1 %vm58_vm2, %v7976_v7  ;;  %v8135_v7 = vsel %vm4835_vm9, %v5077_v36, %v8085_v61 }
 0x1a2   :  { %v1815_v0 = vadd.f32 %v1814_v42, %v1576_v29  ;;  %6726 = vmatpush3.bf16.msra.mxu1 %v4849_v18  ;;  %v1816_v3 = vpop.f32.mrb[62].mxu0  ;;  %6727 = vmatprep.mubr.msk.bf16.mxu1 %vm6837_vm0, %v6834_v5  ;;  %v8149_v29 = vpop.permute.xlu1 %5380 }
 0x1a3   :  { %v1817_v21 = vpop.f32.mrb[63].mxu0  ;;  %6731 = vmatprep.subr.bf16.mxu1 %v6834_v5 }
 0x1a4   :  { %v1853_v34 = vpop.f32.mrb[60].mxu1 }
 0x1a5   :  { %v1854_v54 = vadd.f32 %v1853_v34, %v1615_v6  ;;  %v6567_v12 = vpop.f32.mrb[61].mxu1  ;;  %6330 = vmatmul.mubr.msk.bf16.vlgmr.msra.gmra.mrb[168].mxu0 %vm58_vm2, %v8007_v9 }
 0x1a6   :  { %v1856_v49 = vpop.f32.mrb[62].mxu1  ;;  %4976 = vmatpush1.bf16.msra.mxu0 %v4967_v58  ;;  %5007 = vmatprep.mubr.bf16.mxu0 %v6836_v11 }
 0x1a7   :  { %v6568_v60 = vpop.f32.mrb[63].mxu1  ;;  %6335 = vmatprep.subr.msk.bf16.mxu0 %vm62_vm1, %v8135_v7 }
 0x1a8   :  { %v1898_v25 = vpop.f32.mrb[64].mxu0 }
 0x1a9   :  { %v2031_v16 = vadd.f32 %v1898_v25, %v1694_v26  ;;  %v1900_v27 = vpop.f32.mrb[65].mxu0  ;;  %6728 = vmatmul.mubr.msk.bf16.vlgmr.msra.gmra.mrb[168].mxu1 %vm58_vm2, %v8007_v9  ;;  %v8168_v26 = vpop.permute.xlu0 %5518 }
 0x1aa   :  { %v2032_v14 = vadd.f32 %v1900_v27, %v1696_v22  ;;  %v1902_v45 = vpop.f32.mrb[66].mxu0  ;;  %6732 = vmatpush3.bf16.msra.mxu1 %v4973_v10  ;;  %6733 = vmatprep.mubr.msk.bf16.mxu1 %vm6837_vm0, %v6834_v5  ;;  %v8175_v22 = vpop.permute.xlu1 %5516 }
 0x1ab   :  { %v8154_v6 = vadd.f32 %v2031_v16, %v8010_v4  ;;  %v1903_v55 = vpop.f32.mrb[67].mxu0  ;;  %6737 = vmatprep.subr.bf16.mxu1 %v6834_v5  ;;  %v5524_v25 = vsel %vm5522_vm10, %v8175_v22, %v8168_v26  ;;  %v5523_v45 = vsel %vm5522_vm10, %v8145_v37, %v8175_v22 }
 0x1ac   :  { %v8159_v59 = vadd.f32 %v2032_v14, %v8015_v28  ;;  %v1939_v36 = vpop.f32.mrb[64].mxu1 }
 0x1ad   :  { %v2033_v17 = vadd.f32 %v1939_v36, %v1735_v48  ;;  %v6573_v57 = vpop.f32.mrb[65].mxu1  ;;  %6333 = vmatmul.mubr.msk.bf16.vlgmr.msra.gmra.mrb[172].mxu0 %vm58_vm2, %v8079_v56  ;;  %v8193_v18 = vpop.permute.xlu0 %5494 }
 0x1ae   :  { %v1942_v4 = vpop.f32.mrb[66].mxu1  ;;  %5095 = vmatpush1.bf16.msra.mxu0 %v5086_v62  ;;  %5126 = vmatprep.mubr.bf16.mxu0 %v6836_v11 }
 0x1af   :  { %v8171_v28 = vadd.f32 %v2033_v17, %v8029_v31  ;;  %v6574_v61 = vpop.f32.mrb[67].mxu1  ;;  %6338 = vmatprep.subr.msk.bf16.mxu0 %vm62_vm1, %v5202_v15  ;;  %v5530_v17 = vsel %vm62_vm1, %v5523_v45, 0 }
 0x1b0   :  { %v1984_v40 = vpop.f32.mrb[68].mxu0 }
 0x1b1   :  { %v2034_v8 = vadd.f32 %v1984_v40, %v1813_v52  ;;  %v1986_v24 = vpop.f32.mrb[69].mxu0  ;;  %6734 = vmatmul.mubr.msk.bf16.vlgmr.msra.gmra.mrb[172].mxu1 %vm58_vm2, %v8079_v56  ;;  %v8208_v3 = vpop.permute.xlu0 %5641 }
 0x1b2   :  { %v2035_v13 = vadd.f32 %v1986_v24, %v1815_v0  ;;  %v1988_v51 = vpop.f32.mrb[70].mxu0  ;;  %6738 = vmatpush3.bf16.msra.mxu1 %v5092_v23  ;;  %6739 = vmatprep.mubr.msk.bf16.mxu1 %vm6837_vm0, %v6834_v5 }
 0x1b3   :  { %v8184_v31 = vadd.f32 %v2034_v8, %v8043_v2  ;;  %v1989_v48 = vpop.f32.mrb[71].mxu0  ;;  %6743 = vmatprep.subr.bf16.mxu1 %v6834_v5  ;;  %v5521_v2 = vpop.permute.xlu1 %5520 }
 0x1b4   :  { %v8189_v35 = vadd.f32 %v2035_v13, %v8050_v43  ;;  %v2025_v53 = vpop.f32.mrb[68].mxu1  ;;  %v5525_v37 = vsel %vm5522_vm10, %v8168_v26, %v5521_v2 }
 0x1b5   :  { %v2036_v41 = vadd.f32 %v2025_v53, %v1854_v54  ;;  %v6579_v63 = vpop.f32.mrb[69].mxu1  ;;  %6336 = vmatmul.mubr.msk.bf16.vlgmr.msra.gmra.mrb[176].mxu0 %vm58_vm2, %v8007_v9  ;;  %v8215_v54 = vpop.permute.xlu0 %5645  ;;  %v5536_v26 = vsel %vm62_vm1, %v5525_v37, 0 }
 0x1b6   :  { %5214 = vmatpush1.bf16.msra.mxu0 %v5205_v44  ;;  %v2028_v39 = vpop.f32.mrb[70].mxu1  ;;  %5245 = vmatprep.mubr.bf16.mxu0 %v6836_v11 }
 0x1b7   :  { %v8199_v52 = vadd.f32 %v2036_v41, %v8061_v30  ;;  %6341 = vmatprep.subr.msk.bf16.mxu0 %vm62_vm1, %v8135_v7  ;;  %v6580_v43 = vpop.f32.mrb[71].mxu1  ;;  %v5640_v58 = vpop.permute.xlu1 %5639 }
 0x1b8   :  { %v2137_v42 = vpop.f32.mrb[72].mxu0  ;;  %v5647_v13 = vsel %vm5522_vm10, %v5640_v58, %v8208_v3 }
 0x1b9   :  { %v2139_v47 = vpop.f32.mrb[73].mxu0  ;;  %6740 = vmatmul.mubr.msk.bf16.vlgmr.msra.gmra.mrb[176].mxu1 %vm58_vm2, %v8007_v9  ;;  %v5762_v16 = vpop.permute.xlu0 %5761  ;;  %v5654_v63 = vsel %vm62_vm1, %v5647_v13, 0 }
 0x1ba   :  { %v2141_v0 = vpop.f32.mrb[74].mxu0  ;;  %6744 = vmatpush3.bf16.msra.mxu1 %v5211_v1  ;;  %6745 = vmatprep.mubr.msk.bf16.mxu1 %vm6837_vm0, %v6834_v5 }
 0x1bb   :  { %v2142_v30 = vpop.f32.mrb[75].mxu0  ;;  %6749 = vmatprep.subr.bf16.mxu1 %v6834_v5  ;;  %v5644_v38 = vpop.permute.xlu1 %5643 }
 0x1bc   :  { %v2178_v21 = vpop.f32.mrb[72].mxu1  ;;  %v5649_v43 = vsel %vm5522_vm10, %v5644_v38, %v8215_v54 }
 0x1bd   :  { %v6585_v46 = vpop.f32.mrb[73].mxu1  ;;  %6339 = vmatmul.mubr.msk.bf16.vlgmr.msra.gmra.mrb[180].mxu0 %vm58_vm2, %v8079_v56  ;;  %v5766_v61 = vpop.permute.xlu0 %5765 }
 0x1be   :  { %5300 = vmatpush1.bf16.msra.mxu0 %v5086_v62  ;;  %v2181_v34 = vpop.f32.mrb[74].mxu1  ;;  %5331 = vmatprep.mubr.bf16.mxu0 %v6836_v11 }
 0x1bf   :  { %6344 = vmatprep.subr.msk.bf16.mxu0 %vm62_vm1, %v5202_v15  ;;  %v6586_v9 = vpop.f32.mrb[75].mxu1  ;;  %v8229_v14 = vpop.permute.xlu1 %5619 }
 0x1c0   :  { %v2261_v7 = vpop.f32.mrb[76].mxu0 }
 0x1c1   :  { %v2263_v12 = vpop.f32.mrb[77].mxu0  ;;  %6746 = vmatmul.mubr.msk.bf16.vlgmr.msra.gmra.mrb[180].mxu1 %vm58_vm2, %v8079_v56  ;;  %v5881_v41 = vpop.permute.xlu0 %5880 }
 0x1c2   :  { %6750 = vmatpush3.bf16.msra.mxu1 %v5092_v23  ;;  %v2265_v49 = vpop.f32.mrb[78].mxu0  ;;  %6751 = vmatprep.mubr.msk.bf16.mxu1 %vm6837_vm0, %v6834_v5  ;;  %v5648_v23 = vsel %vm5522_vm10, %v8208_v3, %v5644_v38  ;;  %v5660_v3 = vsel %vm62_vm1, %v5649_v43, 0 }
 0x1c3   :  { %v2266_v10 = vpop.f32.mrb[79].mxu0  ;;  %6755 = vmatprep.subr.bf16.mxu1 %v6834_v5  ;;  %v5764_v40 = vpop.permute.xlu1 %5763 }
 0x1c4   :  { %v2302_v60 = vpop.f32.mrb[76].mxu1 }
 0x1c5   :  { %v6591_v32 = vpop.f32.mrb[77].mxu1  ;;  %6342 = vmatmul.mubr.msk.bf16.vlgmr.msra.gmra.mrb[184].mxu0 %vm58_vm2, %v8126_v50  ;;  %v5885_v46 = vpop.permute.xlu0 %5884 }
 0x1c6   :  { %5386 = vmatpush1.bf16.msra.mxu0 %v5205_v44  ;;  %v2305_v56 = vpop.f32.mrb[78].mxu1  ;;  %5417 = vmatprep.mubr.bf16.mxu0 %v6836_v11 }
 0x1c7   :  { %v6592_v27 = vpop.f32.mrb[79].mxu1  ;;  %6347 = vmatprep.subr.msk.bf16.mxu0 %vm62_vm1, %v5524_v25  ;;  %v5768_v39 = vpop.permute.xlu1 %5767 }
 0x1c8   :  { %v2380_v62 = vpop.f32.mrb[80].mxu0  ;;  %v5771_v32 = vsel %vm5522_vm10, %v5766_v61, %v5768_v39 }
 0x1c9   :  { %v2381_v55 = vadd.f32 %v2380_v62, %v2137_v42  ;;  %v2382_v36 = vpop.f32.mrb[81].mxu0  ;;  %6752 = vmatmul.mubr.msk.bf16.vlgmr.msra.gmra.mrb[184].mxu1 %vm58_vm2, %v8126_v50  ;;  %v8263_v42 = vsel %vm5522_vm10, %v5764_v40, %v5766_v61 }
 0x1ca   :  { %v2383_v19 = vadd.f32 %v2382_v36, %v2139_v47  ;;  %6756 = vmatpush3.bf16.msra.mxu1 %v5211_v1  ;;  %v2384_v15 = vpop.f32.mrb[82].mxu0  ;;  %6757 = vmatprep.mubr.msk.bf16.mxu1 %vm6837_vm0, %v6834_v5 }
 0x1cb   :  { %v2385_v57 = vpop.f32.mrb[83].mxu0  ;;  %6761 = vmatprep.subr.bf16.mxu1 %v6834_v5 }
 0x1cc   :  { %v2421_v4 = vpop.f32.mrb[80].mxu1 }
 0x1cd   :  { %v2422_v50 = vadd.f32 %v2421_v4, %v2178_v21  ;;  %v6597_v22 = vpop.f32.mrb[81].mxu1  ;;  %6345 = vmatmul.mubr.msk.bf16.vlgmr.msra.gmra.mrb[188].mxu0 %vm58_vm2, %v8149_v29  ;;  %v5769_v21 = vsel %vm5522_vm10, %v5762_v16, %v5764_v40 }
 0x1ce   :  { %5539 = vmatpush1.bf16.msra.mxu0 %v5530_v17  ;;  %v2424_v8 = vpop.f32.mrb[82].mxu1  ;;  %5570 = vmatprep.mubr.bf16.mxu0 %v6836_v11  ;;  %v5773_v49 = vsel %vm62_vm1, %v5769_v21, 0 }
 0x1cf   :  { %v6598_v24 = vpop.f32.mrb[83].mxu1  ;;  %6350 = vmatprep.subr.msk.bf16.mxu0 %vm62_vm1, %v5648_v23 }
 0x1d0   :  { %v2499_v51 = vpop.f32.mrb[84].mxu0 }
 0x1d1   :  { %v2500_v44 = vadd.f32 %v2499_v51, %v2261_v7  ;;  %v2501_v48 = vpop.f32.mrb[85].mxu0  ;;  %6758 = vmatmul.mubr.msk.bf16.vlgmr.msra.gmra.mrb[188].mxu1 %vm58_vm2, %v8149_v29  ;;  %v5883_v7 = vpop.permute.xlu1 %5882 }
 0x1d2   :  { %v2502_v53 = vadd.f32 %v2501_v48, %v2263_v12  ;;  %6762 = vmatpush3.bf16.msra.mxu1 %v5536_v26  ;;  %v2503_v33 = vpop.f32.mrb[86].mxu0  ;;  %6763 = vmatprep.mubr.msk.bf16.mxu1 %vm6837_vm0, %v6834_v5  ;;  %v5889_v56 = vsel %vm5522_vm10, %v5883_v7, %v5885_v46  ;;  %v5888_v36 = vsel %vm5522_vm10, %v5881_v41, %v5883_v7 }
 0x1d3   :  { %v2504_v2 = vpop.f32.mrb[87].mxu0  ;;  %6767 = vmatprep.subr.bf16.mxu1 %v6834_v5  ;;  %v5892_v4 = vsel %vm62_vm1, %v5888_v36, 0 }
 0x1d4   :  { %v2540_v1 = vpop.f32.mrb[84].mxu1  ;;  %v5982_v2 = vpop.permute.xlu0 %5981 }
 0x1d5   :  { %v2541_v29 = vadd.f32 %v2540_v1, %v2302_v60  ;;  %v6603_v47 = vpop.f32.mrb[85].mxu1  ;;  %6348 = vmatmul.mubr.msk.bf16.vlgmr.msra.gmra.mrb[192].mxu0 %vm58_vm2, %v8193_v18  ;;  %v5887_v17 = vpop.permute.xlu1 %5886 }
 0x1d6   :  { %v2543_v0 = vpop.f32.mrb[86].mxu1  ;;  %5663 = vmatpush1.bf16.msra.mxu0 %v5654_v63  ;;  %5694 = vmatprep.mubr.bf16.mxu0 %v6836_v11  ;;  %v5890_v22 = vsel %vm5522_vm10, %v5885_v46, %v5887_v17 }
 0x1d7   :  { %v6604_v30 = vpop.f32.mrb[87].mxu1  ;;  %6353 = vmatprep.subr.msk.bf16.mxu0 %vm62_vm1, %v8263_v42  ;;  %v5898_v26 = vsel %vm62_vm1, %v5890_v22, 0 }
 0x1d8   :  { %v2585_v58 = vpop.f32.mrb[88].mxu0 }
 0x1d9   :  { %v2718_v34 = vadd.f32 %v2585_v58, %v2381_v55  ;;  %v2587_v9 = vpop.f32.mrb[89].mxu0  ;;  %6764 = vmatmul.mubr.msk.bf16.vlgmr.msra.gmra.mrb[192].mxu1 %vm58_vm2, %v8193_v18  ;;  %v6068_v58 = vpop.permute.xlu1 %6067 }
 0x1da   :  { %v2719_v54 = vadd.f32 %v2587_v9, %v2383_v19  ;;  %v2589_v12 = vpop.f32.mrb[90].mxu0  ;;  %6768 = vmatpush3.bf16.msra.mxu1 %v5660_v3  ;;  %6769 = vmatprep.mubr.msk.bf16.mxu1 %vm6837_vm0, %v6834_v5 }
 0x1db   :  { %v8277_v38 = vadd.f32 %v2718_v34, %v8154_v6  ;;  %v2590_v10 = vpop.f32.mrb[91].mxu0  ;;  %6773 = vmatprep.subr.bf16.mxu1 %v6834_v5 }
 0x1dc   :  { %v8282_v60 = vadd.f32 %v2719_v54, %v8159_v59  ;;  %v2626_v25 = vpop.f32.mrb[88].mxu1  ;;  %v5779_v59 = vsel %vm62_vm1, %v5771_v32, 0 }
 0x1dd   :  { %v2720_v16 = vadd.f32 %v2626_v25, %v2422_v50  ;;  %v6609_v27 = vpop.f32.mrb[89].mxu1  ;;  %6351 = vmatmul.mubr.msk.bf16.vlgmr.msra.gmra.mrb[196].mxu0 %vm58_vm2, %v8229_v14 }
 0x1de   :  { %v2629_v6 = vpop.f32.mrb[90].mxu1  ;;  %5782 = vmatpush1.bf16.msra.mxu0 %v5773_v49  ;;  %5813 = vmatprep.mubr.bf16.mxu0 %v6836_v11 }
 0x1df   :  { %v8290_v45 = vadd.f32 %v2720_v16, %v8171_v28  ;;  %v6610_v62 = vpop.f32.mrb[91].mxu1  ;;  %6356 = vmatprep.subr.msk.bf16.mxu0 %vm62_vm1, %v5889_v56 }
 0x1e0   :  { %v2671_v55 = vpop.f32.mrb[92].mxu0 }
 0x1e1   :  { %v2721_v19 = vadd.f32 %v2671_v55, %v2500_v44  ;;  %v2673_v15 = vpop.f32.mrb[93].mxu0  ;;  %6770 = vmatmul.mubr.msk.bf16.vlgmr.msra.gmra.mrb[196].mxu1 %vm58_vm2, %v8229_v14 }
 0x1e2   :  { %v2722_v57 = vadd.f32 %v2673_v15, %v2502_v53  ;;  %v2675_v37 = vpop.f32.mrb[94].mxu0  ;;  %6774 = vmatpush3.bf16.msra.mxu1 %v5779_v59  ;;  %6775 = vmatprep.mubr.msk.bf16.mxu1 %vm6837_vm0, %v6834_v5 }
 0x1e3   :  { %v8300_v28 = vadd.f32 %v2721_v19, %v8184_v31  ;;  %v2676_v23 = vpop.f32.mrb[95].mxu0  ;;  %6779 = vmatprep.subr.bf16.mxu1 %v6834_v5 }
 0x1e4   :  { %v8305_v61 = vadd.f32 %v2722_v57, %v8189_v35  ;;  %v2712_v50 = vpop.f32.mrb[92].mxu1 }
 0x1e5   :  { %v2723_v40 = vadd.f32 %v2712_v50, %v2541_v29  ;;  %v6615_v20 = vpop.f32.mrb[93].mxu1  ;;  %6354 = vmatmul.mubr.msk.bf16.vlgmr.msra.gmra.mrb[200].mxu0 %vm58_vm2, %v8193_v18 }
 0x1e6   :  { %5901 = vmatpush1.bf16.msra.mxu0 %v5892_v4  ;;  %v2715_v8 = vpop.f32.mrb[94].mxu1  ;;  %5932 = vmatprep.mubr.bf16.mxu0 %v6836_v11 }
 0x1e7   :  { %v8312_v31 = vadd.f32 %v2723_v40, %v8199_v52  ;;  %6359 = vmatprep.subr.msk.bf16.mxu0 %vm62_vm1, %v8263_v42  ;;  %v6616_v35 = vpop.f32.mrb[95].mxu1 }
 0x1e8   :  { %v2824_v24 = vpop.f32.mrb[96].mxu0 }
 0x1e9   :  { %v2826_v13 = vpop.f32.mrb[97].mxu0  ;;  %6776 = vmatmul.mubr.msk.bf16.vlgmr.msra.gmra.mrb[200].mxu1 %vm58_vm2, %v8193_v18 }
 0x1ea   :  { %v2828_v51 = vpop.f32.mrb[98].mxu0  ;;  %6780 = vmatpush3.bf16.msra.mxu1 %v5898_v26  ;;  %6781 = vmatprep.mubr.msk.bf16.mxu1 %vm6837_vm0, %v6834_v5 }
 0x1eb   :  { %v2829_v44 = vpop.f32.mrb[99].mxu0  ;;  %6785 = vmatprep.subr.bf16.mxu1 %v6834_v5 }
 0x1ec   :  { %v2865_v52 = vpop.f32.mrb[96].mxu1 }
 0x1ed   :  { %v6621_v48 = vpop.f32.mrb[97].mxu1  ;;  %6357 = vmatmul.mubr.msk.bf16.vlgmr.msra.gmra.mrb[204].mxu0 %vm58_vm2, %v8229_v14 }
 0x1ee   :  { %5987 = vmatpush1.bf16.msra.mxu0 %v5773_v49  ;;  %v2868_v53 = vpop.f32.mrb[98].mxu1  ;;  %6018 = vmatprep.mubr.bf16.mxu0 %v6836_v11 }
 0x1ef   :  { %6362 = vmatprep.subr.msk.bf16.mxu0 %vm62_vm1, %v5889_v56  ;;  %v6622_v18 = vpop.f32.mrb[99].mxu1 }
 0x1f0   :  { %v2948_v33 = vpop.f32.mrb[100].mxu0 }
 0x1f1   :  { %v2950_v41 = vpop.f32.mrb[101].mxu0  ;;  %6782 = vmatmul.mubr.msk.bf16.vlgmr.msra.gmra.mrb[204].mxu1 %vm58_vm2, %v8229_v14 }
 0x1f2   :  { %6786 = vmatpush3.bf16.msra.mxu1 %v5779_v59  ;;  %v2952_v63 = vpop.f32.mrb[102].mxu0  ;;  %6787 = vmatprep.mubr.msk.bf16.mxu1 %vm6837_vm0, %v6834_v5 }
 0x1f3   :  { %v2953_v39 = vpop.f32.mrb[103].mxu0  ;;  %6791 = vmatprep.subr.bf16.mxu1 %v6834_v5 }
 0x1f4   :  { %v2989_v43 = vpop.f32.mrb[100].mxu1 }
 0x1f5   :  { %v6627_v1 = vpop.f32.mrb[101].mxu1  ;;  %6360 = vmatmul.mubr.msk.bf16.vlgmr.msra.gmra.mrb[208].mxu0 %vm58_vm2, %v5982_v2 }
 0x1f6   :  { %6073 = vmatpush1.bf16.msra.mxu0 %v5892_v4  ;;  %v2992_v42 = vpop.f32.mrb[102].mxu1  ;;  %6104 = vmatprep.mubr.bf16.mxu0 %v6836_v11 }
 0x1f7   :  { %v6628_v29 = vpop.f32.mrb[103].mxu1 }
 0x1f8   :  { %v3067_v47 = vpop.f32.mrb[104].mxu0 }
 0x1f9   :  { %v3068_v14 = vadd.f32 %v3067_v47, %v2824_v24  ;;  %v3069_v0 = vpop.f32.mrb[105].mxu0  ;;  %6788 = vmatmul.mubr.msk.bf16.vlgmr.msra.gmra.mrb[208].mxu1 %vm58_vm2, %v5982_v2 }
 0x1fa   :  { %v3070_v3 = vadd.f32 %v3069_v0, %v2826_v13  ;;  %6792 = vmatpush3.bf16.msra.mxu1 %v5898_v26  ;;  %v3071_v30 = vpop.f32.mrb[106].mxu0  ;;  %6793 = vmatprep.mubr.msk.bf16.mxu1 %vm6837_vm0, %v6834_v5 }
 0x1fb   :  { %v3072_v21 = vpop.f32.mrb[107].mxu0 }
 0x1fc   :  { %v3108_v46 = vpop.f32.mrb[104].mxu1 }
 0x1fd   :  { %v3109_v34 = vadd.f32 %v3108_v46, %v2865_v52  ;;  %v6633_v9 = vpop.f32.mrb[105].mxu1  ;;  %6363 = vmatmul.mubr.msk.bf16.vlgmr.msra.gmra.mrb[212].mxu0 %vm58_vm2, %v6068_v58 }
 0x1fe   :  { %v3111_v11 = vpop.f32.mrb[106].mxu1 }
 0x1ff   :  { %v6634_v7 = vpop.f32.mrb[107].mxu1 }
 0x200   :  { %v3186_v54 = vpop.f32.mrb[108].mxu0 }
 0x201   :  { %v3187_v12 = vadd.f32 %v3186_v54, %v2948_v33  ;;  %v3188_v49 = vpop.f32.mrb[109].mxu0  ;;  %6794 = vmatmul.mubr.msk.bf16.vlgmr.msra.gmra.mrb[212].mxu1 %vm58_vm2, %v6068_v58 }
 0x202   :  { %v3189_v10 = vadd.f32 %v3188_v49, %v2950_v41  ;;  %v3190_v25 = vpop.f32.mrb[110].mxu0 }
 0x203   :  { %v3191_v32 = vpop.f32.mrb[111].mxu0 }
 0x204   :  { %v3227_v56 = vpop.f32.mrb[108].mxu1 }
 0x205   :  { %v3228_v16 = vadd.f32 %v3227_v56, %v2989_v43  ;;  %v6639_v27 = vpop.f32.mrb[109].mxu1 }
 0x206   :  { %v3230_v5 = vpop.f32.mrb[110].mxu1 }
 0x207   :  { %v6640_v6 = vpop.f32.mrb[111].mxu1 }
 0x208   :  { %v3272_v59 = vpop.f32.mrb[112].mxu0 }
 0x209   :  { %v3405_v62 = vadd.f32 %v3272_v59, %v3068_v14  ;;  %v3274_v55 = vpop.f32.mrb[113].mxu0 }
 0x20a   :  { %v3406_v36 = vadd.f32 %v3274_v55, %v3070_v3  ;;  %v3276_v19 = vpop.f32.mrb[114].mxu0 }
 0x20b   :  { %v8339_v15 = vadd.f32 %v3405_v62, %v8277_v38  ;;  %v3277_v17 = vpop.f32.mrb[115].mxu0 }
 0x20c   :  { %v8342_v57 = vadd.f32 %v3406_v36, %v8282_v60  ;;  %v3313_v37 = vpop.f32.mrb[112].mxu1 }
 0x20d   :  { %v3407_v4 = vadd.f32 %v3313_v37, %v3109_v34  ;;  %v6645_v23 = vpop.f32.mrb[113].mxu1 }
 0x20e   :  { %v3316_v50 = vpop.f32.mrb[114].mxu1 }
 0x20f   :  { %v8345_v22 = vadd.f32 %v3407_v4, %v8290_v45  ;;  %v6646_v40 = vpop.f32.mrb[115].mxu1 }
 0x210   :  { %v3358_v20 = vpop.f32.mrb[116].mxu0 }
 0x211   :  { %v3408_v8 = vadd.f32 %v3358_v20, %v3187_v12  ;;  %v3360_v35 = vpop.f32.mrb[117].mxu0 }
 0x212   :  { %v3409_v26 = vadd.f32 %v3360_v35, %v3189_v10  ;;  %v3362_v24 = vpop.f32.mrb[118].mxu0 }
 0x213   :  { %v8348_v38 = vadd.f32 %v3408_v8, %v8300_v28  ;;  %v3363_v13 = vpop.f32.mrb[119].mxu0 }
 0x214   :  { %v8351_v60 = vadd.f32 %v3409_v26, %v8305_v61  ;;  %v3399_v51 = vpop.f32.mrb[116].mxu1 }
 0x215   :  { %v3410_v44 = vadd.f32 %v3399_v51, %v3228_v16  ;;  %v6651_v52 = vpop.f32.mrb[117].mxu1 }
 0x216   :  { %v3402_v48 = vpop.f32.mrb[118].mxu1 }
 0x217   :  { %v8354_v45 = vadd.f32 %v3410_v44, %v8312_v31  ;;  %v6652_v53 = vpop.f32.mrb[119].mxu1 }
 0x218   :  { %v3511_v18 = vpop.f32.mrb[120].mxu0 }
 0x219   :  { %v3513_v33 = vpop.f32.mrb[121].mxu0 }
 0x21a   :  { %v3515_v41 = vpop.f32.mrb[122].mxu0 }
 0x21b   :  { %v3516_v63 = vpop.f32.mrb[123].mxu0 }
 0x21c   :  { %v3552_v2 = vpop.f32.mrb[120].mxu1 }
 0x21d   :  { %v6657_v39 = vpop.f32.mrb[121].mxu1 }
 0x21e   :  { %v3555_v28 = vpop.f32.mrb[122].mxu1 }
 0x21f   :  { %v6658_v43 = vpop.f32.mrb[123].mxu1 }
 0x220   :  { %v3635_v1 = vpop.f32.mrb[124].mxu0 }
 0x221   :  { %v3637_v42 = vpop.f32.mrb[125].mxu0 }
 0x222   :  { %v3639_v61 = vpop.f32.mrb[126].mxu0 }
 0x223   :  { %v3640_v29 = vpop.f32.mrb[127].mxu0 }
 0x224   :  { %v3676_v47 = vpop.f32.mrb[124].mxu1 }
 0x225   :  { %v6663_v14 = vpop.f32.mrb[125].mxu1 }
 0x226   :  { %v3679_v0 = vpop.f32.mrb[126].mxu1 }
 0x227   :  { %v6664_v3 = vpop.f32.mrb[127].mxu1 }
 0x228   :  { %v3754_v30 = vpop.f32.mrb[128].mxu0 }
 0x229   :  { %v3755_v31 = vadd.f32 %v3754_v30, %v3511_v18  ;;  %v3756_v58 = vpop.f32.mrb[129].mxu0 }
 0x22a   :  { %v3757_v21 = vadd.f32 %v3756_v58, %v3513_v33  ;;  %v3758_v46 = vpop.f32.mrb[130].mxu0 }
 0x22b   :  { %v3759_v34 = vpop.f32.mrb[131].mxu0 }
 0x22c   :  { %v3795_v9 = vpop.f32.mrb[128].mxu1 }
 0x22d   :  { %v3796_v11 = vadd.f32 %v3795_v9, %v3552_v2  ;;  %v6669_v7 = vpop.f32.mrb[129].mxu1 }
 0x22e   :  { %v3798_v54 = vpop.f32.mrb[130].mxu1 }
 0x22f   :  { %v6670_v12 = vpop.f32.mrb[131].mxu1 }
 0x230   :  { %v3873_v49 = vpop.f32.mrb[132].mxu0 }
 0x231   :  { %v3874_v10 = vadd.f32 %v3873_v49, %v3635_v1  ;;  %v3875_v25 = vpop.f32.mrb[133].mxu0 }
 0x232   :  { %v3876_v32 = vadd.f32 %v3875_v25, %v3637_v42  ;;  %v3877_v56 = vpop.f32.mrb[134].mxu0 }
 0x233   :  { %v3878_v16 = vpop.f32.mrb[135].mxu0 }
 0x234   :  { %v3914_v27 = vpop.f32.mrb[132].mxu1 }
 0x235   :  { %v3915_v5 = vadd.f32 %v3914_v27, %v3676_v47  ;;  %v6675_v6 = vpop.f32.mrb[133].mxu1 }
 0x236   :  { %v3917_v59 = vpop.f32.mrb[134].mxu1 }
 0x237   :  { %v6676_v62 = vpop.f32.mrb[135].mxu1 }
 0x238   :  { %v3959_v55 = vpop.f32.mrb[136].mxu0 }
 0x239   :  { %v4092_v36 = vadd.f32 %v3959_v55, %v3755_v31  ;;  %v3961_v19 = vpop.f32.mrb[137].mxu0 }
 0x23a   :  { %v4093_v17 = vadd.f32 %v3961_v19, %v3757_v21  ;;  %v3963_v37 = vpop.f32.mrb[138].mxu0 }
 0x23b   :  { %v8357_v4 = vadd.f32 %v4092_v36, %v8339_v15  ;;  %v3964_v23 = vpop.f32.mrb[139].mxu0 }
 0x23c   :  { %v8360_v50 = vadd.f32 %v4093_v17, %v8342_v57  ;;  %v4000_v40 = vpop.f32.mrb[136].mxu1 }
 0x23d   :  { %v4094_v20 = vadd.f32 %v4000_v40, %v3796_v11  ;;  %v6681_v8 = vpop.f32.mrb[137].mxu1 }
 0x23e   :  { %v4003_v35 = vpop.f32.mrb[138].mxu1 }
 0x23f   :  { %v8363_v26 = vadd.f32 %v4094_v20, %v8345_v22  ;;  %v6682_v24 = vpop.f32.mrb[139].mxu1 }
 0x240   :  { %v4045_v13 = vpop.f32.mrb[140].mxu0 }
 0x241   :  { %v4095_v51 = vadd.f32 %v4045_v13, %v3874_v10  ;;  %v4047_v44 = vpop.f32.mrb[141].mxu0 }
 0x242   :  { %v4096_v52 = vadd.f32 %v4047_v44, %v3876_v32  ;;  %v4049_v48 = vpop.f32.mrb[142].mxu0 }
 0x243   :  { %v8366_v15 = vadd.f32 %v4095_v51, %v8348_v38  ;;  %v4050_v53 = vpop.f32.mrb[143].mxu0 }
 0x244   :  { %v8369_v57 = vadd.f32 %v4096_v52, %v8351_v60  ;;  %v4086_v18 = vpop.f32.mrb[140].mxu1 }
 0x245   :  { %v4097_v33 = vadd.f32 %v4086_v18, %v3915_v5  ;;  %v6687_v41 = vpop.f32.mrb[141].mxu1 }
 0x246   :  { %v4089_v63 = vpop.f32.mrb[142].mxu1 }
 0x247   :  { %v8372_v22 = vadd.f32 %v4097_v33, %v8354_v45  ;;  %v6688_v2 = vpop.f32.mrb[143].mxu1 }
 0x248   :  { %v4198_v39 = vpop.f32.mrb[144].mxu0 }
 0x249   :  { %v4200_v28 = vpop.f32.mrb[145].mxu0 }
 0x24a   :  { %v4202_v43 = vpop.f32.mrb[146].mxu0 }
 0x24b   :  { %v4203_v1 = vpop.f32.mrb[147].mxu0 }
 0x24c   :  { %v4239_v42 = vpop.f32.mrb[144].mxu1 }
 0x24d   :  { %v6693_v61 = vpop.f32.mrb[145].mxu1 }
 0x24e   :  { %v4242_v38 = vpop.f32.mrb[146].mxu1 }
 0x24f   :  { %v6694_v29 = vpop.f32.mrb[147].mxu1 }
 0x250   :  { %v4322_v47 = vpop.f32.mrb[148].mxu0 }
 0x251   :  { %v4324_v14 = vpop.f32.mrb[149].mxu0 }
 0x252   :  { %v4326_v60 = vpop.f32.mrb[150].mxu0 }
 0x253   :  { %v4327_v0 = vpop.f32.mrb[151].mxu0 }
 0x254   :  { %v4363_v3 = vpop.f32.mrb[148].mxu1 }
 0x255   :  { %v6699_v30 = vpop.f32.mrb[149].mxu1 }
 0x256   :  { %v4366_v31 = vpop.f32.mrb[150].mxu1 }
 0x257   :  { %v6700_v58 = vpop.f32.mrb[151].mxu1 }
 0x258   :  { %v4441_v21 = vpop.f32.mrb[152].mxu0 }
 0x259   :  { %v4442_v45 = vadd.f32 %v4441_v21, %v4198_v39  ;;  %v4443_v46 = vpop.f32.mrb[153].mxu0 }
 0x25a   :  { %v4444_v34 = vadd.f32 %v4443_v46, %v4200_v28  ;;  %v4445_v9 = vpop.f32.mrb[154].mxu0 }
 0x25b   :  { %v4446_v11 = vpop.f32.mrb[155].mxu0 }
 0x25c   :  { %v4482_v7 = vpop.f32.mrb[152].mxu1 }
 0x25d   :  { %v4483_v54 = vadd.f32 %v4482_v7, %v4239_v42  ;;  %v6705_v12 = vpop.f32.mrb[153].mxu1 }
 0x25e   :  { %v4485_v49 = vpop.f32.mrb[154].mxu1 }
 0x25f   :  { %v6706_v10 = vpop.f32.mrb[155].mxu1 }
 0x260   :  { %v4560_v25 = vpop.f32.mrb[156].mxu0 }
 0x261   :  { %v4561_v32 = vadd.f32 %v4560_v25, %v4322_v47  ;;  %v4562_v56 = vpop.f32.mrb[157].mxu0 }
 0x262   :  { %v4563_v16 = vadd.f32 %v4562_v56, %v4324_v14  ;;  %v4564_v27 = vpop.f32.mrb[158].mxu0 }
 0x263   :  { %v4565_v5 = vpop.f32.mrb[159].mxu0 }
 0x264   :  { %v4601_v6 = vpop.f32.mrb[156].mxu1 }
 0x265   :  { %v4602_v59 = vadd.f32 %v4601_v6, %v4363_v3  ;;  %v6711_v62 = vpop.f32.mrb[157].mxu1 }
 0x266   :  { %v4604_v55 = vpop.f32.mrb[158].mxu1 }
 0x267   :  { %v6712_v36 = vpop.f32.mrb[159].mxu1 }
 0x268   :  { %v4646_v19 = vpop.f32.mrb[160].mxu0 }
 0x269   :  { %v4779_v17 = vadd.f32 %v4646_v19, %v4442_v45  ;;  %v4648_v37 = vpop.f32.mrb[161].mxu0 }
 0x26a   :  { %v4780_v23 = vadd.f32 %v4648_v37, %v4444_v34  ;;  %v4650_v40 = vpop.f32.mrb[162].mxu0 }
 0x26b   :  { %v8375_v20 = vadd.f32 %v4779_v17, %v8357_v4  ;;  %v4651_v8 = vpop.f32.mrb[163].mxu0 }
 0x26c   :  { %v8378_v35 = vadd.f32 %v4780_v23, %v8360_v50  ;;  %v4687_v24 = vpop.f32.mrb[160].mxu1 }
 0x26d   :  { %v4781_v13 = vadd.f32 %v4687_v24, %v4483_v54  ;;  %v6717_v51 = vpop.f32.mrb[161].mxu1 }
 0x26e   :  { %v4690_v44 = vpop.f32.mrb[162].mxu1 }
 0x26f   :  { %v8381_v52 = vadd.f32 %v4781_v13, %v8363_v26  ;;  %v6718_v48 = vpop.f32.mrb[163].mxu1 }
 0x270   :  { %v4732_v53 = vpop.f32.mrb[164].mxu0 }
 0x271   :  { %v4782_v18 = vadd.f32 %v4732_v53, %v4561_v32  ;;  %v4734_v33 = vpop.f32.mrb[165].mxu0 }
 0x272   :  { %v4783_v41 = vadd.f32 %v4734_v33, %v4563_v16  ;;  %v4736_v63 = vpop.f32.mrb[166].mxu0 }
 0x273   :  { %v8384_v4 = vadd.f32 %v4782_v18, %v8366_v15  ;;  %v4737_v2 = vpop.f32.mrb[167].mxu0 }
 0x274   :  { %v8387_v50 = vadd.f32 %v4783_v41, %v8369_v57  ;;  %v4773_v39 = vpop.f32.mrb[164].mxu1 }
 0x275   :  { %v4784_v28 = vadd.f32 %v4773_v39, %v4602_v59  ;;  %v6723_v43 = vpop.f32.mrb[165].mxu1 }
 0x276   :  { %v4776_v1 = vpop.f32.mrb[166].mxu1 }
 0x277   :  { %v8390_v26 = vadd.f32 %v4784_v28, %v8372_v22  ;;  %v6724_v42 = vpop.f32.mrb[167].mxu1 }
 0x278   :  { %v4885_v61 = vpop.f32.mrb[168].mxu0 }
 0x279   :  { %v4887_v38 = vpop.f32.mrb[169].mxu0 }
 0x27a   :  { %v4889_v29 = vpop.f32.mrb[170].mxu0 }
 0x27b   :  { %v4890_v47 = vpop.f32.mrb[171].mxu0 }
 0x27c   :  { %v4926_v14 = vpop.f32.mrb[168].mxu1 }
 0x27d   :  { %v6729_v60 = vpop.f32.mrb[169].mxu1 }
 0x27e   :  { %v4929_v15 = vpop.f32.mrb[170].mxu1 }
 0x27f   :  { %v6730_v0 = vpop.f32.mrb[171].mxu1 }
 0x280   :  { %v5009_v3 = vpop.f32.mrb[172].mxu0 }
 0x281   :  { %v5011_v30 = vpop.f32.mrb[173].mxu0 }
 0x282   :  { %v5013_v57 = vpop.f32.mrb[174].mxu0 }
 0x283   :  { %v5014_v31 = vpop.f32.mrb[175].mxu0 }
 0x284   :  { %v5050_v58 = vpop.f32.mrb[172].mxu1 }
 0x285   :  { %v6735_v21 = vpop.f32.mrb[173].mxu1 }
 0x286   :  { %v5053_v45 = vpop.f32.mrb[174].mxu1 }
 0x287   :  { %v6736_v46 = vpop.f32.mrb[175].mxu1 }
 0x288   :  { %v5128_v34 = vpop.f32.mrb[176].mxu0 }
 0x289   :  { %v5129_v22 = vadd.f32 %v5128_v34, %v4885_v61  ;;  %v5130_v9 = vpop.f32.mrb[177].mxu0 }
 0x28a   :  { %v5131_v11 = vadd.f32 %v5130_v9, %v4887_v38  ;;  %v5132_v7 = vpop.f32.mrb[178].mxu0 }
 0x28b   :  { %v5133_v54 = vpop.f32.mrb[179].mxu0 }
 0x28c   :  { %v5169_v12 = vpop.f32.mrb[176].mxu1 }
 0x28d   :  { %v5170_v49 = vadd.f32 %v5169_v12, %v4926_v14  ;;  %v6741_v10 = vpop.f32.mrb[177].mxu1 }
 0x28e   :  { %v5172_v25 = vpop.f32.mrb[178].mxu1 }
 0x28f   :  { %v6742_v32 = vpop.f32.mrb[179].mxu1 }
 0x290   :  { %v5247_v56 = vpop.f32.mrb[180].mxu0 }
 0x291   :  { %v5248_v16 = vadd.f32 %v5247_v56, %v5009_v3  ;;  %v5249_v27 = vpop.f32.mrb[181].mxu0 }
 0x292   :  { %v5250_v5 = vadd.f32 %v5249_v27, %v5011_v30  ;;  %v5251_v6 = vpop.f32.mrb[182].mxu0 }
 0x293   :  { %v5252_v59 = vpop.f32.mrb[183].mxu0 }
 0x294   :  { %v5288_v62 = vpop.f32.mrb[180].mxu1 }
 0x295   :  { %v5289_v55 = vadd.f32 %v5288_v62, %v5050_v58  ;;  %v6747_v36 = vpop.f32.mrb[181].mxu1 }
 0x296   :  { %v5291_v19 = vpop.f32.mrb[182].mxu1 }
 0x297   :  { %v6748_v17 = vpop.f32.mrb[183].mxu1 }
 0x298   :  { %v5333_v37 = vpop.f32.mrb[184].mxu0 }
 0x299   :  { %v5466_v23 = vadd.f32 %v5333_v37, %v5129_v22  ;;  %v5335_v40 = vpop.f32.mrb[185].mxu0 }
 0x29a   :  { %v5467_v8 = vadd.f32 %v5335_v40, %v5131_v11  ;;  %v5337_v24 = vpop.f32.mrb[186].mxu0 }
 0x29b   :  { %v8393_v13 = vadd.f32 %v5466_v23, %v8375_v20  ;;  %v5338_v51 = vpop.f32.mrb[187].mxu0 }
 0x29c   :  { %v8396_v44 = vadd.f32 %v5467_v8, %v8378_v35  ;;  %v5374_v48 = vpop.f32.mrb[184].mxu1 }
 0x29d   :  { %v5468_v53 = vadd.f32 %v5374_v48, %v5170_v49  ;;  %v6753_v18 = vpop.f32.mrb[185].mxu1  ;;  %v6181_v48 = vpop.permute.xlu0 %6180 }
 0x29e   :  { %v5377_v33 = vpop.f32.mrb[186].mxu1 }
 0x29f   :  { %v8399_v41 = vadd.f32 %v5468_v53, %v8381_v52  ;;  %v6754_v63 = vpop.f32.mrb[187].mxu1 }
 0x2a0   :  { %v5419_v2 = vpop.f32.mrb[188].mxu0 }
 0x2a1   :  { %v5469_v39 = vadd.f32 %v5419_v2, %v5248_v16  ;;  %v5421_v28 = vpop.f32.mrb[189].mxu0 }
 0x2a2   :  { %v5470_v43 = vadd.f32 %v5421_v28, %v5250_v5  ;;  %v5423_v1 = vpop.f32.mrb[190].mxu0 }
 0x2a3   :  { %v8402_v20 = vadd.f32 %v5469_v39, %v8384_v4  ;;  %v5424_v42 = vpop.f32.mrb[191].mxu0 }
 0x2a4   :  { %v8405_v35 = vadd.f32 %v5470_v43, %v8387_v50  ;;  %v5460_v61 = vpop.f32.mrb[188].mxu1 }
 0x2a5   :  { %v5471_v38 = vadd.f32 %v5460_v61, %v5289_v55  ;;  %v6759_v29 = vpop.f32.mrb[189].mxu1 }
 0x2a6   :  { %v5463_v47 = vpop.f32.mrb[190].mxu1 }
 0x2a7   :  { %v8408_v52 = vadd.f32 %v5471_v38, %v8390_v26  ;;  %v6760_v14 = vpop.f32.mrb[191].mxu1 }
 0x2a8   :  { %v5572_v60 = vpop.f32.mrb[192].mxu0 }
 0x2a9   :  { %v5574_v15 = vpop.f32.mrb[193].mxu0 }
 0x2aa   :  { %v5576_v0 = vpop.f32.mrb[194].mxu0 }
 0x2ab   :  { %v5577_v3 = vpop.f32.mrb[195].mxu0 }
 0x2ac   :  { %v5613_v30 = vpop.f32.mrb[192].mxu1 }
 0x2ad   :  { %v6765_v57 = vpop.f32.mrb[193].mxu1 }
 0x2ae   :  { %v5616_v4 = vpop.f32.mrb[194].mxu1 }
 0x2af   :  { %v6766_v31 = vpop.f32.mrb[195].mxu1 }
 0x2b0   :  { %v5696_v58 = vpop.f32.mrb[196].mxu0 }
 0x2b1   :  { %v5698_v21 = vpop.f32.mrb[197].mxu0 }
 0x2b2   :  { %v5700_v50 = vpop.f32.mrb[198].mxu0 }
 0x2b3   :  { %v5701_v45 = vpop.f32.mrb[199].mxu0 }
 0x2b4   :  { %v5737_v46 = vpop.f32.mrb[196].mxu1 }
 0x2b5   :  { %v6771_v34 = vpop.f32.mrb[197].mxu1 }
 0x2b6   :  { %v5740_v22 = vpop.f32.mrb[198].mxu1 }
 0x2b7   :  { %v6772_v9 = vpop.f32.mrb[199].mxu1 }
 0x2b8   :  { %v5815_v11 = vpop.f32.mrb[200].mxu0 }
 0x2b9   :  { %v5816_v26 = vadd.f32 %v5815_v11, %v5572_v60  ;;  %v5817_v7 = vpop.f32.mrb[201].mxu0 }
 0x2ba   :  { %v5818_v54 = vadd.f32 %v5817_v7, %v5574_v15  ;;  %v5819_v12 = vpop.f32.mrb[202].mxu0 }
 0x2bb   :  { %v5820_v49 = vpop.f32.mrb[203].mxu0 }
 0x2bc   :  { %v5856_v10 = vpop.f32.mrb[200].mxu1 }
 0x2bd   :  { %v5857_v25 = vadd.f32 %v5856_v10, %v5613_v30  ;;  %v6777_v32 = vpop.f32.mrb[201].mxu1 }
 0x2be   :  { %v5859_v56 = vpop.f32.mrb[202].mxu1 }
 0x2bf   :  { %v6778_v16 = vpop.f32.mrb[203].mxu1 }
 0x2c0   :  { %v5934_v27 = vpop.f32.mrb[204].mxu0 }
 0x2c1   :  { %v5935_v5 = vadd.f32 %v5934_v27, %v5696_v58  ;;  %v5936_v6 = vpop.f32.mrb[205].mxu0 }
 0x2c2   :  { %v5937_v59 = vadd.f32 %v5936_v6, %v5698_v21  ;;  %v5938_v62 = vpop.f32.mrb[206].mxu0 }
 0x2c3   :  { %v5939_v55 = vpop.f32.mrb[207].mxu0 }
 0x2c4   :  { %v5975_v36 = vpop.f32.mrb[204].mxu1 }
 0x2c5   :  { %v5976_v19 = vadd.f32 %v5975_v36, %v5737_v46  ;;  %v6783_v17 = vpop.f32.mrb[205].mxu1 }
 0x2c6   :  { %v5978_v37 = vpop.f32.mrb[206].mxu1 }
 0x2c7   :  { %v6784_v23 = vpop.f32.mrb[207].mxu1 }
 0x2c8   :  { %v6020_v40 = vpop.f32.mrb[208].mxu0 }
 0x2c9   :  { %v6153_v8 = vadd.f32 %v6020_v40, %v5816_v26  ;;  %v6022_v24 = vpop.f32.mrb[209].mxu0 }
 0x2ca   :  { %v6154_v51 = vadd.f32 %v6022_v24, %v5818_v54  ;;  %v6024_v53 = vpop.f32.mrb[210].mxu0 }
 0x2cb   :  { %v6159_v18 = vadd.f32 %v6153_v8, %v8393_v13  ;;  %v6025_v33 = vpop.f32.mrb[211].mxu0 }
 0x2cc   :  { %v6160_v63 = vadd.f32 %v6154_v51, %v8396_v44  ;;  %v6061_v2 = vpop.f32.mrb[208].mxu1 }
 0x2cd   :  { %v6183_v39 = vadd.f32 %v6181_v48, %v6159_v18  ;;  %v6155_v28 = vadd.f32 %v6061_v2, %v5857_v25  ;;  %v6789_v43 = vpop.f32.mrb[209].mxu1 }
 0x2ce   :  { %v6184_v1 = vadd.f32 %v6181_v48, %v6160_v63  ;;  %v6064_v42 = vpop.f32.mrb[210].mxu1 }
 0x2cf   :  { %6189 = vst [vmem:[%s8439_s5] sm:$0xff] %v6183_v39  ;;  %v6161_v61 = vadd.f32 %v6155_v28, %v8399_v41  ;;  %v6790_v38 = vpop.f32.mrb[211].mxu1 }
 0x2d0   :  { %6190 = vst [vmem:[%s8439_s5 + $0x8] sm:$0xff] %v6184_v1  ;;  %v6106_v13 = vpop.f32.mrb[212].mxu0 }
 0x2d1   :  { %v6185_v29 = vadd.f32 %v6181_v48, %v6161_v61  ;;  %v6156_v44 = vadd.f32 %v6106_v13, %v5935_v5  ;;  %v6108_v47 = vpop.f32.mrb[213].mxu0 }
 0x2d2   :  { %v6157_v14 = vadd.f32 %v6108_v47, %v5937_v59  ;;  %v6110_v60 = vpop.f32.mrb[214].mxu0 }
 0x2d3   :  { %6191 = vst [vmem:[%s8439_s5 + $0x10] sm:$0xff] %v6185_v29  ;;  %v6162_v15 = vadd.f32 %v6156_v44, %v8402_v20  ;;  %v6111_v0 = vpop.f32.mrb[215].mxu0 }
 0x2d4   :  { %v6163_v41 = vadd.f32 %v6157_v14, %v8405_v35  ;;  %v6147_v3 = vpop.f32.mrb[212].mxu1 }
 0x2d5   :  { %v6186_v30 = vadd.f32 %v6181_v48, %v6162_v15  ;;  %v6158_v57 = vadd.f32 %v6147_v3, %v5976_v19  ;;  %v6795_v4 = vpop.f32.mrb[213].mxu1 }
 0x2d6   :  { %v6187_v31 = vadd.f32 %v6181_v48, %v6163_v41  ;;  %v6150_v58 = vpop.f32.mrb[214].mxu1 }
 0x2d7   :  { %6192 = vst [vmem:[%s8439_s5 + $0x18] sm:$0xff] %v6186_v30  ;;  %v6164_v21 = vadd.f32 %v6158_v57, %v8408_v52  ;;  %v6796_v50 = vpop.f32.mrb[215].mxu1 }
 0x2d8   :  { %6193 = vst [vmem:[%s8439_s5 + $0x20] sm:$0xff] %v6187_v31 }
 0x2d9   :  { %v6188_v20 = vadd.f32 %v6181_v48, %v6164_v21 }
 0x2db   :  { %6194 = vst [vmem:[%s8439_s5 + $0x28] sm:$0xff] %v6188_v20 }

</bundles_post_ra>
